<compile_context>
chip_gen: v6e
topology: v6e:2x2x1
jax: 0.10.0
libtpu: 0.0.40
codegen_flags: <defaults>
</compile_context>

<pallas_src>
import math

import jax
import jax.numpy as jnp
from jax.experimental import pallas as pl
from jax.experimental.pallas import tpu as pltpu


def _complex_outer_linear_kernel(coef_ref, x_ref, w1t_ref, w2c_ref, bias_ref,
                                 out_ref, wcat_ref):
    cos_coef = coef_ref[0]          # SMEM scalars
    sin_coef = coef_ref[1]
    out_f = w2c_ref.shape[1]

    # phase = sin_coef * real(W1 @ W2) in ONE tiny MXU matmul.
    #   lhs (2r, in), rhs (2r, out), contract over axis 0 -> (in, out).
    #   sin_coef folded onto the (2r, out) operand (smallest tensor in play).
    #   Precision.HIGHEST: K = 2r = 8, cost is negligible, but the result is
    #   multiplied by sin_coef before sin/cos so bf16-pass error would be
    #   amplified into O(1)-radian phase error.
    phase = jax.lax.dot_general(
        w1t_ref[...], sin_coef * w2c_ref[...],
        dimension_numbers=(((0,), (0,)), ((), ())),
        precision=jax.lax.Precision.HIGHEST,
        preferred_element_type=jnp.float32)                    # (in, out)

    # Build W_cat = [cos(phase) | sin(phase)] in VMEM scratch via two
    # 128-lane-aligned (unmasked) stores -- no concatenate temp/copy.
    wcat_ref[:, :out_f] = jnp.cos(phase)
    wcat_ref[:, out_f:] = jnp.sin(phase)

    # y = (cos_coef * x) @ W_cat + bias.  cos_coef folded onto x (B x in, the
    # small operand) instead of the (in, 2*out) W_cat tile.  x is real, so
    # [y_real | y_imag] is one lane-dense (B, 2*out = 256) MXU matmul + store.
    out_ref[...] = (jnp.dot(cos_coef * x_ref[...], wcat_ref[...],
                            preferred_element_type=jnp.float32)
                    + bias_ref[...])


def prepare_params(w1, w2, bias, out_features=None):
    """Split complex parameters into lane-dense f32 planes.

    Done ONCE per parameter update (hoisted out of the per-call path):
      w1t      : (2*rank, in)   = [W1r.T ; W1i.T]   (size-8 axis on sublanes)
      w2c      : (2*rank, out)  = [W2r   ; -W2i]    (real-part sign folded in)
      bias_cat : (1, 2*out)     = [bias_r | bias_i]
    """
    if out_features is None:
        out_features = w2.shape[1]
    w1t = jnp.concatenate([jnp.real(w1).astype(jnp.float32).T,
                           jnp.imag(w1).astype(jnp.float32).T], axis=0)
    w2c = jnp.concatenate([jnp.real(w2).astype(jnp.float32),
                           -jnp.imag(w2).astype(jnp.float32)], axis=0)
    if bias is None:
        bias_cat = jnp.zeros((1, 2 * out_features), jnp.float32)
    else:
        bias_cat = jnp.concatenate(
            [jnp.real(bias).astype(jnp.float32),
             jnp.imag(bias).astype(jnp.float32)]).reshape(1, 2 * out_features)
    return w1t, w2c, bias_cat


def complex_outer_linear_planes(x, w1t, w2c, bias_cat, cos_coef, sin_coef):
    """Planes-level forward: returns y_cat = [y_real | y_imag], shape (B, 2*out).

    x: (B, in) f32; w1t: (2r, in) f32; w2c: (2r, out) f32; bias_cat: (1, 2*out) f32.
    """
    B, in_f = x.shape
    two_r = w1t.shape[0]
    out_f = w2c.shape[1]

    coef = jnp.array([cos_coef, sin_coef], dtype=jnp.float32)   # -> SMEM

    full = lambda shape: pl.BlockSpec(shape, lambda: (0,) * len(shape))

    cost = pl.CostEstimate(
        flops=2 * two_r * in_f * out_f            # rank-8 outer matmul
              + 2 * B * in_f * (2 * out_f)        # x @ W_cat
              + two_r * out_f + B * in_f,         # scalar folds
        transcendentals=2 * in_f * out_f,         # cos + sin
        bytes_accessed=4 * (x.size + w1t.size + w2c.size + bias_cat.size
                            + coef.size + B * 2 * out_f),
    )

    return pl.pallas_call(
        _complex_outer_linear_kernel,
        out_shape=jax.ShapeDtypeStruct((B, 2 * out_f), jnp.float32),
        in_specs=[
            pl.BlockSpec(memory_space=pltpu.MemorySpace.SMEM),  # [cos, sin]
            full((B, in_f)),
            full((two_r, in_f)),
            full((two_r, out_f)),
            full((1, 2 * out_f)),
        ],
        out_specs=full((B, 2 * out_f)),
        scratch_shapes=[pltpu.VMEM((in_f, 2 * out_f), jnp.float32)],  # W_cat
        cost_estimate=cost,
    )(coef, x.astype(jnp.float32), w1t, w2c, bias_cat)


def complex_outer_linear(x, w1, w2, bias, cos_coef=80.0, sin_coef=80.0):
    """Module-compatible convenience wrapper.  x: (B, in) f32; w1: (in, rank),
    w2: (rank, out), bias: (out,) complex64.  Returns (B, out) complex64.
    (If the consumer accepts real/imag planes, call complex_outer_linear_planes
    directly and skip the split + repack.)"""
    out_f = w2.shape[1]
    w1t, w2c, bias_cat = prepare_params(w1, w2, bias, out_f)
    out_cat = complex_outer_linear_planes(x, w1t, w2c, bias_cat,
                                          cos_coef, sin_coef)
    return jax.lax.complex(out_cat[:, :out_f], out_cat[:, out_f:])


def _reference(x, w1, w2, bias, cos_coef=80.0, sin_coef=80.0):
    """Pure-JAX translation of the PyTorch forward, at HIGHEST matmul precision."""
    hi = jax.lax.Precision.HIGHEST
    outer = jnp.einsum("ij,jk->ik", w1, w2, precision=hi)
    w = (cos_coef * jnp.exp(1j * sin_coef * jnp.real(outer))).astype(jnp.complex64)
    out = jnp.matmul(x.astype(jnp.complex64), w, precision=hi)
    if bias is not None:
        out = out + bias
    return out


if __name__ == "__main__":
    in_features, out_features, rank = 128, 128, 4
    batch = 8
    scale = math.sqrt(math.pi)

    key = jax.random.PRNGKey(0)
    k_x, k1r, k1i, k2r, k2i, kbr, kbi = jax.random.split(key, 7)

    # Parameter init mirroring the module: (randn - 0.5) * 2 * sqrt(pi), complex.
    w1 = jax.lax.complex(
        (jax.random.normal(k1r, (in_features, rank)) - 0.5) * 2.0 * scale,
        (jax.random.normal(k1i, (in_features, rank)) - 0.5) * 2.0 * scale,
    ).astype(jnp.complex64)
    w2 = jax.lax.complex(
        (jax.random.normal(k2r, (rank, out_features)) - 0.5) * 2.0 * scale,
        (jax.random.normal(k2i, (rank, out_features)) - 0.5) * 2.0 * scale,
    ).astype(jnp.complex64)
    # Non-zero bias so the bias-add path is actually validated.
    bias = jax.lax.complex(
        0.1 * jax.random.normal(kbr, (out_features,)),
        0.1 * jax.random.normal(kbi, (out_features,)),
    ).astype(jnp.complex64)
    x = jax.random.normal(k_x, (batch, in_features), dtype=jnp.float32)

    # Parameter planes prepared ONCE (hoisted out of the per-call path).
    w1t, w2c, bias_cat = prepare_params(w1, w2, bias, out_features)

    fwd_planes = jax.jit(complex_outer_linear_planes)

    def fwd(x_, cos_c, sin_c):
        out_cat = fwd_planes(x_, w1t, w2c, bias_cat, cos_c, sin_c)
        return jax.lax.complex(out_cat[:, :out_features],
                               out_cat[:, out_features:])

    # 1) Module defaults (cos_coef = sin_coef = 80): exercise the kernel.
    #    f32 sin/cos at O(1e3) rad is ill-conditioned, so only shape/finiteness
    #    is asserted here (see header note).
    out_default = jax.block_until_ready(fwd(x, 80.0, 80.0))
    assert out_default.shape == (batch, out_features)
    assert out_default.dtype == jnp.complex64
    assert bool(jnp.all(jnp.isfinite(out_default.real)
                        & jnp.isfinite(out_default.imag)))

    # 2) Well-conditioned phase scale: same compiled executable (coefficients
    #    are runtime SMEM scalars, no retrace), checked against the reference.
    cos_c, sin_c = 80.0, 0.1
    out = jax.block_until_ready(fwd(x, cos_c, sin_c))
    ref = _reference(x, w1, w2, bias, cos_c, sin_c)
    assert out.shape == ref.shape and out.dtype == jnp.complex64
    assert jnp.allclose(out, ref, atol=5e-2, rtol=2e-3), (
        "mismatch vs reference: max |diff| = "
        f"{float(jnp.max(jnp.abs(out - ref)))}")

    # 3) Module-compatible wrapper (splits params per call) also agrees.
    out_wrapped = jax.block_until_ready(
        jax.jit(complex_outer_linear)(x, w1, w2, bias, cos_c, sin_c))
    assert jnp.allclose(out_wrapped, ref, atol=5e-2, rtol=2e-3)

    print("KERNEL_OK")
</pallas_src>

<mosaic_0001>
module attributes {stable_mosaic.version = 11 : i64} {
  func.func @_complex_outer_linear_kernel(%arg0: memref<2xf32, #tpu.memory_space<smem>>, %arg1: memref<8x128xf32, #tpu.memory_space<vmem>>, %arg2: memref<8x128xf32, #tpu.memory_space<vmem>>, %arg3: memref<8x128xf32, #tpu.memory_space<vmem>>, %arg4: memref<1x256xf32, #tpu.memory_space<vmem>>, %arg5: memref<8x256xf32, #tpu.memory_space<vmem>>, %arg6: memref<128x256xf32, #tpu.memory_space<vmem>>) attributes {dimension_semantics = [], scalar_prefetch = 0 : i64, scratch_operands = 1 : i64, tpu.core_type = #tpu.core_type<tc>} {
    %c0 = arith.constant 0 : index
    %0 = memref.load %arg0[%c0] : memref<2xf32, #tpu.memory_space<smem>>
    %c1 = arith.constant 1 : index
    %1 = memref.load %arg0[%c1] : memref<2xf32, #tpu.memory_space<smem>>
    %c0_0 = arith.constant 0 : index
    %c0_1 = arith.constant 0 : index
    %2 = vector.load %arg2[%c0_0, %c0_1] : memref<8x128xf32, #tpu.memory_space<vmem>>, vector<8x128xf32>
    %c0_2 = arith.constant 0 : index
    %c0_3 = arith.constant 0 : index
    %3 = vector.load %arg3[%c0_2, %c0_3] : memref<8x128xf32, #tpu.memory_space<vmem>>, vector<8x128xf32>
    %4 = vector.broadcast %1 : f32 to vector<8x128xf32>
    %5 = arith.mulf %4, %3 : vector<8x128xf32>
    %cst = arith.constant dense<0.000000e+00> : vector<128x128xf32>
    %6 = tpu.matmul %2, %5, %cst {dimension_numbers = #tpu.dot_dimension_numbers<[0], [0], [1], [1], [0, 1, 1, 1], [], []>, precision = #tpu.contract_precision<fp32>} : vector<8x128xf32>, vector<8x128xf32>, vector<128x128xf32> -> vector<128x128xf32>
    %7 = math.cos %6 : vector<128x128xf32>
    %c0_4 = arith.constant 0 : index
    %c0_5 = arith.constant 0 : index
    %8 = vector.load %arg6[%c0_4, %c0_5] : memref<128x256xf32, #tpu.memory_space<vmem>>, vector<128x128xf32>
    tpu.vector_store %arg6[%c0_4, %c0_5], %7 {strides = array<i32>} : memref<128x256xf32, #tpu.memory_space<vmem>>, vector<128x128xf32>,
    %9 = math.sin %6 : vector<128x128xf32>
    %c0_6 = arith.constant 0 : index
    %c128 = arith.constant 128 : index
    %10 = vector.load %arg6[%c0_6, %c128] : memref<128x256xf32, #tpu.memory_space<vmem>>, vector<128x128xf32>
    tpu.vector_store %arg6[%c0_6, %c128], %9 {strides = array<i32>} : memref<128x256xf32, #tpu.memory_space<vmem>>, vector<128x128xf32>,
    %c0_7 = arith.constant 0 : index
    %c0_8 = arith.constant 0 : index
    %11 = vector.load %arg1[%c0_7, %c0_8] : memref<8x128xf32, #tpu.memory_space<vmem>>, vector<8x128xf32>
    %12 = vector.broadcast %0 : f32 to vector<8x128xf32>
    %13 = arith.mulf %12, %11 : vector<8x128xf32>
    %c0_9 = arith.constant 0 : index
    %c0_10 = arith.constant 0 : index
    %14 = vector.load %arg6[%c0_9, %c0_10] : memref<128x256xf32, #tpu.memory_space<vmem>>, vector<128x256xf32>
    %cst_11 = arith.constant dense<0.000000e+00> : vector<8x256xf32>
    %15 = tpu.matmul %13, %14, %cst_11 {dimension_numbers = #tpu.dot_dimension_numbers<[1], [0], [0], [1], [0, 0, 1, 1], [], []>} : vector<8x128xf32>, vector<128x256xf32>, vector<8x256xf32> -> vector<8x256xf32>
    %c0_12 = arith.constant 0 : index
    %c0_13 = arith.constant 0 : index
    %16 = vector.load %arg4[%c0_12, %c0_13] : memref<1x256xf32, #tpu.memory_space<vmem>>, vector<1x256xf32>
    %17 = vector.broadcast %16 : vector<1x256xf32> to vector<8x256xf32>
    %18 = arith.addf %15, %17 : vector<8x256xf32>
    %c0_14 = arith.constant 0 : index
    %c0_15 = arith.constant 0 : index
    %19 = vector.load %arg5[%c0_14, %c0_15] : memref<8x256xf32, #tpu.memory_space<vmem>>, vector<8x256xf32>
    tpu.vector_store %arg5[%c0_14, %c0_15], %18 {strides = array<i32>} : memref<8x256xf32, #tpu.memory_space<vmem>>, vector<8x256xf32>,
    return
  }
}

</mosaic_0001>

<bundles_post_ra>
// kernel: complex_outer_linear_planes.1
= control target key start
LH: loop header
LB: loop body
LE: loop exit
PB: predicated region body
PF: predicated region fallthrough
CT: control target
= control target key end

     0   :  { %10 = vsyncpa [#allocation6], 0  ;;  %s7753_s0 = inlined_call_operand.vmem [shape: f32[2], index: 0, kind: input, shape index: {}]   ;;  %s7754_s1 = inlined_call_operand.vmem [shape: f32[8,128], index: 1, kind: input, shape index: {}]   ;;  %s7755_s2 = inlined_call_operand.hbm [shape: f32[8,128], index: 2, kind: input, shape index: {}]   ;;  %s7756_s3 = inlined_call_operand.hbm [shape: f32[8,128], index: 3, kind: input, shape index: {}]   ;;  %s7757_s4 = inlined_call_operand.vmem [shape: f32[1,256], index: 4, kind: input, shape index: {}]   ;;  %s7758_s5 = inlined_call_operand.hbm [shape: f32[8,256], index: 5, kind: output, shape index: {}]  }
   0x1   :  { %11 = vsyncpa [#allocation4], 0 }
   0x2   :  { %12 = vsyncpa [#allocation9], 0 }
   0x3   :  { %13 = vsyncpa [#allocation5], 0  ;;  %s20_s20 = sshll.u32 %s7753_s0, 4  ;;  %s21_s20 = int_to_ptr.vmem [resolvable:$true] %s20_s20 }
   0x4   :  { %s5243_s21 = scalar_lea.vmem %s21_s20, 16  ;;  %p5248_p1 = scmp.lt.s32.totalorder %s21_s20, %s21_s20 }
   0x5   :  { %p5244_p0 = scmp.ne.s32.totalorder %s21_s20, %s5243_s21  ;;  %p5249_p2 = scmp.lt.s32.totalorder %s5243_s21, %s5243_s21 }
   0x7   :  { %p5250_p3 = por %p5249_p2, %p5248_p1 }
   0x9   :  { %p5251_p4 = pnand %p5250_p3, %p5244_p0 }
   0xb   :  { %5254 = shalt.err (!%p5251_p4)
}
   0xc   :  { %s5323_s22 = smov [#allocation3]   ;;  %s5324_s23 = smov [#allocation7]  }
   0xd   :  { %23 = dma.vmem_to_smem %s21_s20, 16, %s5323_s22, [#allocation6]  }
   0xe   :  { %s32_s24 = sshll.u32 %s5324_s23, 4  ;;  %s5325_s25 = smov [#allocation8]   ;;  %s33_s24 = int_to_ptr.vmem [resolvable:$true] %s32_s24 }
   0xf   :  { %s42_s26 = sshll.u32 %s5325_s25, 4  ;;  %s5263_s27 = scalar_lea.vmem %s33_s24, 128  ;;  %s43_s26 = int_to_ptr.vmem [resolvable:$true] %s42_s26 }
  0x10   :  { %p5264_p5 = scmp.ne.s32.totalorder %s33_s24, %s5263_s27  ;;  %p5268_p6 = scmp.lt.s32.totalorder %s33_s24, %s33_s24 }
  0x11   :  { %p5269_p7 = scmp.lt.s32.totalorder %s5263_s27, %s5263_s27 }
  0x13   :  { %p5270_p8 = por %p5269_p7, %p5268_p6 }
  0x15   :  { %p5271_p9 = pnand %p5270_p8, %p5264_p5 }
  0x17   :  { %5274 = shalt.err (!%p5271_p9)
}
  0x18   :  { %35 = dma.hbm_to_vmem [thread:$0]  %s7755_s2, 128, %s33_s24, [#allocation4]  }
  0x19   :  { %s5283_s29 = scalar_lea.vmem %s43_s26, 128  ;;  %p5288_p11 = scmp.lt.s32.totalorder %s43_s26, %s43_s26 }
  0x1a   :  { %p5284_p10 = scmp.ne.s32.totalorder %s43_s26, %s5283_s29  ;;  %p5289_p12 = scmp.lt.s32.totalorder %s5283_s29, %s5283_s29 }
  0x1c   :  { %p5290_p13 = por %p5289_p12, %p5288_p11 }
  0x1e   :  { %p5291_p0 = pnand %p5290_p13, %p5284_p10 }
  0x20   :  { %5294 = shalt.err (!%p5291_p0)
}
  0x21   :  { %45 = dma.hbm_to_vmem [thread:$0]  %s7756_s3, 128, %s43_s26, [#allocation9]  }
  0x22   :  { %5315 = dma.done.wait [#allocation6], 16  }
  0x23   :  { %5316 = vsyncadd [#allocation6], 4294967280 }
  0x24   :  { %5317 = dma.done.wait [#allocation4], 128  }
  0x25   :  { %5318 = vsyncadd [#allocation4], 4294967168 }
  0x26   :  { %5319 = dma.done.wait [#allocation9], 128  }
  0x27   :  { %5320 = vsyncadd [#allocation9], 4294967168 }
  0x28   :  { %57 = sfence }
  0x29   :  { %v60_v0 = vld [vmem:[#allocation7] sm:$0xff]  ;;  %s4717_s2 = sld [smem:[#allocation3 + $0x1]]  ;;  %v61_v1 = vld [vmem:[#allocation8] sm:$0xff]  ;;  %vm96_vm0 = vcmask 64512   ;;  %s5333_s10 = smov [#allocation10]  }
  0x2a   :  { %64 = vxpose.xlu0.b32.start.end [1/1] (short) %v60_v0, 128  ;;  %s58_s3 = sld [smem:[#allocation3]]  ;;  %s4706_s11 = sshll.u32 %s5333_s10, 4  ;;  %s4707_s11 = int_to_ptr.vmem [resolvable:$true] %s4706_s11 }
  0x2b   :  { %s5295_s12 = scalar_lea.vmem %s4707_s11, 256  ;;  %p5300_p2 = scmp.lt.s32.totalorder %s4707_s11, %s4707_s11 }
  0x2c   :  { %p5296_p1 = scmp.ne.s32.totalorder %s4707_s11, %s5295_s12  ;;  %p5301_p3 = scmp.lt.s32.totalorder %s5295_s12, %s5295_s12 }
  0x2e   :  { %p5302_p4 = por %p5301_p3, %p5300_p2 }
  0x2f   :  { %v62_v2 = vstv %s4717_s2 }
  0x30   :  { %v63_v3 = vmul.f32 %v62_v2, %v61_v1  ;;  %p5303_p5 = pnand %p5302_p4, %p5296_p1 }
  0x32   :  { %v5373_v4 = vand.u32 4294901760, %v63_v3 }
  0x34   :  { %v403_v5 = vsub.f32 %v63_v3, %v5373_v4  ;;  %4948 = vmatprep.subr.mxu0 %v5373_v4 }
  0x35   :  { %4949 = vmatpush3.msra.mxu0 %v5373_v4 }
  0x36   :  { %v5378_v6 = vand.u32 4294901760, %v403_v5  ;;  %5000 = vmatprep.subr.mxu0 %v403_v5 }
  0x38   :  { %v405_v7 = vsub.f32 %v403_v5, %v5378_v6 }
  0x3a   :  { %v406_v8 = vand.u32 4294901760, %v405_v7 }
  0x3c   :  { %4974 = vmatprep.subr.mxu1 %v406_v8 }
  0x3d   :  { %4975 = vmatpush3.msra.mxu1 %v406_v8 }
  0x3e   :  { %5026 = vmatprep.subr.mxu1 %v5373_v4 }
  0xa6   :  { %v80_v9 = vpop.trf.xlu0 }
  0xa7   :  { %v98_v10 = vsel %vm96_vm0, %v80_v9, 0 }
  0xa8   :  { %v5383_v11 = vand.u32 4294901760, %v98_v10 }
  0xaa   :  { %v5386_v12 = vsub.f32 %v98_v10, %v5383_v11  ;;  %4976 = vmatprep.mubr.f32.mxu1 %v5383_v11  ;;  %v81_v13 = vpop.trf.xlu0 }
  0xab   :  { %v101_v14 = vsel %vm96_vm0, %v81_v13, 0 }
  0xac   :  { %v5390_v15 = vand.u32 4294901760, %v101_v14  ;;  %v213_v16 = vand.u32 4294901760, %v5386_v12 }
  0xae   :  { %v5394_v17 = vsub.f32 %v101_v14, %v5390_v15  ;;  %v82_v18 = vpop.trf.xlu0  ;;  %4977 = vmatmul.mubr.f32.vlgmr.msra.gmra.mxu1 %v5390_v15  ;;  %v214_v19 = vsub.f32 %v5386_v12, %v213_v16 }
  0xaf   :  { %v104_v20 = vsel %vm96_vm0, %v82_v18, 0  ;;  %5027 = vmatpush3.msra.mxu1 %v5373_v4 }
  0xb0   :  { %v223_v21 = vand.u32 4294901760, %v5394_v17  ;;  %v5403_v22 = vand.u32 4294901760, %v104_v20  ;;  %v215_v23 = vand.u32 4294901760, %v214_v19  ;;  %5078 = vmatprep.subr.mxu1 %v5373_v4 }
  0xb2   :  { %v5407_v24 = vsub.f32 %v104_v20, %v5403_v22  ;;  %4950 = vmatprep.mubr.f32.mxu0 %v215_v23  ;;  %v83_v25 = vpop.trf.xlu0  ;;  %4979 = vmatprep.mubr.f32.mxu1 %v5403_v22  ;;  %v224_v26 = vsub.f32 %v5394_v17, %v223_v21 }
  0xb3   :  { %v107_v27 = vsel %vm96_vm0, %v83_v25, 0 }
  0xb4   :  { %v233_v28 = vand.u32 4294901760, %v5407_v24  ;;  %v5415_v29 = vand.u32 4294901760, %v107_v27  ;;  %v225_v30 = vand.u32 4294901760, %v224_v26 }
  0xb6   :  { %v5418_v31 = vsub.f32 %v107_v27, %v5415_v29  ;;  %v84_v32 = vpop.trf.xlu0  ;;  %4951 = vmatmul.mubr.f32.vlgmr.msra.gmra.mxu0 %v225_v30  ;;  %4980 = vmatmul.mubr.f32.gmra.mxu1 %v5415_v29  ;;  %v234_v33 = vsub.f32 %v5407_v24, %v233_v28 }
  0xb7   :  { %v110_v34 = vsel %vm96_vm0, %v84_v32, 0  ;;  %5001 = vmatpush3.msra.mxu0 %v403_v5 }
  0xb8   :  { %v243_v35 = vand.u32 4294901760, %v5418_v31  ;;  %v5426_v36 = vand.u32 4294901760, %v110_v34  ;;  %v235_v37 = vand.u32 4294901760, %v234_v33  ;;  %5052 = vmatprep.subr.mxu0 %v5378_v6 }
  0xba   :  { %v5430_v38 = vsub.f32 %v110_v34, %v5426_v36  ;;  %v85_v39 = vpop.trf.xlu0  ;;  %4953 = vmatprep.mubr.f32.mxu0 %v235_v37  ;;  %4982 = vmatprep.mubr.f32.mxu1 %v5426_v36  ;;  %v244_v40 = vsub.f32 %v5418_v31, %v243_v35 }
  0xbb   :  { %v113_v41 = vsel %vm96_vm0, %v85_v39, 0 }
  0xbc   :  { %v253_v42 = vand.u32 4294901760, %v5430_v38  ;;  %v5438_v43 = vand.u32 4294901760, %v113_v41  ;;  %v245_v44 = vand.u32 4294901760, %v244_v40 }
  0xbe   :  { %v5441_v45 = vsub.f32 %v113_v41, %v5438_v43  ;;  %v86_v46 = vpop.trf.xlu0  ;;  %4954 = vmatmul.mubr.f32.gmra.mxu0 %v245_v44  ;;  %4983 = vmatmul.mubr.f32.gmra.mxu1 %v5438_v43  ;;  %v254_v47 = vsub.f32 %v5430_v38, %v253_v42 }
  0xbf   :  { %v116_v48 = vsel %vm96_vm0, %v86_v46, 0 }
  0xc0   :  { %v263_v49 = vand.u32 4294901760, %v5441_v45  ;;  %v5449_v50 = vand.u32 4294901760, %v116_v48  ;;  %v255_v51 = vand.u32 4294901760, %v254_v47 }
  0xc2   :  { %v5452_v52 = vsub.f32 %v116_v48, %v5449_v50  ;;  %v87_v53 = vpop.trf.xlu0  ;;  %4956 = vmatprep.mubr.f32.mxu0 %v255_v51  ;;  %4985 = vmatprep.mubr.f32.mxu1 %v5449_v50  ;;  %v264_v54 = vsub.f32 %v5441_v45, %v263_v49 }
  0xc3   :  { %v119_v55 = vsel %vm96_vm0, %v87_v53, 0 }
  0xc4   :  { %v273_v56 = vand.u32 4294901760, %v5452_v52  ;;  %v5460_v57 = vand.u32 4294901760, %v119_v55  ;;  %v265_v58 = vand.u32 4294901760, %v264_v54 }
  0xc6   :  { %v5463_v59 = vsub.f32 %v119_v55, %v5460_v57  ;;  %v88_v60 = vpop.trf.xlu0  ;;  %4957 = vmatmul.mubr.f32.gmra.mxu0 %v265_v58  ;;  %4986 = vmatmul.mubr.f32.gmra.mxu1 %v5460_v57  ;;  %v274_v61 = vsub.f32 %v5452_v52, %v273_v56 }
  0xc7   :  { %v122_v62 = vsel %vm96_vm0, %v88_v60, 0 }
  0xc8   :  { %v283_v63 = vand.u32 4294901760, %v5463_v59  ;;  %v5471_v0 = vand.u32 4294901760, %v122_v62  ;;  %v275_v1 = vand.u32 4294901760, %v274_v61 }
  0xca   :  { %v5474_v2 = vsub.f32 %v122_v62, %v5471_v0  ;;  %v89_v3 = vpop.trf.xlu0  ;;  %4959 = vmatprep.mubr.f32.mxu0 %v275_v1  ;;  %4988 = vmatprep.mubr.f32.mxu1 %v5471_v0  ;;  %v284_v5 = vsub.f32 %v5463_v59, %v283_v63 }
  0xcb   :  { %v125_v7 = vsel %vm96_vm0, %v89_v3, 0 }
  0xcc   :  { %v293_v8 = vand.u32 4294901760, %v5474_v2  ;;  %v5482_v9 = vand.u32 4294901760, %v125_v7  ;;  %v285_v10 = vand.u32 4294901760, %v284_v5 }
  0xce   :  { %v5485_v13 = vsub.f32 %v125_v7, %v5482_v9  ;;  %v90_v14 = vpop.trf.xlu0  ;;  %4960 = vmatmul.mubr.f32.gmra.mxu0 %v285_v10  ;;  %4989 = vmatmul.mubr.f32.gmra.mxu1 %v5482_v9  ;;  %v294_v18 = vsub.f32 %v5474_v2, %v293_v8 }
  0xcf   :  { %v128_v19 = vsel %vm96_vm0, %v90_v14, 0 }
  0xd0   :  { %v303_v20 = vand.u32 4294901760, %v5485_v13  ;;  %v5493_v23 = vand.u32 4294901760, %v128_v19  ;;  %v295_v25 = vand.u32 4294901760, %v294_v18 }
  0xd2   :  { %v5496_v26 = vsub.f32 %v128_v19, %v5493_v23  ;;  %v91_v27 = vpop.trf.xlu0  ;;  %4962 = vmatprep.mubr.f32.mxu0 %v295_v25  ;;  %4991 = vmatprep.mubr.f32.mxu1 %v5493_v23  ;;  %v304_v30 = vsub.f32 %v5485_v13, %v303_v20 }
  0xd3   :  { %v131_v32 = vsel %vm96_vm0, %v91_v27, 0 }
  0xd4   :  { %v313_v33 = vand.u32 4294901760, %v5496_v26  ;;  %v5504_v34 = vand.u32 4294901760, %v131_v32  ;;  %v305_v37 = vand.u32 4294901760, %v304_v30 }
  0xd6   :  { %v5507_v39 = vsub.f32 %v131_v32, %v5504_v34  ;;  %v92_v40 = vpop.trf.xlu0  ;;  %4963 = vmatmul.mubr.f32.gmra.mxu0 %v305_v37  ;;  %4992 = vmatmul.mubr.f32.gmra.mxu1 %v5504_v34  ;;  %v314_v41 = vsub.f32 %v5496_v26, %v313_v33 }
  0xd7   :  { %v134_v44 = vsel %vm96_vm0, %v92_v40, 0 }
  0xd8   :  { %v323_v46 = vand.u32 4294901760, %v5507_v39  ;;  %v5515_v47 = vand.u32 4294901760, %v134_v44  ;;  %v315_v48 = vand.u32 4294901760, %v314_v41 }
  0xda   :  { %v5518_v51 = vsub.f32 %v134_v44, %v5515_v47  ;;  %v93_v53 = vpop.trf.xlu0  ;;  %4965 = vmatprep.mubr.f32.mxu0 %v315_v48  ;;  %4994 = vmatprep.mubr.f32.mxu1 %v5515_v47  ;;  %v324_v54 = vsub.f32 %v5507_v39, %v323_v46 }
  0xdb   :  { %v137_v55 = vsel %vm96_vm0, %v93_v53, 0 }
  0xdc   :  { %v333_v58 = vand.u32 4294901760, %v5518_v51  ;;  %v5524_v60 = vand.u32 4294901760, %v137_v55  ;;  %v325_v61 = vand.u32 4294901760, %v324_v54 }
  0xde   :  { %v342_v62 = vsub.f32 %v137_v55, %v5524_v60  ;;  %v94_v1 = vpop.trf.xlu0  ;;  %4966 = vmatmul.mubr.f32.gmra.mxu0 %v325_v61  ;;  %4995 = vmatmul.mubr.f32.gmra.mxu1 %v5524_v60  ;;  %v334_v3 = vsub.f32 %v5518_v51, %v333_v58 }
  0xdf   :  { %v140_v5 = vsel %vm96_vm0, %v94_v1, 0 }
  0xe0   :  { %v343_v7 = vand.u32 4294901760, %v342_v62  ;;  %v5530_v10 = vand.u32 4294901760, %v140_v5  ;;  %v335_v14 = vand.u32 4294901760, %v334_v3 }
  0xe2   :  { %v352_v18 = vsub.f32 %v140_v5, %v5530_v10  ;;  %v95_v19 = vpop.trf.xlu0  ;;  %4968 = vmatprep.mubr.f32.mxu0 %v335_v14  ;;  %4997 = vmatprep.mubr.f32.mxu1 %v5530_v10  ;;  %v344_v25 = vsub.f32 %v342_v62, %v343_v7 }
  0xe3   :  { %v143_v27 = vsel %vm96_vm0, %v95_v19, 0 }
  0xe4   :  { %v353_v30 = vand.u32 4294901760, %v352_v18  ;;  %v5535_v32 = vand.u32 4294901760, %v143_v27  ;;  %v345_v37 = vand.u32 4294901760, %v344_v25 }
  0xe6   :  { %v362_v40 = vsub.f32 %v143_v27, %v5535_v32  ;;  %4969 = vmatmul.mubr.f32.gmra.mxu0 %v345_v37  ;;  %4998 = vmatmul.mubr.f32.gmra.mxu1 %v5535_v32  ;;  %v354_v41 = vsub.f32 %v352_v18, %v353_v30 }
  0xe7   :  { %5028 = vmatprep.mubr.f32.mxu1 %v213_v16 }
  0xe8   :  { %v363_v44 = vand.u32 4294901760, %v362_v40  ;;  %v355_v48 = vand.u32 4294901760, %v354_v41 }
  0xea   :  { %4971 = vmatprep.mubr.f32.mxu0 %v355_v48  ;;  %5029 = vmatmul.mubr.f32.vlgmr.msra.gmra.mxu1 %v223_v21  ;;  %v364_v53 = vsub.f32 %v362_v40, %v363_v44 }
  0xeb   :  { %5031 = vmatprep.mubr.f32.mxu1 %v233_v28  ;;  %5079 = vmatpush3.msra.mxu1 %v5373_v4 }
  0xec   :  { %v365_v54 = vand.u32 4294901760, %v364_v53 }
  0xee   :  { %4972 = vmatmul.mubr.f32.gmra.mxu0 %v365_v54  ;;  %5032 = vmatmul.mubr.f32.gmra.mxu1 %v243_v35 }
  0xef   :  { %5002 = vmatprep.mubr.f32.mxu0 %v5386_v12  ;;  %5034 = vmatprep.mubr.f32.mxu1 %v253_v42 }
  0xf2   :  { %5003 = vmatmul.mubr.f32.vlgmr.msra.gmra.mxu0 %v5394_v17  ;;  %5035 = vmatmul.mubr.f32.gmra.mxu1 %v263_v49 }
  0xf3   :  { %5005 = vmatprep.mubr.f32.mxu0 %v5407_v24  ;;  %5037 = vmatprep.mubr.f32.mxu1 %v273_v56 }
  0xf4   :  { %5053 = vmatpush3.msra.mxu0 %v5378_v6 }
  0xf6   :  { %5006 = vmatmul.mubr.f32.gmra.mxu0 %v5418_v31  ;;  %5038 = vmatmul.mubr.f32.gmra.mxu1 %v283_v63 }
  0xf7   :  { %5008 = vmatprep.mubr.f32.mxu0 %v5430_v38  ;;  %5040 = vmatprep.mubr.f32.mxu1 %v293_v8 }
  0xfa   :  { %5009 = vmatmul.mubr.f32.gmra.mxu0 %v5441_v45  ;;  %5041 = vmatmul.mubr.f32.gmra.mxu1 %v303_v20 }
  0xfb   :  { %5011 = vmatprep.mubr.f32.mxu0 %v5452_v52  ;;  %5043 = vmatprep.mubr.f32.mxu1 %v313_v33 }
  0xfe   :  { %5012 = vmatmul.mubr.f32.gmra.mxu0 %v5463_v59  ;;  %5044 = vmatmul.mubr.f32.gmra.mxu1 %v323_v46 }
  0xff   :  { %5014 = vmatprep.mubr.f32.mxu0 %v5474_v2  ;;  %5046 = vmatprep.mubr.f32.mxu1 %v333_v58 }
 0x102   :  { %5015 = vmatmul.mubr.f32.gmra.mxu0 %v5485_v13  ;;  %5047 = vmatmul.mubr.f32.gmra.mxu1 %v343_v7 }
 0x103   :  { %5017 = vmatprep.mubr.f32.mxu0 %v5496_v26  ;;  %5049 = vmatprep.mubr.f32.mxu1 %v353_v30 }
 0x106   :  { %5018 = vmatmul.mubr.f32.gmra.mxu0 %v5507_v39  ;;  %5050 = vmatmul.mubr.f32.gmra.mxu1 %v363_v44 }
 0x107   :  { %5020 = vmatprep.mubr.f32.mxu0 %v5518_v51  ;;  %5080 = vmatprep.mubr.f32.mxu1 %v5383_v11 }
 0x10a   :  { %5021 = vmatmul.mubr.f32.gmra.mxu0 %v342_v62  ;;  %5081 = vmatmul.mubr.f32.vlgmr.msra.gmra.mxu1 %v5390_v15 }
 0x10b   :  { %5023 = vmatprep.mubr.f32.mxu0 %v352_v18  ;;  %5083 = vmatprep.mubr.f32.mxu1 %v5403_v22 }
 0x10e   :  { %5024 = vmatmul.mubr.f32.gmra.mxu0 %v362_v40  ;;  %5084 = vmatmul.mubr.f32.gmra.mxu1 %v5415_v29 }
 0x10f   :  { %5054 = vmatprep.mubr.f32.mxu0 %v5383_v11  ;;  %5086 = vmatprep.mubr.f32.mxu1 %v5426_v36 }
 0x112   :  { %5055 = vmatmul.mubr.f32.vlgmr.msra.gmra.mxu0 %v5390_v15  ;;  %5087 = vmatmul.mubr.f32.gmra.mxu1 %v5438_v43 }
 0x113   :  { %5057 = vmatprep.mubr.f32.mxu0 %v5403_v22  ;;  %5089 = vmatprep.mubr.f32.mxu1 %v5449_v50 }
 0x116   :  { %5058 = vmatmul.mubr.f32.gmra.mxu0 %v5415_v29  ;;  %5090 = vmatmul.mubr.f32.gmra.mxu1 %v5460_v57 }
 0x117   :  { %5060 = vmatprep.mubr.f32.mxu0 %v5426_v36  ;;  %5092 = vmatprep.mubr.f32.mxu1 %v5471_v0 }
 0x11a   :  { %5061 = vmatmul.mubr.f32.gmra.mxu0 %v5438_v43  ;;  %5093 = vmatmul.mubr.f32.gmra.mxu1 %v5482_v9 }
 0x11b   :  { %5063 = vmatprep.mubr.f32.mxu0 %v5449_v50  ;;  %5095 = vmatprep.mubr.f32.mxu1 %v5493_v23 }
 0x11e   :  { %5064 = vmatmul.mubr.f32.gmra.mxu0 %v5460_v57  ;;  %5096 = vmatmul.mubr.f32.gmra.mxu1 %v5504_v34 }
 0x11f   :  { %5066 = vmatprep.mubr.f32.mxu0 %v5471_v0  ;;  %5098 = vmatprep.mubr.f32.mxu1 %v5515_v47 }
 0x122   :  { %5067 = vmatmul.mubr.f32.gmra.mxu0 %v5482_v9  ;;  %5099 = vmatmul.mubr.f32.gmra.mxu1 %v5524_v60 }
 0x123   :  { %5069 = vmatprep.mubr.f32.mxu0 %v5493_v23  ;;  %5101 = vmatprep.mubr.f32.mxu1 %v5530_v10 }
 0x126   :  { %5070 = vmatmul.mubr.f32.gmra.mxu0 %v5504_v34  ;;  %5102 = vmatmul.mubr.f32.gmra.mxu1 %v5535_v32 }
 0x127   :  { %5072 = vmatprep.mubr.f32.mxu0 %v5515_v47 }
 0x12a   :  { %5073 = vmatmul.mubr.f32.gmra.mxu0 %v5524_v60 }
 0x12b   :  { %5075 = vmatprep.mubr.f32.mxu0 %v5530_v10 }
 0x12e   :  { %5076 = vmatmul.mubr.f32.gmra.mxu0 %v5535_v32 }
 0x16e   :  { %v4978_v4 = vpop.f32.mrf.mxu1 }
 0x170   :  { %v443_v12 = vpop.f32.mrf.mxu1 }
 0x176   :  { %v4952_v6 = vpop.f32.mrf.mxu0  ;;  %v4981_v17 = vpop.f32.mrf.mxu1 }
 0x177   :  { %v450_v11 = vadd.f32 %v4978_v4, %v4952_v6 }
 0x178   :  { %v217_v15 = vpop.f32.mrf.mxu0  ;;  %v455_v24 = vpop.f32.mrf.mxu1 }
 0x179   :  { %v444_v16 = vadd.f32 %v443_v12, %v217_v15 }
 0x17e   :  { %v4955_v21 = vpop.f32.mrf.mxu0  ;;  %v4984_v31 = vpop.f32.mrf.mxu1 }
 0x17f   :  { %v462_v22 = vadd.f32 %v4981_v17, %v4955_v21 }
 0x180   :  { %v237_v28 = vpop.f32.mrf.mxu0  ;;  %v467_v38 = vpop.f32.mrf.mxu1 }
 0x181   :  { %v456_v29 = vadd.f32 %v455_v24, %v237_v28 }
 0x186   :  { %v4958_v35 = vpop.f32.mrf.mxu0  ;;  %v4987_v45 = vpop.f32.mrf.mxu1 }
 0x187   :  { %v474_v36 = vadd.f32 %v4984_v31, %v4958_v35 }
 0x188   :  { %v257_v42 = vpop.f32.mrf.mxu0  ;;  %v479_v52 = vpop.f32.mrf.mxu1 }
 0x189   :  { %v468_v43 = vadd.f32 %v467_v38, %v257_v42 }
 0x18e   :  { %v4961_v49 = vpop.f32.mrf.mxu0  ;;  %v4990_v59 = vpop.f32.mrf.mxu1 }
 0x18f   :  { %v486_v50 = vadd.f32 %v4987_v45, %v4961_v49 }
 0x190   :  { %v277_v56 = vpop.f32.mrf.mxu0  ;;  %v491_v2 = vpop.f32.mrf.mxu1 }
 0x191   :  { %v480_v57 = vadd.f32 %v479_v52, %v277_v56 }
 0x196   :  { %v4964_v63 = vpop.f32.mrf.mxu0  ;;  %v4993_v13 = vpop.f32.mrf.mxu1 }
 0x197   :  { %v498_v0 = vadd.f32 %v4990_v59, %v4964_v63 }
 0x198   :  { %v297_v8 = vpop.f32.mrf.mxu0  ;;  %v503_v20 = vpop.f32.mrf.mxu1 }
 0x199   :  { %v492_v9 = vadd.f32 %v491_v2, %v297_v8 }
 0x19e   :  { %v4967_v23 = vpop.f32.mrf.mxu0  ;;  %v4996_v33 = vpop.f32.mrf.mxu1 }
 0x19f   :  { %v510_v26 = vadd.f32 %v4993_v13, %v4967_v23 }
 0x1a0   :  { %v317_v34 = vpop.f32.mrf.mxu0  ;;  %v515_v46 = vpop.f32.mrf.mxu1 }
 0x1a1   :  { %v504_v39 = vadd.f32 %v503_v20, %v317_v34 }
 0x1a6   :  { %v4970_v47 = vpop.f32.mrf.mxu0  ;;  %v5608_v51 = vpop.f32.mrf.mxu1 }
 0x1a7   :  { %v522_v55 = vadd.f32 %v4996_v33, %v4970_v47 }
 0x1a8   :  { %v337_v58 = vpop.f32.mrf.mxu0  ;;  %v527_v60 = vpop.f32.mrf.mxu1 }
 0x1a9   :  { %v516_v61 = vadd.f32 %v515_v46, %v337_v58 }
 0x1aa   :  { %v5030_v62 = vpop.f32.mrf.mxu1 }
 0x1ac   :  { %v786_v1 = vpop.f32.mrf.mxu1 }
 0x1ae   :  { %v5610_v3 = vpop.f32.mrf.mxu0  ;;  %v5033_v5 = vpop.f32.mrf.mxu1 }
 0x1b0   :  { %v357_v7 = vpop.f32.mrf.mxu0  ;;  %v802_v10 = vpop.f32.mrf.mxu1 }
 0x1b1   :  { %v5612_v14 = vadd.f32 %v527_v60, %v357_v7 }
 0x1b2   :  { %v5004_v18 = vpop.f32.mrf.mxu0  ;;  %v5036_v19 = vpop.f32.mrf.mxu1 }
 0x1b3   :  { %v615_v25 = vadd.f32 %v5004_v18, %v450_v11 }
 0x1b4   :  { %v607_v27 = vpop.f32.mrf.mxu0  ;;  %v818_v30 = vpop.f32.mrf.mxu1 }
 0x1b5   :  { %v608_v32 = vadd.f32 %v607_v27, %v444_v16  ;;  %v795_v37 = vadd.f32 %v5030_v62, %v615_v25 }
 0x1b6   :  { %v5007_v40 = vpop.f32.mrf.mxu0  ;;  %v5039_v41 = vpop.f32.mrf.mxu1 }
 0x1b7   :  { %v629_v44 = vadd.f32 %v5007_v40, %v462_v22  ;;  %v787_v48 = vadd.f32 %v786_v1, %v608_v32 }
 0x1b8   :  { %v621_v53 = vpop.f32.mrf.mxu0  ;;  %v834_v54 = vpop.f32.mrf.mxu1 }
 0x1b9   :  { %v622_v4 = vadd.f32 %v621_v53, %v456_v29  ;;  %v811_v6 = vadd.f32 %v5033_v5, %v629_v44 }
 0x1ba   :  { %v5010_v12 = vpop.f32.mrf.mxu0  ;;  %v5042_v15 = vpop.f32.mrf.mxu1 }
 0x1bb   :  { %v643_v17 = vadd.f32 %v5010_v12, %v474_v36  ;;  %v803_v21 = vadd.f32 %v802_v10, %v622_v4 }
 0x1bc   :  { %v635_v24 = vpop.f32.mrf.mxu0  ;;  %v850_v28 = vpop.f32.mrf.mxu1 }
 0x1bd   :  { %v636_v31 = vadd.f32 %v635_v24, %v468_v43  ;;  %v827_v11 = vadd.f32 %v5036_v19, %v643_v17 }
 0x1be   :  { %v5013_v35 = vpop.f32.mrf.mxu0  ;;  %v5045_v38 = vpop.f32.mrf.mxu1 }
 0x1bf   :  { %v657_v16 = vadd.f32 %v5013_v35, %v486_v50  ;;  %v819_v42 = vadd.f32 %v818_v30, %v636_v31 }
 0x1c0   :  { %v649_v45 = vpop.f32.mrf.mxu0  ;;  %v866_v49 = vpop.f32.mrf.mxu1 }
 0x1c1   :  { %v650_v22 = vadd.f32 %v649_v45, %v480_v57  ;;  %v843_v52 = vadd.f32 %v5039_v41, %v657_v16 }
 0x1c2   :  { %v5016_v56 = vpop.f32.mrf.mxu0  ;;  %v5048_v59 = vpop.f32.mrf.mxu1 }
 0x1c3   :  { %v671_v29 = vadd.f32 %v5016_v56, %v498_v0  ;;  %v5614_v63 = vadd.f32 %v834_v54, %v650_v22 }
 0x1c4   :  { %v663_v2 = vpop.f32.mrf.mxu0  ;;  %v882_v36 = vpop.f32.mrf.mxu1 }
 0x1c5   :  { %v664_v8 = vadd.f32 %v663_v2, %v492_v9  ;;  %v5616_v13 = vadd.f32 %v5042_v15, %v671_v29 }
 0x1c6   :  { %v5019_v43 = vpop.f32.mrf.mxu0  ;;  %v5618_v20 = vpop.f32.mrf.mxu1 }
 0x1c7   :  { %v685_v23 = vadd.f32 %v5019_v43, %v510_v26  ;;  %v5620_v50 = vadd.f32 %v850_v28, %v664_v8 }
 0x1c8   :  { %v677_v33 = vpop.f32.mrf.mxu0  ;;  %v5622_v34 = vpop.f32.mrf.mxu1 }
 0x1c9   :  { %v678_v57 = vadd.f32 %v677_v33, %v504_v39  ;;  %v5624_v46 = vadd.f32 %v5045_v38, %v685_v23 }
 0x1ca   :  { %v5022_v0 = vpop.f32.mrf.mxu0  ;;  %v5082_v58 = vpop.f32.mrf.mxu1 }
 0x1cb   :  { %v699_v47 = vadd.f32 %v5022_v0, %v522_v55  ;;  %v5626_v60 = vadd.f32 %v866_v49, %v678_v57 }
 0x1cc   :  { %v691_v9 = vpop.f32.mrf.mxu0  ;;  %v1142_v26 = vpop.f32.mrf.mxu1 }
 0x1cd   :  { %v692_v62 = vadd.f32 %v691_v9, %v516_v61  ;;  %v5628_v1 = vadd.f32 %v5048_v59, %v699_v47 }
 0x1ce   :  { %v5630_v5 = vpop.f32.mrf.mxu0  ;;  %v5085_v39 = vpop.f32.mrf.mxu1 }
 0x1cf   :  { %v5632_v7 = vadd.f32 %v882_v36, %v692_v62 }
 0x1d0   :  { %v5634_v10 = vpop.f32.mrf.mxu0  ;;  %v1154_v32 = vpop.f32.mrf.mxu1 }
 0x1d2   :  { %v5056_v18 = vpop.f32.mrf.mxu0  ;;  %v5088_v4 = vpop.f32.mrf.mxu1 }
 0x1d3   :  { %v987_v19 = vadd.f32 %v5056_v18, %v795_v37 }
 0x1d4   :  { %v980_v25 = vpop.f32.mrf.mxu0 }
 0x1d5   :  { %v5636_v27 = vadd.f32 %v5082_v58, %v987_v19  ;;  %v981_v55 = vadd.f32 %v980_v25, %v787_v48  ;;  %v1166_v48 = vpop.f32.mrf.mxu1 }
 0x1d6   :  { %v5059_v30 = vpop.f32.mrf.mxu0 }
 0x1d7   :  { %7850 = vst [vmem:[#allocation15_spill] sm:$0xff] %v5636_v27  ;;  %v5638_v40 = vadd.f32 %v1142_v26, %v981_v55  ;;  %v999_v61 = vadd.f32 %v5059_v30, %v811_v6  ;;  %v1342_v6 = vand.u32 2139095040, %v5636_v27  ;;  %v5091_v49 = vpop.f32.mrf.mxu1 }
 0x1d8   :  { %v992_v41 = vpop.f32.mrf.mxu0 }
 0x1d9   :  { %7851 = vst [vmem:[#allocation16_spill] sm:$0xff] %v5638_v40  ;;  %v5640_v44 = vadd.f32 %v5085_v39, %v999_v61  ;;  %v993_v53 = vadd.f32 %v992_v41, %v803_v21  ;;  %v1343_v21 = vshrl.u32 %v1342_v6, 23  ;;  %v1239_v45 = vand.u32 2139095040, %v5638_v40  ;;  %v1178_v29 = vpop.f32.mrf.mxu1 }
 0x1da   :  { %v5062_v54 = vpop.f32.mrf.mxu0 }
 0x1db   :  { %7852 = vst [vmem:[#allocation17_spill] sm:$0xff] %v5640_v44  ;;  %v5642_v12 = vadd.f32 %v1154_v32, %v993_v53  ;;  %v1011_v15 = vadd.f32 %v5062_v54, %v827_v11  ;;  %v1548_v16 = vand.u32 2139095040, %v5640_v44  ;;  %v4722_v59 = vadd.s32 4294967169, %v1343_v21  ;;  %v5094_v57 = vpop.f32.mrf.mxu1 }
 0x1dc   :  { %v1004_v17 = vpop.f32.mrf.mxu0 }
 0x1dd   :  { %7853 = vst [vmem:[#allocation18_spill] sm:$0xff] %v5642_v12  ;;  %v5644_v37 = vadd.f32 %v5088_v4, %v1011_v15  ;;  %v1005_v24 = vadd.f32 %v1004_v17, %v819_v42  ;;  %v1549_v11 = vshrl.u32 %v1548_v16, 23  ;;  %v1240_v42 = vshrl.u32 %v1239_v45, 23  ;;  %v1190_v25 = vpop.f32.mrf.mxu1 }
 0x1de   :  { %v5065_v28 = vpop.f32.mrf.mxu0  ;;  %v1445_v36 = vand.u32 2139095040, %v5642_v12  ;;  %v1349_v23 = vadd.s32 1, %v4722_v59  ;;  %v534_v4 = vadd.f32 %v5608_v51, %v5610_v3 }
 0x1df   :  { %7854 = vst [vmem:[#allocation19_spill] sm:$0xff] %v5644_v37  ;;  %v5646_v31 = vadd.f32 %v1166_v48, %v1005_v24  ;;  %v1023_v35 = vadd.f32 %v5065_v28, %v843_v52  ;;  %v1754_v56 = vand.u32 2139095040, %v5644_v37  ;;  %v4730_v8 = vadd.s32 4294967169, %v1549_v11  ;;  %v5097_v17 = vpop.f32.mrf.mxu1 }
 0x1e0   :  { %v1016_v38 = vpop.f32.mrf.mxu0  ;;  %v4718_v33 = vadd.s32 4294967169, %v1240_v42  ;;  %v1446_v9 = vshrl.u32 %v1445_v36, 23  ;;  %vm1350_vm1 = vcmp.gt.s32.totalorder %v1349_v23, 0 }
 0x1e1   :  { %7855 = vst [vmem:[#allocation20_spill] sm:$0xff] %v5646_v31  ;;  %v5653_v52 = vadd.f32 %v5091_v49, %v1023_v35  ;;  %v1755_v43 = vshrl.u32 %v1754_v56, 23  ;;  %v1017_v0 = vadd.f32 %v1016_v38, %v5614_v63  ;;  %v1555_v62 = vadd.s32 1, %v4730_v8  ;;  %v1202_v49 = vpop.f32.mrf.mxu1 }
 0x1e2   :  { %v5068_v22 = vpop.f32.mrf.mxu0  ;;  %v1246_v19 = vadd.s32 1, %v4718_v33  ;;  %v4726_v61 = vadd.s32 4294967169, %v1446_v9  ;;  %v1351_v41 = vsel %vm1350_vm1, %v1349_v23, 0  ;;  %v713_v35 = vadd.f32 %v5630_v5, %v534_v4 }
 0x1e3   :  { %7856 = vst [vmem:[#allocation21_spill] sm:$0xff] %v5653_v52  ;;  %v1035_v47 = vadd.f32 %v5068_v22, %v5616_v13  ;;  %v4738_v26 = vadd.s32 4294967169, %v1755_v43  ;;  %v5657_v18 = vadd.f32 %v1178_v29, %v1017_v0  ;;  %v1960_v55 = vand.u32 2139095040, %v5653_v52  ;;  %v5100_v4 = vpop.f32.mrf.mxu1 }
 0x1e4   :  { %v1028_v2 = vpop.f32.mrf.mxu0  ;;  %vm1556_vm2 = vcmp.gt.s32.totalorder %v1555_v62, 0  ;;  %vm1247_vm3 = vcmp.gt.s32.totalorder %v1246_v19, 0  ;;  %v1452_v28 = vadd.s32 1, %v4726_v61  ;;  %v5673_v6 = vand.u32 31, %v1351_v41 }
 0x1e5   :  { %7857 = vst [vmem:[#allocation22_spill] sm:$0xff] %v5657_v18  ;;  %v5659_v39 = vadd.f32 %v5094_v57, %v1035_v47  ;;  %v1029_v30 = vadd.f32 %v1028_v2, %v5620_v50  ;;  %v1761_v63 = vadd.s32 1, %v4738_v26  ;;  %v1961_v15 = vshrl.u32 %v1960_v55, 23 }
 0x1e6   :  { %v5071_v58 = vpop.f32.mrf.mxu0  ;;  %v1557_v24 = vsel %vm1556_vm2, %v1555_v62, 0  ;;  %v1651_v50 = vand.u32 2139095040, %v5646_v31  ;;  %7860 = vst [vmem:[#allocation25_spill] sm:$0xff] %v5673_v6  ;;  %v1248_v51 = vsel %vm1247_vm3, %v1246_v19, 0  ;;  %v1857_v16 = vand.u32 2139095040, %v5657_v18 }
 0x1e7   :  { %7858 = vst [vmem:[#allocation23_spill] sm:$0xff] %v5659_v39  ;;  %v5663_v13 = vadd.f32 %v1190_v25, %v1029_v30  ;;  %v1047_v53 = vadd.f32 %v5071_v58, %v5624_v46  ;;  %vm1762_vm4 = vcmp.gt.s32.totalorder %v1761_v63, 0  ;;  %v706_v46 = vadd.f32 %v5634_v10, %v5612_v14 }
 0x1e8   :  { %v1040_v32 = vpop.f32.mrf.mxu0  ;;  %v5678_v3 = vand.u32 31, %v1557_v24  ;;  %v4746_v38 = vadd.s32 4294967169, %v1961_v15  ;;  %vm1453_vm5 = vcmp.gt.s32.totalorder %v1452_v28, 0  ;;  %v1763_v21 = vsel %vm1762_vm4, %v1761_v63, 0 }
 0x1e9   :  { %7859 = vst [vmem:[#allocation24_spill] sm:$0xff] %v5663_v13  ;;  %v1041_v54 = vadd.f32 %v1040_v32, %v5626_v60  ;;  %v5670_v48 = vadd.f32 %v5097_v17, %v1047_v53  ;;  %v1652_v45 = vshrl.u32 %v1651_v50, 23  ;;  %v2166_v5 = vand.u32 2139095040, %v5659_v39 }
 0x1ea   :  { %7861 = vst [vmem:[#allocation26_spill] sm:$0xff] %v5678_v3  ;;  %v5683_v22 = vsub.s32 32, %v5673_v6  ;;  %v5688_v14 = vadd.f32 %v5618_v20, %v713_v35  ;;  %v5690_v10 = vshrl.u32 %v1351_v41, 5  ;;  %v5692_v56 = vand.u32 31, %v1248_v51  ;;  %v5074_v57 = vpop.f32.mrf.mxu0 }
 0x1eb   :  { %v2372_v60 = vand.u32 2139095040, %v5670_v48  ;;  %v5685_v11 = vadd.f32 %v1202_v49, %v1041_v54  ;;  %v5695_v42 = vadd.f32 %v5622_v34, %v706_v46  ;;  %v1454_v29 = vsel %vm1453_vm5, %v1452_v28, 0 }
 0x1ec   :  { %7862 = vst [vmem:[#allocation27_spill] sm:$0xff] %v5683_v22  ;;  %7863 = vst [vmem:[#allocation28_spill] sm:$0xff] %v5690_v10  ;;  %v5697_v2 = vand.u32 31, %v1763_v21  ;;  %v1967_v36 = vadd.s32 1, %v4746_v38  ;;  %v1858_v8 = vshrl.u32 %v1857_v16, 23  ;;  %v5700_v43 = vsub.s32 32, %v5678_v3  ;;  %v1052_v17 = vpop.f32.mrf.mxu0 }
 0x1ed   :  { %7864 = vst [vmem:[#allocation29_spill] sm:$0xff] %v5692_v56  ;;  %v2373_v59 = vshrl.u32 %v2372_v60, 23  ;;  %v4734_v23 = vadd.s32 4294967169, %v1652_v45  ;;  %v2167_v33 = vshrl.u32 %v2166_v5, 23  ;;  %v2063_v20 = vand.u32 2139095040, %v5663_v13 }
 0x1ee   :  { %7865 = vst [vmem:[#allocation30_spill] sm:$0xff] %v5697_v2  ;;  %7866 = vst [vmem:[#allocation31_spill] sm:$0xff] %v5700_v43  ;;  %v7759_v0 = vmov 2102212464   ;;  %v7763_v58 = vmov 920167782  }
 0x1ef   :  { %v1365_v47 = vshll.u32 %v7759_v0, %v5673_v6  ;;  %v1366_v34 = vshrl.u32 %v7763_v58, %v5683_v22  ;;  %v5709_v9 = vshll.u32 %v7763_v58, %v5673_v6  ;;  %v5711_v62 = vshrl.u32 %v1248_v51, 5 }
 0x1f0   :  { %v7768_v26 = vmov 1326507024   ;;  %v5718_v25 = vsub.s32 32, %v5692_v56  ;;  %v5720_v55 = vand.u32 31, %v1454_v29  ;;  %v4762_v30 = vadd.s32 4294967169, %v2373_v59 }
 0x1f1   :  { %7867 = vst [vmem:[#allocation32_spill] sm:$0xff] %v5709_v9  ;;  %7868 = vst [vmem:[#allocation33_spill] sm:$0xff] %v5711_v62  ;;  %v5715_v19 = vshrl.u32 %v7768_v26, %v5683_v22  ;;  %v5724_v32 = vshll.u32 %v7759_v0, %v5692_v56  ;;  %v5727_v61 = vsub.s32 32, %v5697_v2  ;;  %vm1968_vm6 = vcmp.gt.s32.totalorder %v1967_v36, 0 }
 0x1f2   :  { %7870 = vst [vmem:[#allocation35_spill] sm:$0xff] %v5718_v25  ;;  %7871 = vst [vmem:[#allocation36_spill] sm:$0xff] %v5720_v55  ;;  %v4742_v63 = vadd.s32 4294967169, %v1858_v8  ;;  %v1572_v41 = vshrl.u32 %v7763_v58, %v5700_v43  ;;  %v1658_v53 = vadd.s32 1, %v4734_v23  ;;  %v4754_v54 = vadd.s32 4294967169, %v2167_v33  ;;  %v1214_v33 = vpop.f32.mrf.mxu1 }
 0x1f3   :  { %7869 = vst [vmem:[#allocation34_spill] sm:$0xff] %v5715_v19  ;;  %7872 = vst [vmem:[#allocation37_spill] sm:$0xff] %v5724_v32  ;;  %v2064_v15 = vshrl.u32 %v2063_v20, 23  ;;  %v5731_v28 = vor.u32 %v1366_v34, %v1365_v47  ;;  %v5735_v50 = vshll.u32 %v7763_v58, %v5692_v56  ;;  %v5737_v35 = vshrl.u32 %v1557_v24, 5  ;;  %v5077_v20 = vpop.f32.mrf.mxu0 }
 0x1f4   :  { %7873 = vst [vmem:[#allocation38_spill] sm:$0xff] %v5727_v61  ;;  %v1571_v46 = vshll.u32 %v7759_v0, %v5678_v3  ;;  %v5743_v60 = vshll.u32 %v7763_v58, %v5678_v3  ;;  %v5746_v51 = vsub.s32 32, %v5720_v55  ;;  %v1969_v38 = vsel %vm1968_vm6, %v1967_v36, 0 }
 0x1f5   :  { %7874 = vst [vmem:[#allocation39_spill] sm:$0xff] %v5731_v28  ;;  %7875 = vst [vmem:[#allocation40_spill] sm:$0xff] %v5735_v50  ;;  %v2379_v16 = vadd.s32 1, %v4762_v30  ;;  %v5750_v45 = vshrl.u32 %v7768_v26, %v5700_v43  ;;  %v5752_v49 = vshrl.u32 %v1454_v29, 5  ;;  %v1778_v24 = vshrl.u32 %v7763_v58, %v5727_v61  ;;  %v1064_v40 = vpop.f32.mrf.mxu0 }
 0x1f6   :  { %7876 = vst [vmem:[#allocation41_spill] sm:$0xff] %v5737_v35  ;;  %7877 = vst [vmem:[#allocation42_spill] sm:$0xff] %v5743_v60  ;;  %v1864_v5 = vadd.s32 1, %v4742_v63  ;;  %v5756_v59 = vor.u32 %v1572_v41, %v1571_v46  ;;  %vm1659_vm7 = vcmp.gt.s32.totalorder %v1658_v53, 0  ;;  %v2173_v8 = vadd.s32 1, %v4754_v54 }
 0x1f7   :  { %7878 = vst [vmem:[#allocation43_spill] sm:$0xff] %v5746_v51  ;;  %7879 = vst [vmem:[#allocation44_spill] sm:$0xff] %v5750_v45  ;;  %v4750_v23 = vadd.s32 4294967169, %v2064_v15  ;;  %v5758_v47 = vshrl.u32 %v1763_v21, 5  ;;  %v1777_v36 = vshll.u32 %v7759_v0, %v5697_v2  ;;  %v5762_v34 = vand.u32 31, %v1969_v38  ;;  %v5103_v0 = vpop.f32.mrf.mxu1 }
 0x1f8   :  { %7880 = vst [vmem:[#allocation45_spill] sm:$0xff] %v5752_v49  ;;  %7881 = vst [vmem:[#allocation46_spill] sm:$0xff] %v5756_v59  ;;  %v2269_v29 = vand.u32 2139095040, %v5685_v11  ;;  %v5767_v30 = vshrl.u32 %v7763_v58, %v5746_v51  ;;  %v5771_v63 = vshll.u32 %v7763_v58, %v5697_v2  ;;  %v5775_v41 = vshrl.u32 %v7768_v26, %v5727_v61 }
 0x1f9   :  { %7882 = vst [vmem:[#allocation47_spill] sm:$0xff] %v5758_v47  ;;  %7883 = vst [vmem:[#allocation48_spill] sm:$0xff] %v5762_v34  ;;  %vm2380_vm8 = vcmp.gt.s32.totalorder %v2379_v16, 0  ;;  %v5777_v21 = vor.u32 %v1778_v24, %v1777_v36  ;;  %v5779_v54 = vsel %vm1659_vm7, %v1658_v53, 0  ;;  %vm1865_vm9 = vcmp.gt.s32.totalorder %v1864_v5, 0 }
 0x1fa   :  { %7884 = vst [vmem:[#allocation49_spill] sm:$0xff] %v5767_v30  ;;  %7885 = vst [vmem:[#allocation50_spill] sm:$0xff] %v5771_v63  ;;  %v1059_v15 = vadd.f32 %v5074_v57, %v5628_v1  ;;  %vm2174_vm10 = vcmp.gt.s32.totalorder %v2173_v8, 0  ;;  %v2070_v46 = vadd.s32 1, %v4750_v23  ;;  %v1053_v56 = vadd.f32 %v1052_v17, %v5632_v7 }
 0x1fb   :  { %7886 = vst [vmem:[#allocation51_spill] sm:$0xff] %v5775_v41  ;;  %7887 = vst [vmem:[#allocation52_spill] sm:$0xff] %v5777_v21  ;;  %v1071_v58 = vadd.f32 %v5077_v20, %v5688_v14  ;;  %v5785_v62 = vsub.s32 32, %v5762_v34  ;;  %v2381_v26 = vsel %vm2380_vm8, %v2379_v16, 0  ;;  %v2270_v50 = vshrl.u32 %v2269_v29, 23  ;;  %v1226_v20 = vpop.f32.mrf.mxu1 }
 0x1fc   :  { %7888 = vst [vmem:[#allocation53_spill] sm:$0xff] %v5779_v54  ;;  %v5787_v24 = vadd.f32 %v5100_v4, %v1059_v15  ;;  %v5792_v1 = vand.u32 31, %v5779_v54  ;;  %v5794_v57 = vadd.f32 %v1214_v33, %v1053_v56  ;;  %v1866_v7 = vsel %vm1865_vm9, %v1864_v5, 0 }
 0x1fd   :  { %7889 = vst [vmem:[#allocation54_spill] sm:$0xff] %v5785_v62  ;;  %v5796_v23 = vadd.f32 %v5103_v0, %v1071_v58  ;;  %v2175_v14 = vsel %vm2174_vm10, %v2173_v8, 0  ;;  %v1065_v16 = vadd.f32 %v1064_v40, %v5695_v42  ;;  %vm2071_vm11 = vcmp.gt.s32.totalorder %v2070_v46, 0 }
 0x1fe   :  { %7890 = vst [vmem:[#allocation55_spill] sm:$0xff] %v5792_v1  ;;  %v2578_v17 = vand.u32 2139095040, %v5787_v24  ;;  %v5801_v4 = vand.u32 31, %v2381_v26  ;;  %v2475_v36 = vand.u32 2139095040, %v5794_v57  ;;  %v7891_v56 = vmov 920167782  }
 0x1ff   :  { %v2784_v29 = vand.u32 2139095040, %v5796_v23  ;;  %v1984_v33 = vshrl.u32 %v7891_v56, %v5785_v62  ;;  %v4758_v0 = vadd.s32 4294967169, %v2270_v50  ;;  %v5807_v15 = vadd.f32 %v1226_v20, %v1065_v16 }
 0x200   :  { %v2579_v58 = vshrl.u32 %v2578_v17, 23  ;;  %v5809_v5 = vshrl.u32 %v1969_v38, 5  ;;  %v7893_v8 = vmov 2102212464   ;;  %v5813_v42 = vand.u32 31, %v2175_v14 }
 0x201   :  { %v1983_v40 = vshll.u32 %v7893_v8, %v5762_v34  ;;  %v2785_v53 = vshrl.u32 %v2784_v29, 23  ;;  %v7895_v32 = vmov 1326507024   ;;  %v5819_v22 = vand.u32 31, %v1866_v7 }
 0x202   :  { %7892 = vst [vmem:[#allocation56_spill] sm:$0xff] %v5809_v5  ;;  %7894 = vst [vmem:[#allocation57_spill] sm:$0xff] %v5813_v42  ;;  %v5817_v6 = vshrl.u32 %v7895_v32, %v5785_v62  ;;  %v2072_v27 = vsel %vm2071_vm11, %v2070_v46, 0  ;;  %v2681_v50 = vand.u32 2139095040, %v5807_v15  ;;  %v5824_v17 = vshll.u32 %v7891_v56, %v5762_v34 }
 0x203   :  { %7897 = vst [vmem:[#allocation59_spill] sm:$0xff] %v5819_v22  ;;  %v5827_v38 = vsub.s32 32, %v5801_v4  ;;  %v2476_v16 = vshrl.u32 %v2475_v36, 23  ;;  %v4778_v20 = vadd.s32 4294967169, %v2785_v53  ;;  %v5829_v28 = vor.u32 %v1984_v33, %v1983_v40 }
 0x204   :  { %7896 = vst [vmem:[#allocation58_spill] sm:$0xff] %v5817_v6  ;;  %7898 = vst [vmem:[#allocation60_spill] sm:$0xff] %v5824_v17  ;;  %v5831_v29 = vshrl.u32 %v1866_v7, 5  ;;  %v2276_v25 = vadd.s32 1, %v4758_v0  ;;  %v4770_v10 = vadd.s32 4294967169, %v2579_v58  ;;  %v5834_v12 = vsub.s32 32, %v5813_v42 }
 0x205   :  { %7899 = vst [vmem:[#allocation61_spill] sm:$0xff] %v5829_v28  ;;  %v5836_v46 = vand.u32 31, %v2072_v27  ;;  %v2791_v3 = vadd.s32 1, %v4778_v20  ;;  %v2682_v43 = vshrl.u32 %v2681_v50, 23  ;;  %v5841_v49 = vsub.s32 32, %v5819_v22 }
 0x206   :  { %7900 = vst [vmem:[#allocation62_spill] sm:$0xff] %v5831_v29  ;;  %7901 = vst [vmem:[#allocation63_spill] sm:$0xff] %v5834_v12  ;;  %v5845_v53 = vshll.u32 %v7893_v8, %v5819_v22  ;;  %v5849_v7 = vshll.u32 %v7891_v56, %v5819_v22  ;;  %v2396_v36 = vshrl.u32 %v7891_v56, %v5827_v38  ;;  %v4766_v33 = vadd.s32 4294967169, %v2476_v16 }
 0x207   :  { %7902 = vst [vmem:[#allocation64_spill] sm:$0xff] %v5841_v49  ;;  %vm2792_vm12 = vcmp.gt.s32.totalorder %v2791_v3, 0  ;;  %v4774_v0 = vadd.s32 4294967169, %v2682_v43  ;;  %v2399_v58 = vshrl.u32 %v7895_v32, %v5827_v38  ;;  %vm2277_vm13 = vcmp.gt.s32.totalorder %v2276_v25, 0 }
 0x208   :  { %7903 = vst [vmem:[#allocation65_spill] sm:$0xff] %v5845_v53  ;;  %7904 = vst [vmem:[#allocation66_spill] sm:$0xff] %v5849_v7  ;;  %v2585_v40 = vadd.s32 1, %v4770_v10  ;;  %v5856_v20 = vshrl.u32 %v2175_v14, 5  ;;  %v2189_v59 = vshll.u32 %v7893_v8, %v5813_v42  ;;  %v2190_v35 = vshrl.u32 %v7891_v56, %v5834_v12 }
 0x209   :  { %v5863_v44 = vsub.s32 32, %v5836_v46  ;;  %v5865_v16 = vshrl.u32 %v2381_v26, 5  ;;  %v2395_v43 = vshll.u32 %v7893_v8, %v5801_v4  ;;  %v2398_v10 = vshll.u32 %v7891_v56, %v5801_v4 }
 0x20a   :  { %7905 = vst [vmem:[#allocation67_spill] sm:$0xff] %v5856_v20  ;;  %v2793_v50 = vsel %vm2792_vm12, %v2791_v3, 0  ;;  %v5873_v14 = vshll.u32 %v7891_v56, %v5813_v42  ;;  %v5875_v30 = vsel %vm2277_vm13, %v2276_v25, 0  ;;  %v2482_v19 = vadd.s32 1, %v4766_v33 }
 0x20b   :  { %7906 = vst [vmem:[#allocation68_spill] sm:$0xff] %v5863_v44  ;;  %v2688_v9 = vadd.s32 1, %v4774_v0  ;;  %v5877_v51 = vor.u32 %v2396_v36, %v2395_v43  ;;  %v2400_v45 = vor.u32 %v2399_v58, %v2398_v10  ;;  %vm2586_vm14 = vcmp.gt.s32.totalorder %v2585_v40, 0 }
 0x20c   :  { %7907 = vst [vmem:[#allocation69_spill] sm:$0xff] %v5873_v14  ;;  %v7908_v26 = vand.u32 2147483647, %v5796_v23  ;;  %v5881_v55 = vor.u32 %v2190_v35, %v2189_v59  ;;  %v5885_v3 = vshrl.u32 %v7895_v32, %v5834_v12  ;;  %v5887_v31 = vshrl.u32 %v2072_v27, 5 }
 0x20d   :  { %v2795_v2 = vand.u32 31, %v2793_v50  ;;  %v5891_v25 = vshrl.u32 %v7891_v56, %v5863_v44  ;;  %vm2404_vm15 = vcmp.lt.s32.totalorder %v5865_v16, 4  ;;  %v5895_v36 = vand.u32 31, %v5875_v30 }
 0x20e   :  { %v2788_v60 = vand.u32 8388607, %v7908_v26  ;;  %7909 = vst [vmem:[#allocation70_spill] sm:$0xff] %v5881_v55  ;;  %7910 = vst [vmem:[#allocation71_spill] sm:$0xff] %v5885_v3  ;;  %v2587_v35 = vsel %vm2586_vm14, %v2585_v40, 0  ;;  %vm2483_vm0 = vcmp.gt.s32.totalorder %v2482_v19, 0 }
 0x20f   :  { %7911 = vst [vmem:[#allocation72_spill] sm:$0xff] %v5887_v31  ;;  %7912 = vst [vmem:[#allocation73_spill] sm:$0xff] %v5891_v25  ;;  %v2796_v59 = vsub.s32 32, %v2795_v2  ;;  %vm2689_vm1 = vcmp.gt.s32.totalorder %v2688_v9, 0  ;;  %v5901_v27 = vsel %vm2404_vm15, %v5877_v51, 920167782  ;;  %v2807_v10 = vshll.u32 %v7893_v8, %v2795_v2 }
 0x210   :  { %v5905_v0 = vsel %vm2404_vm15, %v2400_v45, 1326507024  ;;  %v2794_v58 = vshrl.u32 %v2793_v50, 5  ;;  %v2789_v43 = vor.u32 8388608, %v2788_v60  ;;  %v2810_v40 = vshll.u32 %v7891_v56, %v2795_v2 }
 0x211   :  { %v2808_v26 = vshrl.u32 %v7891_v56, %v2796_v59  ;;  %v2811_v33 = vshrl.u32 %v7895_v32, %v2796_v59  ;;  %v5912_v61 = vsub.s32 32, %v5895_v36  ;;  %v5914_v37 = vshrl.u32 %v2587_v35, 5 }
 0x212   :  { %v5916_v63 = vsel %vm2483_vm0, %v2482_v19, 0  ;;  %v2690_v41 = vsel %vm2689_vm1, %v2688_v9, 0  ;;  %v5918_v45 = vand.u32 31, %v2587_v35  ;;  %v7823_v54 = vmov 683565275  }
 0x213   :  { %v2809_v50 = vor.u32 %v2808_v26, %v2807_v10  ;;  %v2812_v60 = vor.u32 %v2811_v33, %v2810_v40  ;;  %v2692_v21 = vand.u32 31, %v2690_v41  ;;  %v2798_v47 = vshll.u32 %v7823_v54, %v2795_v2 }
 0x214   :  { %v7819_v22 = vmov 2475754826   ;;  %v7825_v7 = vmov 2131351028   ;;  %vm2816_vm2 = vcmp.lt.s32.totalorder %v2794_v58, 4  ;;  %v5924_v19 = vshrl.u32 %v2690_v41, 5 }
 0x215   :  { %v2799_v18 = vshrl.u32 %v7819_v22, %v2796_v59  ;;  %v2801_v1 = vshll.u32 %v7819_v22, %v2795_v2  ;;  %v2802_v29 = vshrl.u32 %v7825_v7, %v2796_v59  ;;  %v2693_v9 = vsub.s32 32, %v2692_v21 }
 0x216   :  { %v2829_v35 = vshll.u32 %v2789_v43, 8  ;;  %v2826_v10 = vsel %vm2816_vm2, %v2812_v60, 1326507024  ;;  %v2797_v33 = vshrl.u32 %v7823_v54, %v2796_v59  ;;  %v2804_v22 = vshll.u32 %v7825_v7, %v2795_v2 }
 0x217   :  { %v2800_v26 = vor.u32 %v2799_v18, %v2798_v47  ;;  %v2803_v40 = vor.u32 %v2802_v29, %v2801_v1  ;;  %v2705_v34 = vshrl.u32 %v7891_v56, %v2693_v9  ;;  %v2708_v62 = vshrl.u32 %v7895_v32, %v2693_v9 }
 0x218   :  { %v2805_v52 = vshrl.u32 %v7893_v8, %v2796_v59  ;;  %v2822_v53 = vsel %vm2816_vm2, %v2809_v50, 920167782  ;;  %v2704_v41 = vshll.u32 %v7893_v8, %v2692_v21  ;;  %v2707_v43 = vshll.u32 %v7891_v56, %v2692_v21 }
 0x219   :  { %v7835_v60 = vand.u32 2147483647, %v5807_v15  ;;  %vm2713_vm3 = vcmp.lt.s32.totalorder %v5924_v19, 4  ;;  %vm2813_vm4 = vcmp.lt.s32.totalorder %v2794_v58, 1  ;;  %vm2815_vm5 = vcmp.lt.s32.totalorder %v2794_v58, 3 }
 0x21a   :  { %v2806_v18 = vor.u32 %v2805_v52, %v2804_v22  ;;  %v2706_v47 = vor.u32 %v2705_v34, %v2704_v41  ;;  %v2817_v1 = vsel %vm2813_vm4, %v2797_v33, %v2800_v26  ;;  %v2821_v29 = vsel %vm2813_vm4, %v2800_v26, %v2803_v40 }
 0x21b   :  { %v2827_v54 = vsel %vm2815_vm5, %v2809_v50, %v2826_v10  ;;  %v2709_v2 = vor.u32 %v2708_v62, %v2707_v43  ;;  %vm2814_vm6 = vcmp.lt.s32.totalorder %v2794_v58, 2  ;;  %v2685_v5 = vand.u32 8388607, %v7835_v60 }
 0x21c   :  { %v2818_v59 = vsel %vm2816_vm2, %v2806_v18, 2102212464  ;;  %v2823_v7 = vsel %vm2815_vm5, %v2806_v18, %v2822_v53  ;;  %v2825_v28 = vsel %vm2813_vm4, %v2803_v40, %v2806_v18  ;;  %v5945_v34 = vand.u32 31, %v5916_v63 }
 0x21d   :  { %v2819_v17 = vsel %vm2815_vm5, %v2803_v40, %v2818_v59  ;;  %v2824_v6 = vsel %vm2814_vm6, %v2821_v29, %v2823_v7  ;;  %v2828_v42 = vsel %vm2814_vm6, %v2825_v28, %v2827_v54  ;;  %v2719_v62 = vsel %vm2713_vm3, %v2706_v47, 920167782 }
 0x21e   :  { %v2820_v13 = vsel %vm2814_vm6, %v2817_v1, %v2819_v17  ;;  %v5940_v52 = vmul.u32.u64.low %v2829_v35, %v2824_v6  ;;  %v5941_v22 = vmul.u32.u64.high %v2829_v35, %v2824_v6, %v5940_v52  ;;  %v2723_v7 = vsel %vm2713_vm3, %v2709_v2, 1326507024 }
 0x21f   :  { %v5949_v58 = vmul.u32.u64.low %v2829_v35, %v2828_v42  ;;  %v5950_v53 = vmul.u32.u64.high %v2829_v35, %v2828_v42, %v5949_v58  ;;  %v2836_v50 = vmul.u32 %v2829_v35, %v2820_v13  ;;  %v7913_v10 = vmov 683565275  }
 0x220   :  { %v2695_v17 = vshll.u32 %v7913_v10, %v2692_v21  ;;  %v7914_v28 = vmov 2475754826   ;;  %v7915_v33 = vmov 2131351028   ;;  %v2702_v41 = vshrl.u32 %v7893_v8, %v2693_v9 }
 0x221   :  { %v2696_v54 = vshrl.u32 %v7914_v28, %v2693_v9  ;;  %v2698_v6 = vshll.u32 %v7914_v28, %v2692_v21  ;;  %v2699_v26 = vshrl.u32 %v7915_v33, %v2693_v9  ;;  %v2701_v40 = vshll.u32 %v7915_v33, %v2692_v21 }
 0x222   :  { %v2839_v43 = vadd.s32 1, %v5941_v22  ;;  %v2686_v42 = vor.u32 8388608, %v2685_v5  ;;  %v2694_v18 = vshrl.u32 %v7913_v10, %v2693_v9  ;;  %vm2838_vm7 = vc.u32 %v5950_v53, %v5940_v52 }
 0x223   :  { %v2697_v1 = vor.u32 %v2696_v54, %v2695_v17  ;;  %v2700_v13 = vor.u32 %v2699_v26, %v2698_v6  ;;  %v2703_v35 = vor.u32 %v2702_v41, %v2701_v40  ;;  %vm2712_vm8 = vcmp.lt.s32.totalorder %v5924_v19, 3 }
 0x224   :  { %v2840_v29 = vsel %vm2838_vm7, %v2839_v43, %v5941_v22  ;;  %vm2710_vm9 = vcmp.lt.s32.totalorder %v5924_v19, 1  ;;  %vm2711_vm10 = vcmp.lt.s32.totalorder %v5924_v19, 2  ;;  %v2724_v21 = vsel %vm2712_vm8, %v2706_v47, %v2723_v7 }
 0x225   :  { %v2841_v2 = vadd.s32 %v2840_v29, %v2836_v50  ;;  %v2715_v5 = vsel %vm2713_vm3, %v2703_v35, 2102212464  ;;  %v2718_v9 = vsel %vm2710_vm9, %v2697_v1, %v2700_v13  ;;  %v2720_v59 = vsel %vm2712_vm8, %v2703_v35, %v2719_v62 }
 0x226   :  { %v5971_v58 = vsub.s32 32, %v5918_v45  ;;  %v2721_v17 = vsel %vm2711_vm10, %v2718_v9, %v2720_v59  ;;  %v2722_v54 = vsel %vm2710_vm9, %v2700_v13, %v2703_v35  ;;  %v2726_v6 = vshll.u32 %v2686_v42, 8 }
 0x227   :  { %v2842_v22 = vadd.s32 536870912, %v2841_v2  ;;  %v2714_v26 = vsel %vm2710_vm9, %v2694_v18, %v2697_v1  ;;  %v2716_v40 = vsel %vm2712_vm8, %v2700_v13, %v2715_v5  ;;  %v2725_v47 = vsel %vm2711_vm10, %v2722_v54, %v2724_v21 }
 0x228   :  { %v5977_v7 = vmul.u32.u64.low %v2726_v6, %v2725_v47  ;;  %v5978_v50 = vmul.u32.u64.high %v2726_v6, %v2725_v47, %v5977_v7  ;;  %v5980_v41 = vmul.u32.u64.low %v2726_v6, %v2721_v17  ;;  %v5981_v43 = vmul.u32.u64.high %v2726_v6, %v2721_v17, %v5980_v41 }
 0x229   :  { %v5985_v62 = vshrl.u32 %v5875_v30, 5  ;;  %v5989_v35 = vshll.u32 %v7893_v8, %v5895_v36  ;;  %v5992_v42 = vsub.s32 32, %v5945_v34  ;;  %v2843_v18 = vshrl.u32 %v2842_v22, 30 }
 0x22a   :  { %v5996_v1 = vshrl.u32 %v7891_v56, %v5912_v61  ;;  %v6000_v13 = vshll.u32 %v7891_v56, %v5895_v36  ;;  %v2605_v30 = vshrl.u32 %v7895_v32, %v5971_v58  ;;  %v2717_v29 = vsel %vm2711_vm10, %v2714_v26, %v2716_v40 }
 0x22b   :  { %v6008_v21 = vshrl.u32 %v7895_v32, %v5912_v61  ;;  %v2601_v5 = vshll.u32 %v7893_v8, %v5918_v45  ;;  %v2604_v9 = vshll.u32 %v7891_v56, %v5918_v45  ;;  %v2844_v59 = vshll.u32 %v2843_v18, 30 }
 0x22c   :  { %v2602_v17 = vshrl.u32 %v7891_v56, %v5971_v58  ;;  %vm2610_vm11 = vcmp.lt.s32.totalorder %v5914_v37, 4  ;;  %vm2735_vm12 = vc.u32 %v5978_v50, %v5980_v41  ;;  %v2736_v19 = vadd.s32 1, %v5981_v43 }
 0x22d   :  { %v2499_v54 = vshrl.u32 %v7891_v56, %v5992_v42  ;;  %v6022_v22 = vsub.s32 %v2841_v2, %v2844_v59  ;;  %v2733_v26 = vmul.u32 %v2726_v6, %v2717_v29  ;;  %v2596_v40 = vshrl.u32 %v7915_v33, %v5971_v58 }
 0x22e   :  { %v2606_v47 = vor.u32 %v2605_v30, %v2604_v9  ;;  %v6028_v7 = vshrl.u32 %v7895_v32, %v5992_v42  ;;  %vm2783_vm13 = vcmp.lt.s32.totalorder %v5796_v23, 0  ;;  %v2737_v60 = vsel %vm2735_vm12, %v2736_v19, %v5981_v43 }
 0x22f   :  { %v2599_v12 = vshrl.u32 %v7893_v8, %v5971_v58  ;;  %v2847_v55 = vsub.s32 0, %v6022_v22  ;;  %v2738_v2 = vadd.s32 %v2737_v60, %v2733_v26  ;;  %v2595_v6 = vshll.u32 %v7914_v28, %v5918_v45 }
 0x230   :  { %v2598_v30 = vshll.u32 %v7915_v33, %v5918_v45  ;;  %v2603_v29 = vor.u32 %v2602_v17, %v2601_v5  ;;  %v2498_v9 = vshll.u32 %v7893_v8, %v5945_v34  ;;  %v2501_v59 = vshll.u32 %v7891_v56, %v5945_v34 }
 0x231   :  { %v2593_v43 = vshrl.u32 %v7914_v28, %v5971_v58  ;;  %v4779_v19 = vmin.u32 %v2847_v55, %v6022_v22  ;;  %v7916_v60 = vand.u32 2147483647, %v5787_v24  ;;  %v2597_v31 = vor.u32 %v2596_v40, %v2595_v6 }
 0x232   :  { %v2600_v20 = vor.u32 %v2599_v12, %v2598_v30  ;;  %v2620_v39 = vsel %vm2610_vm11, %v2606_v47, 1326507024  ;;  %v6051_v5 = vshrl.u32 %v5916_v63, 5  ;;  %v2739_v17 = vadd.s32 536870912, %v2738_v2 }
 0x233   :  { %v2582_v26 = vand.u32 8388607, %v7916_v60  ;;  %v2592_v25 = vshll.u32 %v7913_v10, %v5918_v45  ;;  %v6055_v56 = vor.u32 %v2499_v54, %v2498_v9  ;;  %v2503_v49 = vor.u32 %v6028_v7, %v2501_v59 }
 0x234   :  { %v2849_v55 = vclz %v4779_v19  ;;  %v2867_v32 = vsub.s32 4, %v2843_v18  ;;  %v7917_v60 = vand.u32 2147483647, %v5796_v23  ;;  %v6064_v40 = vshrl.u32 %v2739_v17, 30 }
 0x235   :  { %v2594_v63 = vor.u32 %v2593_v43, %v2592_v25  ;;  %vm2607_vm0 = vcmp.lt.s32.totalorder %v5914_v37, 1  ;;  %vm2609_vm1 = vcmp.lt.s32.totalorder %v5914_v37, 3  ;;  %v2583_v54 = vor.u32 8388608, %v2582_v26 }
 0x236   :  { %vm6060_vm14 = vcmp.le.f32.partialorder %v7917_v60, 0.7853982  ;;  %v4780_v45 = vadd.s32 4294967294, %v2849_v55  ;;  %v2619_v47 = vsel %vm2607_vm0, %v2597_v31, %v2600_v20  ;;  %v2621_v7 = vsel %vm2609_vm1, %v2603_v29, %v2620_v39 }
 0x237   :  { %v2616_v6 = vsel %vm2610_vm11, %v2603_v29, 920167782  ;;  %v2837_v30 = vadd.s32 %v5940_v52, %v5950_v53  ;;  %v2741_v25 = vshll.u32 %v6064_v40, 30  ;;  %v2591_v9 = vshrl.u32 %v7913_v10, %v5971_v58 }
 0x238   :  { %vm4781_vm2 = vcmp.lt.s32.totalorder %v4780_v45, 0  ;;  %v2868_v59 = vsel %vm2783_vm13, %v2867_v32, %v2843_v18  ;;  %vm2608_vm3 = vcmp.lt.s32.totalorder %v5914_v37, 2  ;;  %v2612_v39 = vsel %vm2610_vm11, %v2600_v20, 2102212464 }
 0x239   :  { %v2852_v43 = vsel %vm4781_vm2, 0, %v4780_v45  ;;  %v6084_v19 = vsub.s32 %v2738_v2, %v2741_v25  ;;  %v2615_v52 = vsel %vm2607_vm0, %v2594_v63, %v2597_v31  ;;  %v2622_v53 = vsel %vm2608_vm3, %v2619_v47, %v2621_v7 }
 0x23a   :  { %v2853_v29 = vsub.s32 32, %v2852_v43  ;;  %v2857_v58 = vsub.s32 4294967266, %v2852_v43  ;;  %v2617_v26 = vsel %vm2609_vm1, %v2600_v20, %v2616_v6  ;;  %v2623_v32 = vshll.u32 %v2583_v54, 8 }
 0x23b   :  { %v2854_v18 = vshll.u32 %v6022_v22, %v2852_v43  ;;  %v2744_v17 = vsub.s32 0, %v6084_v19  ;;  %v2611_v2 = vsel %vm2607_vm0, %v2591_v9, %v2594_v63  ;;  %v2613_v55 = vsel %vm2609_vm1, %v2597_v31, %v2612_v39 }
 0x23c   :  { %v2855_v60 = vshrl.u32 %v2837_v30, %v2853_v29  ;;  %v2858_v45 = vadd.s32 127, %v2857_v58  ;;  %v6098_v25 = vmul.u32.u64.low %v2623_v32, %v2622_v53  ;;  %v6099_v47 = vmul.u32.u64.high %v2623_v32, %v2622_v53, %v6098_v25 }
 0x23d   :  { %v6103_v7 = vor.u32 %v5996_v1, %v5989_v35  ;;  %v4775_v22 = vmin.u32 %v2744_v17, %v6084_v19  ;;  %v2618_v63 = vsel %vm2608_vm3, %v2615_v52, %v2617_v26  ;;  %vm2507_vm4 = vcmp.lt.s32.totalorder %v6051_v5, 4 }
 0x23e   :  { %v2856_v31 = vor.u32 %v2855_v60, %v2854_v18  ;;  %v2859_v54 = vshll.u32 %v2858_v45, 23  ;;  %v6113_v6 = vsel %vm6060_vm14, 0, %v2868_v59  ;;  %v2513_v35 = vsel %vm2507_vm4, %v6055_v56, 920167782 }
 0x23f   :  { %v2746_v1 = vclz %v4775_v22  ;;  %v2614_v30 = vsel %vm2608_vm3, %v2611_v2, %v2613_v55  ;;  %v7846_v9 = vand.u32 2147483647, %v5794_v57  ;;  %v2517_v39 = vsel %vm2507_vm4, %v2503_v49, 1326507024 }
 0x240   :  { %v2860_v43 = vor.u32 4788187, %v2859_v54  ;;  %v6123_v52 = vmul.u32.u64.low %v2623_v32, %v2618_v63  ;;  %v6124_v53 = vmul.u32.u64.high %v2623_v32, %v2618_v63, %v6123_v52  ;;  %v6128_v59 = vadd.s32 3, %v6113_v6 }
 0x241   :  { %vm2680_vm5 = vcmp.lt.s32.totalorder %v5807_v15, 0  ;;  %v2734_v29 = vadd.s32 %v5980_v41, %v5978_v50  ;;  %v4776_v37 = vadd.s32 4294967294, %v2746_v1  ;;  %v2863_v26 = vcvt.s32.f32 %v2856_v31 }
 0x242   :  { %v2861_v58 = vand.u32 2147483647, %v2860_v43  ;;  %v2764_v18 = vsub.s32 4, %v6064_v40  ;;  %v2630_v17 = vmul.u32 %v2623_v32, %v2614_v30  ;;  %vm2632_vm7 = vc.u32 %v6099_v47, %v6123_v52 }
 0x243   :  { %vm4777_vm6 = vcmp.lt.s32.totalorder %v4776_v37, 0  ;;  %v2479_v49 = vand.u32 8388607, %v7846_v9  ;;  %v2490_v2 = vshrl.u32 %v7914_v28, %v5992_v42  ;;  %v2633_v50 = vadd.s32 1, %v6124_v53 }
 0x244   :  { %v2864_v55 = vmul.f32 %v2863_v26, %v2861_v58  ;;  %v2749_v60 = vsel %vm4777_vm6, 0, %v4776_v37  ;;  %v2493_v41 = vshrl.u32 %v7915_v33, %v5992_v42  ;;  %v2489_v32 = vshll.u32 %v7913_v10, %v5945_v34 }
 0x245   :  { %v2750_v45 = vsub.s32 32, %v2749_v60  ;;  %v2754_v25 = vsub.s32 4294967266, %v2749_v60  ;;  %v2492_v22 = vshll.u32 %v7914_v28, %v5945_v34  ;;  %v2634_v31 = vsel %vm2632_vm7, %v2633_v50, %v6124_v53 }
 0x246   :  { %v2865_v63 = vxor.u32 2147483648, %v2864_v55  ;;  %v2495_v54 = vshll.u32 %v7915_v33, %v5945_v34  ;;  %v2496_v1 = vshrl.u32 %v7893_v8, %v5992_v42  ;;  %v7920_v30 = vand.u32 2147483647, %v5807_v15 }
 0x247   :  { %v2751_v37 = vshll.u32 %v6084_v19, %v2749_v60  ;;  %v2752_v58 = vshrl.u32 %v2734_v29, %v2750_v45  ;;  %v2755_v26 = vadd.s32 127, %v2754_v25  ;;  %v2635_v9 = vadd.s32 %v2634_v31, %v2630_v17 }
 0x248   :  { %vm6154_vm8 = vcmp.le.f32.partialorder %v7920_v30, 0.7853982  ;;  %v2866_v53 = vsel %vm2783_vm13, %v2865_v63, %v2864_v55  ;;  %v2491_v50 = vor.u32 %v2490_v2, %v2489_v32  ;;  %v2494_v20 = vor.u32 %v2493_v41, %v2492_v22 }
 0x249   :  { %v2497_v34 = vor.u32 %v2496_v1, %v2495_v54  ;;  %vm2301_vm9 = vcmp.lt.s32.totalorder %v5985_v62, 4  ;;  %v2869_v30 = vsel %vm6060_vm14, %v5796_v23, %v2866_v53  ;;  %v2753_v44 = vor.u32 %v2752_v58, %v2751_v37 }
 0x24a   :  { %v2756_v3 = vshll.u32 %v2755_v26, 23  ;;  %v2636_v14 = vadd.s32 536870912, %v2635_v9  ;;  %5179 = vcosq.f32 %v2869_v30  ;;  %v2765_v19 = vsel %vm2680_vm5, %v2764_v18, %v6064_v40 }
 0x24b   :  { %v2480_v29 = vor.u32 8388608, %v2479_v49  ;;  %vm2504_vm10 = vcmp.lt.s32.totalorder %v6051_v5, 1  ;;  %5181 = vsinq.f32 %v2869_v30  ;;  %vm2506_vm11 = vcmp.lt.s32.totalorder %v6051_v5, 3 }
 0x24c   :  { %v2757_v17 = vor.u32 4788187, %v2756_v3  ;;  %v6169_v2 = vshrl.u32 %v2636_v14, 30  ;;  %v2512_v12 = vsel %vm2504_vm10, %v2491_v50, %v2494_v20  ;;  %v2514_v55 = vsel %vm2506_vm11, %v2497_v34, %v2513_v35 }
 0x24d   :  { %v2516_v60 = vsel %vm2504_vm10, %v2494_v20, %v2497_v34  ;;  %v2518_v40 = vsel %vm2506_vm11, %v6055_v56, %v2517_v39  ;;  %v2760_v49 = vcvt.s32.f32 %v2753_v44  ;;  %vm2505_vm12 = vcmp.lt.s32.totalorder %v6051_v5, 2 }
 0x24e   :  { %v2758_v18 = vand.u32 2147483647, %v2757_v17  ;;  %v2638_v14 = vshll.u32 %v6169_v2, 30  ;;  %v6184_v3 = vand.u32 3, %v6113_v6  ;;  %v2509_v41 = vsel %vm2507_vm4, %v2497_v34, 2102212464 }
 0x24f   :  { %v2519_v35 = vsel %vm2505_vm12, %v2516_v60, %v2518_v40  ;;  %v2520_v45 = vshll.u32 %v2480_v29, 8  ;;  %v2488_v44 = vshrl.u32 %v7913_v10, %v5992_v42  ;;  %v2515_v56 = vsel %vm2505_vm12, %v2512_v12, %v2514_v55 }
 0x250   :  { %v2761_v25 = vmul.f32 %v2760_v49, %v2758_v18  ;;  %v6190_v32 = vsub.s32 %v2635_v9, %v2638_v14  ;;  %v4554_v39 = vand.u32 3, %v6128_v59  ;;  %v2767_v6 = vsel %vm6154_vm8, 0, %v2765_v19 }
 0x251   :  { %v6199_v22 = vmul.u32.u64.low %v2520_v45, %v2519_v35  ;;  %v6200_v63 = vmul.u32.u64.high %v2520_v45, %v2519_v35, %v6199_v22  ;;  %v2508_v9 = vsel %vm2504_vm10, %v2488_v44, %v2491_v50  ;;  %v2510_v42 = vsel %vm2506_vm11, %v2494_v20, %v2509_v41 }
 0x252   :  { %v2762_v31 = vxor.u32 2147483648, %v2761_v25  ;;  %v2641_v54 = vsub.s32 0, %v6190_v32  ;;  %v6210_v1 = vsel %vm2301_vm9, %v6103_v7, 920167782  ;;  %v7923_v59 = vor.u32 %v6008_v21, %v6000_v13 }
 0x253   :  { %v6219_v58 = vmul.u32.u64.low %v2520_v45, %v2515_v56  ;;  %v6220_v26 = vmul.u32.u64.high %v2520_v45, %v2515_v56, %v6219_v58  ;;  %vm2875_vm13 = vcmp.lt.s32.totalorder %v6184_v3, 2  ;;  %vm2577_vm14 = vcmp.lt.s32.totalorder %v5787_v24, 0 }
 0x254   :  { %v6217_v37 = vsel %vm2301_vm9, %v7923_v59, 1326507024  ;;  %v2763_v20 = vsel %vm2680_vm5, %v2762_v31, %v2761_v25  ;;  %v4771_v53 = vmin.u32 %v2641_v54, %v6190_v32  ;;  %vm2873_vm0 = vweird.f32 %v5796_v23 }
 0x255   :  { %vm2876_vm1 = vcmp.eq.s32.totalorder %v6184_v3, 0  ;;  %v2766_v13 = vsel %vm6154_vm8, %v5807_v15, %v2763_v20  ;;  %v4449_v21 = vadd.s32 3, %v2767_v6  ;;  %v7924_v50 = vand.u32 2147483647, %v5787_v24 }
 0x256   :  { %v2511_v30 = vsel %vm2505_vm12, %v2508_v9, %v2510_v42  ;;  %vm4555_vm3 = vcmp.lt.s32.totalorder %v4554_v39, 2  ;;  %vm2879_vm4 = vcmp.eq.s32.totalorder %v6184_v3, 2  ;;  %5183 = vcosq.f32 %v2766_v13 }
 0x257   :  { %vm6235_vm2 = vcmp.le.f32.partialorder %v7924_v50, 0.7853982  ;;  %v2643_v19 = vclz %v4771_v53  ;;  %5185 = vsinq.f32 %v2766_v13  ;;  %v2661_v29 = vsub.s32 4, %v6169_v2  ;;  %v5180_v17 = vpop.eup %5179 }
 0x258   :  { %vm2529_vm5 = vc.u32 %v6200_v63, %v6219_v58  ;;  %v2530_v43 = vadd.s32 1, %v6220_v26  ;;  %vm4556_vm6 = vcmp.eq.s32.totalorder %v4554_v39, 0  ;;  %vm4559_vm7 = vcmp.eq.s32.totalorder %v4554_v39, 2  ;;  %v5182_v5 = vpop.eup %5181 }
 0x259   :  { %v4772_v12 = vadd.s32 4294967294, %v2643_v19  ;;  %v2527_v55 = vmul.u32 %v2520_v45, %v2511_v30  ;;  %v2880_v60 = vxor.u32 2147483648, %v5180_v17  ;;  %v6246_v40 = vand.u32 3, %v4449_v21 }
 0x25a   :  { %v6248_v18 = vand.u32 3, %v2767_v6  ;;  %v2531_v49 = vsel %vm2529_vm5, %v2530_v43, %v6220_v26  ;;  %v2877_v14 = vxor.u32 2147483648, %v5182_v5  ;;  %v2369_v35 = vand.u32 2147483647, %v5670_v48 }
 0x25b   :  { %vm4773_vm8 = vcmp.lt.s32.totalorder %v4772_v12, 0  ;;  %v2532_v41 = vadd.s32 %v2531_v49, %v2527_v55  ;;  %v4561_v25 = vsel %vm4559_vm7, %v2880_v60, %v5182_v5  ;;  %v2881_v44 = vsel %vm2879_vm4, %v2880_v60, %v5182_v5 }
 0x25c   :  { %v2646_v56 = vsel %vm4773_vm8, 0, %v4772_v12  ;;  %v2662_v45 = vsel %vm2577_vm14, %v2661_v29, %v6169_v2  ;;  %v4558_v22 = vsel %vm4556_vm6, %v5180_v17, %v2877_v14  ;;  %v2878_v6 = vsel %vm2876_vm1, %v5180_v17, %v2877_v14 }
 0x25d   :  { %v2631_v31 = vadd.s32 %v6123_v52, %v6099_v47  ;;  %v2647_v54 = vsub.s32 32, %v2646_v56  ;;  %v4562_v9 = vsel %vm4555_vm3, %v4558_v22, %v4561_v25  ;;  %v2882_v42 = vsel %vm2875_vm13, %v2878_v6, %v2881_v44 }
 0x25e   :  { %vm2776_vm10 = vcmp.eq.s32.totalorder %v6248_v18, 2  ;;  %v2651_v59 = vsub.s32 4294967266, %v2646_v56  ;;  %v2533_v26 = vadd.s32 536870912, %v2532_v41  ;;  %v4563_v2 = vsel %vm2873_vm0, nan, %v4562_v9 }
 0x25f   :  { %v2883_v20 = vsel %vm2873_vm0, nan, %v2882_v42  ;;  %vm2773_vm11 = vcmp.eq.s32.totalorder %v6248_v18, 0  ;;  %v2649_v53 = vshrl.u32 %v2631_v31, %v2647_v54  ;;  %v2664_v47 = vsel %vm6235_vm2, 0, %v2662_v45  ;;  %4627 = vmatprep.subr.mxu0 %v4563_v2 }
 0x260   :  { %vm4451_vm12 = vcmp.lt.s32.totalorder %v6246_v40, 2  ;;  %vm2772_vm13 = vcmp.lt.s32.totalorder %v6248_v18, 2  ;;  %v2648_v52 = vshll.u32 %v6190_v32, %v2646_v56  ;;  %v2652_v3 = vadd.s32 127, %v2651_v59  ;;  %4628 = vmatpush1.msra.mxu0 %v2883_v20 }
 0x261   :  { %v6276_v39 = vshrl.u32 %v2533_v26, 30  ;;  %v2376_v23 = vand.u32 8388607, %v2369_v35  ;;  %vm2770_vm0 = vweird.f32 %v5807_v15  ;;  %vm4452_vm1 = vcmp.eq.s32.totalorder %v6246_v40, 0 }
 0x262   :  { %v2387_v13 = vshrl.u32 %v7914_v28, %v5827_v38  ;;  %v2390_v21 = vshrl.u32 %v7915_v33, %v5827_v38  ;;  %v2393_v32 = vshrl.u32 %v7893_v8, %v5827_v38  ;;  %vm4455_vm3 = vcmp.eq.s32.totalorder %v6246_v40, 2 }
 0x263   :  { %v2650_v50 = vor.u32 %v2649_v53, %v2648_v52  ;;  %v2653_v30 = vshll.u32 %v2652_v3, 23  ;;  %v2535_v19 = vshll.u32 %v6276_v39, 30  ;;  %v4345_v29 = vadd.s32 3, %v2664_v47  ;;  %v5184_v55 = vpop.eup %5183 }
 0x264   :  { %v2386_v43 = vshll.u32 %v7913_v10, %v5801_v4  ;;  %v2389_v17 = vshll.u32 %v7914_v28, %v5801_v4  ;;  %v2392_v12 = vshll.u32 %v7915_v33, %v5801_v4  ;;  %v6296_v60 = vand.u32 3, %v2664_v47  ;;  %v5186_v25 = vpop.eup %5185 }
 0x265   :  { %v2654_v5 = vor.u32 4788187, %v2653_v30  ;;  %v6298_v49 = vsub.s32 %v2532_v41, %v2535_v19  ;;  %v2377_v14 = vor.u32 8388608, %v2376_v23  ;;  %v2777_v44 = vxor.u32 2147483648, %v5184_v55 }
 0x266   :  { %v2388_v56 = vor.u32 %v2387_v13, %v2386_v43  ;;  %v2391_v45 = vor.u32 %v2390_v21, %v2389_v17  ;;  %v2394_v22 = vor.u32 %v2393_v32, %v2392_v12  ;;  %v2774_v6 = vxor.u32 2147483648, %v5186_v25 }
 0x267   :  { %v2655_v31 = vand.u32 2147483647, %v2654_v5  ;;  %v2657_v54 = vcvt.s32.f32 %v2650_v50  ;;  %v2538_v9 = vsub.s32 0, %v6298_v49  ;;  %v4457_v4 = vsel %vm4455_vm3, %v2777_v44, %v5186_v25 }
 0x268   :  { %v2778_v42 = vsel %vm2776_vm10, %v2777_v44, %v5186_v25  ;;  %vm2401_vm4 = vcmp.lt.s32.totalorder %v5865_v16, 1  ;;  %vm2403_vm5 = vcmp.lt.s32.totalorder %v5865_v16, 3  ;;  %v4454_v41 = vsel %vm4452_vm1, %v5184_v55, %v2774_v6 }
 0x269   :  { %v2775_v59 = vsel %vm2773_vm11, %v5184_v55, %v2774_v6  ;;  %v2658_v26 = vmul.f32 %v2657_v54, %v2655_v31  ;;  %vm2474_vm6 = vcmp.lt.s32.totalorder %v5794_v57, 0  ;;  %v4767_v2 = vmin.u32 %v2538_v9, %v6298_v49 }
 0x26a   :  { %v4458_v20 = vsel %vm4451_vm12, %v4454_v41, %v4457_v4  ;;  %v2779_v53 = vsel %vm2772_vm13, %v2775_v59, %v2778_v42  ;;  %v2409_v47 = vsel %vm2401_vm4, %v2388_v56, %v2391_v45  ;;  %v2411_v52 = vsel %vm2403_vm5, %v2394_v22, %v5901_v27 }
 0x26b   :  { %v4459_v3 = vsel %vm2770_vm0, nan, %v4458_v20  ;;  %v2780_v23 = vsel %vm2770_vm0, nan, %v2779_v53  ;;  %v2659_v13 = vxor.u32 2147483648, %v2658_v26  ;;  %v2540_v21 = vclz %v4767_v2 }
 0x26c   :  { %4629 = vmatprep.subr.mxu0 %v4459_v3  ;;  %v2528_v40 = vadd.s32 %v6219_v58, %v6200_v63  ;;  %v2385_v18 = vshrl.u32 %v7913_v10, %v5827_v38  ;;  %vm2402_vm7 = vcmp.lt.s32.totalorder %v5865_v16, 2  ;;  %v2415_v27 = vsel %vm2403_vm5, %v5877_v51, %v5905_v0 }
 0x26d   :  { %4630 = vmatpush1.msra.mxu0 %v2780_v23  ;;  %v2660_v15 = vsel %vm2577_vm14, %v2659_v13, %v2658_v26  ;;  %v4768_v32 = vadd.s32 4294967294, %v2540_v21  ;;  %v2558_v50 = vsub.s32 4, %v6276_v39  ;;  %v2406_v63 = vsel %vm2404_vm15, %v2394_v22, 2102212464 }
 0x26e   :  { %v2663_v38 = vsel %vm6235_vm2, %v5787_v24, %v2660_v15  ;;  %v2412_v58 = vsel %vm2402_vm7, %v2409_v47, %v2411_v52  ;;  %v2413_v51 = vsel %vm2401_vm4, %v2391_v45, %v2394_v22  ;;  %v2417_v0 = vshll.u32 %v2377_v14, 8 }
 0x26f   :  { %5187 = vcosq.f32 %v2663_v38  ;;  %vm4769_vm8 = vcmp.lt.s32.totalorder %v4768_v32, 0  ;;  %v2416_v30 = vsel %vm2402_vm7, %v2413_v51, %v2415_v27  ;;  %v2266_v19 = vand.u32 2147483647, %v5685_v11 }
 0x270   :  { %5189 = vsinq.f32 %v2663_v38  ;;  %v2543_v43 = vsel %vm4769_vm8, 0, %v4768_v32  ;;  %v6350_v17 = vmul.u32.u64.low %v2417_v0, %v2416_v30  ;;  %v6351_v12 = vmul.u32.u64.high %v2417_v0, %v2416_v30, %v6350_v17 }
 0x271   :  { %v2544_v34 = vsub.s32 32, %v2543_v43  ;;  %v2548_v55 = vsub.s32 4294967266, %v2543_v43  ;;  %v2405_v5 = vsel %vm2401_vm4, %v2385_v18, %v2388_v56  ;;  %v2407_v14 = vsel %vm2403_vm5, %v2391_v45, %v2406_v63 }
 0x272   :  { %v6357_v25 = vand.u32 3, %v4345_v29  ;;  %v2559_v44 = vsel %vm2474_vm6, %v2558_v50, %v6276_v39  ;;  %v6362_v22 = vmul.u32.u64.low %v2417_v0, %v2412_v58  ;;  %v6363_v6 = vmul.u32.u64.high %v2417_v0, %v2412_v58, %v6362_v22 }
 0x273   :  { %v7927_v31 = vand.u32 2147483647, %v5794_v57  ;;  %v2545_v56 = vshll.u32 %v6298_v49, %v2543_v43  ;;  %v2546_v9 = vshrl.u32 %v2528_v40, %v2544_v34  ;;  %v2549_v45 = vadd.s32 127, %v2548_v55 }
 0x274   :  { %v2408_v29 = vsel %vm2402_vm7, %v2405_v5, %v2407_v14  ;;  %v2273_v39 = vand.u32 8388607, %v2266_v19  ;;  %v2283_v4 = vshll.u32 %v7913_v10, %v5895_v36  ;;  %v2284_v42 = vshrl.u32 %v7914_v28, %v5912_v61 }
 0x275   :  { %vm6368_vm15 = vcmp.le.f32.partialorder %v7927_v31, 0.7853982  ;;  %v2547_v41 = vor.u32 %v2546_v9, %v2545_v56  ;;  %v2550_v59 = vshll.u32 %v2549_v45, 23  ;;  %vm2426_vm14 = vc.u32 %v6351_v12, %v6362_v22 }
 0x276   :  { %v6383_v26 = vsel %vm6368_vm15, 0, %v2559_v44  ;;  %vm4351_vm2 = vcmp.eq.s32.totalorder %v6357_v25, 2  ;;  %vm2673_vm10 = vcmp.eq.s32.totalorder %v6296_v60, 2  ;;  %v2427_v16 = vadd.s32 1, %v6363_v6 }
 0x277   :  { %v2285_v49 = vor.u32 %v2284_v42, %v2283_v4  ;;  %v2286_v2 = vshll.u32 %v7914_v28, %v5895_v36  ;;  %v2287_v20 = vshrl.u32 %v7915_v33, %v5912_v61  ;;  %vm4348_vm11 = vcmp.eq.s32.totalorder %v6357_v25, 0 }
 0x278   :  { %vm2670_vm12 = vcmp.eq.s32.totalorder %v6296_v60, 0  ;;  %v2551_v53 = vor.u32 4788187, %v2550_v59  ;;  %v2424_v47 = vmul.u32 %v2417_v0, %v2408_v29  ;;  %v2289_v52 = vshll.u32 %v7915_v33, %v5895_v36 }
 0x279   :  { %v2290_v3 = vshrl.u32 %v7893_v8, %v5912_v61  ;;  %vm4347_vm13 = vcmp.lt.s32.totalorder %v6357_v25, 2  ;;  %vm2669_vm0 = vcmp.lt.s32.totalorder %v6296_v60, 2  ;;  %v2554_v23 = vcvt.s32.f32 %v2547_v41 }
 0x27a   :  { %v2428_v13 = vsel %vm2426_vm14, %v2427_v16, %v6363_v6  ;;  %v2274_v21 = vor.u32 8388608, %v2273_v39  ;;  %v2288_v40 = vor.u32 %v2287_v20, %v2286_v2  ;;  %vm2667_vm1 = vweird.f32 %v5787_v24  ;;  %v7934_v24 = vld [vmem:[#allocation64_spill] sm:$0xff] }
 0x27b   :  { %v2552_v18 = vand.u32 2147483647, %v2551_v53  ;;  %v2429_v27 = vadd.s32 %v2428_v13, %v2424_v47  ;;  %v2291_v36 = vor.u32 %v2290_v3, %v2289_v52  ;;  %vm2298_vm3 = vcmp.lt.s32.totalorder %v5985_v62, 1  ;;  %v7930_v53 = vld [vmem:[#allocation69_spill] sm:$0xff]  ;;  %v7931_v47 = vld [vmem:[#allocation71_spill] sm:$0xff]  ;;  %v7932_v3 = vld [vmem:[#allocation68_spill] sm:$0xff] }
 0x27c   :  { %v2282_v15 = vshrl.u32 %v7913_v10, %v5912_v61  ;;  %vm2299_vm4 = vcmp.lt.s32.totalorder %v5985_v62, 2  ;;  %vm2300_vm5 = vcmp.lt.s32.totalorder %v5985_v62, 3  ;;  %v2306_v32 = vsel %vm2298_vm3, %v2285_v49, %v2288_v40  ;;  %v5188_v51 = vpop.eup %5187 }
 0x27d   :  { %v2555_v50 = vmul.f32 %v2554_v23, %v2552_v18  ;;  %v2430_v63 = vadd.s32 536870912, %v2429_v27  ;;  %v2303_v38 = vsel %vm2301_vm9, %v2291_v36, 2102212464  ;;  %v2308_v58 = vsel %vm2300_vm5, %v2291_v36, %v6210_v1  ;;  %v5190_v17 = vpop.eup %5189 }
 0x27e   :  { %v2302_v61 = vsel %vm2298_vm3, %v2282_v15, %v2285_v49  ;;  %v2309_v0 = vsel %vm2299_vm4, %v2306_v32, %v2308_v58  ;;  %v2312_v30 = vsel %vm2300_vm5, %v6103_v7, %v6217_v37  ;;  %v2314_v43 = vshll.u32 %v2274_v21, 8 }
 0x27f   :  { %v2674_v34 = vxor.u32 2147483648, %v5188_v51  ;;  %v2556_v55 = vxor.u32 2147483648, %v2555_v50  ;;  %v6427_v5 = vshrl.u32 %v2430_v63, 30  ;;  %v2310_v1 = vsel %vm2298_vm3, %v2288_v40, %v2291_v36  ;;  %v7936_v36 = vld [vmem:[#allocation73_spill] sm:$0xff] }
 0x280   :  { %v2671_v14 = vxor.u32 2147483648, %v5190_v17  ;;  %v2304_v44 = vsel %vm2300_vm5, %v2288_v40, %v2303_v38  ;;  %v6433_v6 = vmul.u32.u64.low %v2314_v43, %v2309_v0  ;;  %v6434_v31 = vmul.u32.u64.high %v2314_v43, %v2309_v0, %v6433_v6  ;;  %v7938_v38 = vld [vmem:[#allocation67_spill] sm:$0xff] }
 0x281   :  { %v4353_v7 = vsel %vm4351_vm2, %v2674_v34, %v5190_v17  ;;  %v2675_v37 = vsel %vm2673_vm10, %v2674_v34, %v5190_v17  ;;  %v2557_v56 = vsel %vm2474_vm6, %v2556_v55, %v2555_v50  ;;  %v2432_v9 = vshll.u32 %v6427_v5, 30  ;;  %v7937_v50 = vld [vmem:[#allocation23_spill] sm:$0xff]  ;;  %v7940_v17 = vld [vmem:[#allocation70_spill] sm:$0xff] }
 0x282   :  { %v4350_v45 = vsel %vm4348_vm11, %v5188_v51, %v2671_v14  ;;  %v2672_v29 = vsel %vm2670_vm12, %v5188_v51, %v2671_v14  ;;  %v2560_v39 = vsel %vm6368_vm15, %v5794_v57, %v2557_v56  ;;  %v2313_v4 = vsel %vm2299_vm4, %v2310_v1, %v2312_v30 }
 0x283   :  { %v4354_v42 = vsel %vm4347_vm13, %v4350_v45, %v4353_v7  ;;  %v2676_v41 = vsel %vm2669_vm0, %v2672_v29, %v2675_v37  ;;  %5191 = vcosq.f32 %v2560_v39  ;;  %v6457_v59 = vsub.s32 %v2429_v27, %v2432_v9  ;;  %v7941_v45 = vld [vmem:[#allocation63_spill] sm:$0xff] }
 0x284   :  { %v2086_v16 = vshll.u32 %v7893_v8, %v5836_v46  ;;  %v4355_v49 = vsel %vm2667_vm1, nan, %v4354_v42  ;;  %5193 = vsinq.f32 %v2560_v39  ;;  %v4241_v54 = vadd.s32 3, %v6383_v26 }
 0x285   :  { %4631 = vmatprep.subr.mxu0 %v4355_v49  ;;  %v2677_v25 = vsel %vm2667_vm1, nan, %v2676_v41  ;;  %v2435_v2 = vsub.s32 0, %v6457_v59  ;;  %v6467_v60 = vmul.u32.u64.low %v2314_v43, %v2313_v4  ;;  %v6468_v20 = vmul.u32.u64.high %v2314_v43, %v2313_v4, %v6467_v60 }
 0x286   :  { %v2194_v52 = vor.u32 %v7931_v47, %v7930_v53  ;;  %v7933_v23 = vmov 1326507024   ;;  %4632 = vmatpush1.msra.mxu0 %v2677_v25  ;;  %v2305_v21 = vsel %vm2299_vm4, %v2302_v61, %v2304_v44  ;;  %v2324_v40 = vadd.s32 1, %v6434_v31  ;;  %v7939_v61 = vld [vmem:[#allocation72_spill] sm:$0xff] }
 0x287   :  { %v6474_v13 = vshrl.u32 %v7933_v23, %v7932_v3  ;;  %v7935_v18 = vmov 920167782   ;;  %v6484_v15 = vor.u32 %v7936_v36, %v2086_v16  ;;  %v4763_v32 = vmin.u32 %v2435_v2, %v6457_v59 }
 0x288   :  { %v6481_v27 = vshrl.u32 %v7935_v18, %v7934_v24  ;;  %v2163_v63 = vand.u32 2147483647, %v7937_v50  ;;  %vm2198_vm9 = vcmp.lt.s32.totalorder %v7938_v38, 4  ;;  %v6491_v58 = vshll.u32 %v7935_v18, %v5836_v46 }
 0x289   :  { %v4242_v62 = vand.u32 3, %v4241_v54  ;;  %v2565_v51 = vand.u32 3, %v6383_v26  ;;  %vm2095_vm6 = vcmp.lt.s32.totalorder %v7939_v61, 4  ;;  %v2437_v0 = vclz %v4763_v32  ;;  %v7942_v54 = vld [vmem:[#allocation57_spill] sm:$0xff] }
 0x28a   :  { %v2321_v30 = vmul.u32 %v2314_v43, %v2305_v21  ;;  %vm2323_vm7 = vc.u32 %v6468_v20, %v6433_v6  ;;  %v2204_v34 = vsel %vm2198_vm9, %v7940_v17, 920167782  ;;  %v6502_v55 = vsel %vm2198_vm9, %v2194_v52, 1326507024 }
 0x28b   :  { %v2091_v1 = vor.u32 %v6474_v13, %v6491_v58  ;;  %v2325_v26 = vsel %vm2323_vm7, %v2324_v40, %v6434_v31  ;;  %v6510_v43 = vsel %vm2095_vm6, %v6484_v15, 920167782  ;;  %v4764_v14 = vadd.s32 4294967294, %v2437_v0  ;;  %v7943_v58 = vld [vmem:[#allocation24_spill] sm:$0xff] }
 0x28c   :  { %v2326_v44 = vadd.s32 %v2325_v26, %v2321_v30  ;;  %v6514_v7 = vand.u32 8388607, %v2163_v63  ;;  %vm4243_vm8 = vcmp.lt.s32.totalorder %v4242_v62, 2  ;;  %vm4244_vm15 = vcmp.eq.s32.totalorder %v4242_v62, 0 }
 0x28d   :  { %vm4247_vm14 = vcmp.eq.s32.totalorder %v4242_v62, 2  ;;  %vm2566_vm2 = vcmp.lt.s32.totalorder %v2565_v51, 2  ;;  %vm2567_vm10 = vcmp.eq.s32.totalorder %v2565_v51, 0  ;;  %vm2570_vm11 = vcmp.eq.s32.totalorder %v2565_v51, 2 }
 0x28e   :  { %vm2564_vm12 = vweird.f32 %v5794_v57  ;;  %v2425_v31 = vadd.s32 %v6362_v22, %v6351_v12  ;;  %vm4765_vm13 = vcmp.lt.s32.totalorder %v4764_v14, 0  ;;  %v2455_v37 = vsub.s32 4, %v6427_v5 }
 0x28f   :  { %v2327_v56 = vadd.s32 536870912, %v2326_v44  ;;  %v2440_v9 = vsel %vm4765_vm13, 0, %v4764_v14  ;;  %v2181_v29 = vshrl.u32 %v7914_v28, %v7941_v45  ;;  %v2184_v39 = vshrl.u32 %v7915_v33, %v7941_v45 }
 0x290   :  { %v2187_v4 = vshrl.u32 %v7893_v8, %v7941_v45  ;;  %v2441_v42 = vsub.s32 32, %v2440_v9  ;;  %v2445_v41 = vsub.s32 4294967266, %v2440_v9  ;;  %v2171_v12 = vor.u32 8388608, %v6514_v7  ;;  %v5192_v22 = vpop.eup %5191 }
 0x291   :  { %v6526_v16 = vshrl.u32 %v2327_v56, 30  ;;  %v2442_v49 = vshll.u32 %v6457_v59, %v2440_v9  ;;  %v2180_v25 = vshll.u32 %v7913_v10, %v7942_v54  ;;  %v2183_v2 = vshll.u32 %v7914_v28, %v7942_v54  ;;  %v5194_v53 = vpop.eup %5193 }
 0x292   :  { %v2186_v60 = vshll.u32 %v7915_v33, %v7942_v54  ;;  %v2571_v47 = vxor.u32 2147483648, %v5192_v22  ;;  %v2443_v52 = vshrl.u32 %v2425_v31, %v2441_v42  ;;  %v2446_v21 = vadd.s32 127, %v2445_v41 }
 0x293   :  { %v2329_v40 = vshll.u32 %v6526_v16, 30  ;;  %v2568_v36 = vxor.u32 2147483648, %v5194_v53  ;;  %v2182_v32 = vor.u32 %v2181_v29, %v2180_v25  ;;  %v2185_v0 = vor.u32 %v2184_v39, %v2183_v2 }
 0x294   :  { %v2188_v30 = vor.u32 %v2187_v4, %v2186_v60  ;;  %v4249_v59 = vsel %vm4247_vm14, %v2571_v47, %v5194_v53  ;;  %v2572_v26 = vsel %vm2570_vm11, %v2571_v47, %v5194_v53  ;;  %v2444_v14 = vor.u32 %v2443_v52, %v2442_v49 }
 0x295   :  { %v2447_v7 = vshll.u32 %v2446_v21, 23  ;;  %v4246_v56 = vsel %vm4244_vm15, %v5192_v22, %v2568_v36  ;;  %v2569_v9 = vsel %vm2567_vm10, %v5192_v22, %v2568_v36  ;;  %v6541_v54 = vsub.s32 %v2326_v44, %v2329_v40 }
 0x296   :  { %vm2195_vm0 = vcmp.lt.s32.totalorder %v7938_v38, 1  ;;  %v4250_v31 = vsel %vm4243_vm8, %v4246_v56, %v4249_v59  ;;  %v2573_v29 = vsel %vm2566_vm2, %v2569_v9, %v2572_v26  ;;  %vm2197_vm1 = vcmp.lt.s32.totalorder %v7938_v38, 3 }
 0x297   :  { %v2448_v39 = vor.u32 4788187, %v2447_v7  ;;  %v4251_v4 = vsel %vm2564_vm12, nan, %v4250_v31  ;;  %v2332_v42 = vsub.s32 0, %v6541_v54  ;;  %v2203_v41 = vsel %vm2195_vm0, %v2182_v32, %v2185_v0 }
 0x298   :  { %v2205_v44 = vsel %vm2197_vm1, %v2188_v30, %v2204_v34  ;;  %4633 = vmatprep.subr.mxu0 %v4251_v4  ;;  %v2574_v62 = vsel %vm2564_vm12, nan, %v2573_v29  ;;  %vm2371_vm3 = vcmp.lt.s32.totalorder %v5670_v48, 0  ;;  %v2451_v22 = vcvt.s32.f32 %v2444_v14 }
 0x299   :  { %v2449_v51 = vand.u32 2147483647, %v2448_v39  ;;  %4634 = vmatpush1.msra.mxu0 %v2574_v62  ;;  %v2456_v49 = vsel %vm2371_vm3, %v2455_v37, %v6427_v5  ;;  %v4759_v25 = vmin.u32 %v2332_v42, %v6541_v54  ;;  %vm2196_vm4 = vcmp.lt.s32.totalorder %v7938_v38, 2 }
 0x29a   :  { %v2200_v34 = vsel %vm2198_vm9, %v2188_v30, 2102212464  ;;  %v2179_v57 = vshrl.u32 %v7913_v10, %v7941_v45  ;;  %v2206_v60 = vsel %vm2196_vm4, %v2203_v41, %v2205_v44  ;;  %v2207_v53 = vsel %vm2195_vm0, %v2185_v0, %v2188_v30 }
 0x29b   :  { %v2452_v2 = vmul.f32 %v2451_v22, %v2449_v51  ;;  %vm2370_vm5 = vcmp.le.f32.partialorder %v2369_v35, 0.7853982  ;;  %v2334_v5 = vclz %v4759_v25  ;;  %v2209_v37 = vsel %vm2197_vm1, %v7940_v17, %v6502_v55 }
 0x29c   :  { %v2211_v47 = vshll.u32 %v2171_v12, 8  ;;  %v2458_v21 = vsel %vm2370_vm5, 0, %v2456_v49  ;;  %v2199_v45 = vsel %vm2195_vm0, %v2179_v57, %v2182_v32  ;;  %v2201_v40 = vsel %vm2197_vm1, %v2185_v0, %v2200_v34 }
 0x29d   :  { %v2453_v52 = vxor.u32 2147483648, %v2452_v2  ;;  %v4760_v36 = vadd.s32 4294967294, %v2334_v5  ;;  %v2210_v30 = vsel %vm2196_vm4, %v2207_v53, %v2209_v37  ;;  %v2105_v17 = vsel %vm2095_vm6, %v2091_v1, 1326507024 }
 0x29e   :  { %v6582_v35 = vmul.u32.u64.low %v2211_v47, %v2206_v60  ;;  %v6583_v59 = vmul.u32.u64.high %v2211_v47, %v2206_v60, %v6582_v35  ;;  %v6593_v12 = vmul.u32.u64.low %v2211_v47, %v2210_v30  ;;  %v6594_v32 = vmul.u32.u64.high %v2211_v47, %v2210_v30, %v6593_v12 }
 0x29f   :  { %v2454_v55 = vsel %vm2371_vm3, %v2453_v52, %v2452_v2  ;;  %v4137_v26 = vadd.s32 3, %v2458_v21  ;;  %vm2268_vm9 = vcmp.lt.s32.totalorder %v5685_v11, 0  ;;  %vm4761_vm7 = vcmp.lt.s32.totalorder %v4760_v36, 0 }
 0x2a0   :  { %v2457_v0 = vsel %vm2370_vm5, %v5670_v48, %v2454_v55  ;;  %v2337_v14 = vsel %vm4761_vm7, 0, %v4760_v36  ;;  %v2202_v13 = vsel %vm2196_vm4, %v2199_v45, %v2201_v40  ;;  %v2060_v7 = vand.u32 2147483647, %v7943_v58  ;;  %v7946_v36 = vld [vmem:[#allocation56_spill] sm:$0xff] }
 0x2a1   :  { %5195 = vcosq.f32 %v2457_v0  ;;  %vm6603_vm8 = vcmp.le.f32.partialorder %v2266_v19, 0.7853982  ;;  %v2322_v56 = vadd.s32 %v6433_v6, %v6468_v20  ;;  %v2338_v9 = vsub.s32 32, %v2337_v14 }
 0x2a2   :  { %5197 = vsinq.f32 %v2457_v0  ;;  %v2342_v31 = vsub.s32 4294967266, %v2337_v14  ;;  %v6609_v29 = vand.u32 3, %v2458_v21  ;;  %v2352_v39 = vsub.s32 4, %v6526_v16 }
 0x2a3   :  { %vm2220_vm15 = vc.u32 %v6594_v32, %v6582_v35  ;;  %v2221_v38 = vadd.s32 1, %v6583_v59  ;;  %v2339_v4 = vshll.u32 %v6541_v54, %v2337_v14  ;;  %v2340_v19 = vshrl.u32 %v2322_v56, %v2338_v9 }
 0x2a4   :  { %v2343_v42 = vadd.s32 127, %v2342_v31  ;;  %v2218_v41 = vmul.u32 %v2211_v47, %v2202_v13  ;;  %v2067_v6 = vand.u32 8388607, %v2060_v7  ;;  %v2080_v20 = vshll.u32 %v7914_v28, %v5836_v46 }
 0x2a5   :  { %v2222_v44 = vsel %vm2220_vm15, %v2221_v38, %v6583_v59  ;;  %v2081_v62 = vshrl.u32 %v7915_v33, %v7932_v3  ;;  %v4138_v51 = vand.u32 3, %v4137_v26  ;;  %v2341_v22 = vor.u32 %v2340_v19, %v2339_v4 }
 0x2a6   :  { %v2344_v49 = vshll.u32 %v2343_v42, 23  ;;  %v2223_v25 = vadd.s32 %v2222_v44, %v2218_v41  ;;  %v2078_v54 = vshrl.u32 %v7914_v28, %v7932_v3  ;;  %v2083_v2 = vshll.u32 %v7915_v33, %v5836_v46 }
 0x2a7   :  { %v6625_v34 = vor.u32 %v2081_v62, %v2080_v20  ;;  %v2084_v57 = vshrl.u32 %v7893_v8, %v7932_v3  ;;  %v2353_v53 = vsel %vm2268_vm9, %v2352_v39, %v6526_v16  ;;  %v2077_v37 = vshll.u32 %v7913_v10, %v5836_v46 }
 0x2a8   :  { %v2345_v60 = vor.u32 4788187, %v2344_v49  ;;  %v2224_v5 = vadd.s32 536870912, %v2223_v25  ;;  %vm2464_vm14 = vcmp.eq.s32.totalorder %v6609_v29, 0  ;;  %v2348_v47 = vcvt.s32.f32 %v2341_v22 }
 0x2a9   :  { %v2068_v52 = vor.u32 8388608, %v2067_v6  ;;  %v2085_v21 = vor.u32 %v2084_v57, %v2083_v2  ;;  %vm2094_vm2 = vcmp.lt.s32.totalorder %v7939_v61, 3  ;;  %vm2463_vm10 = vcmp.lt.s32.totalorder %v6609_v29, 2  ;;  %v7947_v2 = vld [vmem:[#allocation61_spill] sm:$0xff] }
 0x2aa   :  { %v2346_v45 = vand.u32 2147483647, %v2345_v60  ;;  %v6639_v40 = vshrl.u32 %v2224_v5, 30  ;;  %vm2092_vm11 = vcmp.lt.s32.totalorder %v7939_v61, 1  ;;  %v2106_v16 = vsel %vm2094_vm2, %v6484_v15, %v2105_v17 }
 0x2ab   :  { %vm1992_vm12 = vcmp.lt.s32.totalorder %v7946_v36, 4  ;;  %vm2461_vm13 = vweird.f32 %v5670_v48  ;;  %vm2467_vm0 = vcmp.eq.s32.totalorder %v6609_v29, 2  ;;  %v2355_v46 = vsel %vm6603_vm8, 0, %v2353_v53  ;;  %v7948_v48 = vld [vmem:[#allocation58_spill] sm:$0xff] }
 0x2ac   :  { %v2079_v30 = vor.u32 %v2078_v54, %v2077_v37  ;;  %v2104_v59 = vsel %vm2092_vm11, %v6625_v34, %v2085_v21  ;;  %vm4139_vm1 = vcmp.lt.s32.totalorder %v4138_v51, 2  ;;  %v2349_v55 = vmul.f32 %v2348_v47, %v2346_v45 }
 0x2ad   :  { %v2226_v12 = vshll.u32 %v6639_v40, 30  ;;  %vm2093_vm3 = vcmp.lt.s32.totalorder %v7939_v61, 2  ;;  %vm4140_vm4 = vcmp.eq.s32.totalorder %v4138_v51, 0  ;;  %vm4143_vm5 = vcmp.eq.s32.totalorder %v4138_v51, 2 }
 0x2ae   :  { %v2107_v15 = vsel %vm2093_vm3, %v2104_v59, %v2106_v16  ;;  %v6657_v17 = vshll.u32 %v2068_v52, 8  ;;  %v5196_v0 = vpop.eup %5195  ;;  %v2350_v26 = vxor.u32 2147483648, %v2349_v55  ;;  %v4033_v14 = vadd.s32 3, %v2355_v46 }
 0x2af   :  { %v6659_v13 = vsub.s32 %v2223_v25, %v2226_v12  ;;  %v2076_v56 = vshrl.u32 %v7913_v10, %v7932_v3  ;;  %v5198_v9 = vpop.eup %5197  ;;  %v2468_v31 = vxor.u32 2147483648, %v5196_v0  ;;  %v2100_v39 = vsel %vm2092_vm11, %v2079_v30, %v6625_v34 }
 0x2b0   :  { %v6667_v38 = vmul.u32.u64.low %v6657_v17, %v2107_v15  ;;  %v6668_v4 = vmul.u32.u64.high %v6657_v17, %v2107_v15, %v6667_v38  ;;  %v2465_v19 = vxor.u32 2147483648, %v5198_v9  ;;  %v2351_v42 = vsel %vm2268_vm9, %v2350_v26, %v2349_v55  ;;  %v7952_v15 = vld [vmem:[#allocation21_spill] sm:$0xff] }
 0x2b1   :  { %v2229_v41 = vsub.s32 0, %v6659_v13  ;;  %v2102_v3 = vsel %vm2094_vm2, %v2085_v21, %v6510_v43  ;;  %v4145_v44 = vsel %vm4143_vm5, %v2468_v31, %v5198_v9  ;;  %v2469_v6 = vsel %vm2467_vm0, %v2468_v31, %v5198_v9  ;;  %v7955_v38 = vld [vmem:[#allocation54_spill] sm:$0xff] }
 0x2b2   :  { %v2354_v20 = vsel %vm6603_vm8, %v5685_v11, %v2351_v42  ;;  %v2097_v62 = vsel %vm2095_vm6, %v2085_v21, 2102212464  ;;  %v4142_v22 = vsel %vm4140_vm4, %v5196_v0, %v2465_v19  ;;  %v2466_v49 = vsel %vm2464_vm14, %v5196_v0, %v2465_v19 }
 0x2b3   :  { %5199 = vcosq.f32 %v2354_v20  ;;  %v4755_v43 = vmin.u32 %v2229_v41, %v6659_v13  ;;  %v4146_v25 = vsel %vm4139_vm1, %v4142_v22, %v4145_v44  ;;  %v2470_v54 = vsel %vm2463_vm10, %v2466_v49, %v2469_v6 }
 0x2b4   :  { %5201 = vsinq.f32 %v2354_v20  ;;  %v2103_v1 = vsel %vm2093_vm3, %v2100_v39, %v2102_v3  ;;  %v6696_v57 = vsel %vm1992_vm12, %v7947_v2, 920167782  ;;  %v4147_v60 = vsel %vm2461_vm13, nan, %v4146_v25  ;;  %v7956_v3 = vld [vmem:[#allocation48_spill] sm:$0xff] }
 0x2b5   :  { %v6700_v53 = vand.u32 3, %v2355_v46  ;;  %v2231_v5 = vclz %v4755_v43  ;;  %4635 = vmatprep.subr.mxu0 %v4147_v60  ;;  %v2471_v29 = vsel %vm2461_vm13, nan, %v2470_v54  ;;  %v6704_v51 = vand.u32 3, %v4033_v14  ;;  %v7949_v46 = vld [vmem:[#allocation60_spill] sm:$0xff] }
 0x2b6   :  { %v2096_v37 = vsel %vm2092_vm11, %v2076_v56, %v2079_v30  ;;  %v2098_v47 = vsel %vm2094_vm2, %v6625_v34, %v2097_v62  ;;  %4636 = vmatpush1.msra.mxu0 %v2471_v29  ;;  %v2249_v21 = vsub.s32 4, %v6639_v40  ;;  %v7950_v59 = vor.u32 %v7948_v48, %v7949_v46  ;;  %v7951_v30 = vld [vmem:[#allocation65_spill] sm:$0xff] }
 0x2b7   :  { %v4756_v52 = vadd.s32 4294967294, %v2231_v5  ;;  %v6713_v45 = vmul.u32.u64.low %v6657_v17, %v2103_v1  ;;  %v6714_v16 = vmul.u32.u64.high %v6657_v17, %v2103_v1, %v6713_v45  ;;  %v6726_v12 = vor.u32 %v6481_v27, %v7951_v30 }
 0x2b8   :  { %v6722_v55 = vsel %vm1992_vm12, %v7950_v59, 1326507024  ;;  %v6730_v34 = vshrl.u32 %v7933_v23, %v7934_v24  ;;  %v1957_v0 = vand.u32 2147483647, %v7952_v15  ;;  %vm6735_vm6 = vcmp.le.f32.partialorder %v2163_v63, 0.7853982 }
 0x2b9   :  { %vm2165_vm9 = vcmp.lt.s32.totalorder %v7937_v50, 0  ;;  %vm4757_vm7 = vcmp.lt.s32.totalorder %v4756_v52, 0  ;;  %v2099_v14 = vsel %vm2093_vm3, %v2096_v37, %v2098_v47  ;;  %vm2364_vm8 = vcmp.eq.s32.totalorder %v6700_v53, 2 }
 0x2ba   :  { %v2219_v27 = vadd.s32 %v6582_v35, %v6594_v32  ;;  %v2234_v56 = vsel %vm4757_vm7, 0, %v4756_v52  ;;  %vm2117_vm15 = vc.u32 %v6668_v4, %v6713_v45  ;;  %vm4036_vm14 = vcmp.eq.s32.totalorder %v6704_v51, 0  ;;  %v7957_v52 = vld [vmem:[#allocation62_spill] sm:$0xff] }
 0x2bb   :  { %vm2361_vm2 = vcmp.eq.s32.totalorder %v6700_v53, 0  ;;  %v2235_v63 = vsub.s32 32, %v2234_v56  ;;  %v2239_v9 = vsub.s32 4294967266, %v2234_v56  ;;  %v2250_v61 = vsel %vm2165_vm9, %v2249_v21, %v6639_v40 }
 0x2bc   :  { %v2118_v31 = vadd.s32 1, %v6714_v16  ;;  %vm4035_vm10 = vcmp.lt.s32.totalorder %v6704_v51, 2  ;;  %vm2360_vm11 = vcmp.lt.s32.totalorder %v6700_v53, 2  ;;  %v2236_v35 = vshll.u32 %v6659_v13, %v2234_v56 }
 0x2bd   :  { %v2115_v32 = vmul.u32 %v6657_v17, %v2099_v14  ;;  %v1964_v39 = vand.u32 8388607, %v1957_v0  ;;  %v1975_v19 = vshrl.u32 %v7914_v28, %v7955_v38  ;;  %vm2358_vm13 = vweird.f32 %v5685_v11 }
 0x2be   :  { %v2237_v42 = vshrl.u32 %v2219_v27, %v2235_v63  ;;  %v2240_v40 = vadd.s32 127, %v2239_v9  ;;  %v2119_v41 = vsel %vm2117_vm15, %v2118_v31, %v6714_v16  ;;  %v1978_v13 = vshrl.u32 %v7915_v33, %v7955_v38 }
 0x2bf   :  { %vm4039_vm0 = vcmp.eq.s32.totalorder %v6704_v51, 2  ;;  %v2120_v17 = vadd.s32 %v2119_v41, %v2115_v32  ;;  %v1974_v44 = vshll.u32 %v7913_v10, %v7956_v3  ;;  %v1981_v6 = vshrl.u32 %v7893_v8, %v7955_v38 }
 0x2c0   :  { %v2238_v20 = vor.u32 %v2237_v42, %v2236_v35  ;;  %v2241_v62 = vshll.u32 %v2240_v40, 23  ;;  %v2252_v22 = vsel %vm6735_vm6, 0, %v2250_v61  ;;  %v1977_v49 = vshll.u32 %v7914_v28, %v7956_v3  ;;  %v5200_v43 = vpop.eup %5199  ;;  %v7958_v40 = vld [vmem:[#allocation66_spill] sm:$0xff] }
 0x2c1   :  { %v2121_v25 = vadd.s32 536870912, %v2120_v17  ;;  %v1965_v54 = vor.u32 8388608, %v1964_v39  ;;  %v1976_v1 = vor.u32 %v1975_v19, %v1974_v44  ;;  %v1980_v60 = vshll.u32 %v7915_v33, %v7956_v3  ;;  %v5202_v5 = vpop.eup %5201 }
 0x2c2   :  { %v2365_v29 = vxor.u32 2147483648, %v5200_v43  ;;  %v2242_v37 = vor.u32 4788187, %v2241_v62  ;;  %v1979_v47 = vor.u32 %v1978_v13, %v1977_v49  ;;  %vm1989_vm1 = vcmp.lt.s32.totalorder %v7946_v36, 1 }
 0x2c3   :  { %vm1889_vm3 = vcmp.lt.s32.totalorder %v7957_v52, 4  ;;  %v2362_v21 = vxor.u32 2147483648, %v5202_v5  ;;  %v2122_v16 = vshrl.u32 %v2121_v25, 30  ;;  %v1982_v48 = vor.u32 %v1981_v6, %v1980_v60 }
 0x2c4   :  { %vm1990_vm4 = vcmp.lt.s32.totalorder %v7946_v36, 2  ;;  %v4041_v46 = vsel %vm4039_vm0, %v2365_v29, %v5202_v5  ;;  %v2366_v59 = vsel %vm2364_vm8, %v2365_v29, %v5202_v5  ;;  %v2243_v30 = vand.u32 2147483647, %v2242_v37 }
 0x2c5   :  { %v2245_v14 = vcvt.s32.f32 %v2238_v20  ;;  %v4038_v27 = vsel %vm4036_vm14, %v5200_v43, %v2362_v21  ;;  %v2363_v56 = vsel %vm2361_vm2, %v5200_v43, %v2362_v21  ;;  %v2123_v63 = vshll.u32 %v2122_v16, 30  ;;  %v7959_v43 = vld [vmem:[#allocation55_spill] sm:$0xff] }
 0x2c6   :  { %vm1991_vm5 = vcmp.lt.s32.totalorder %v7946_v36, 3  ;;  %v4042_v9 = vsel %vm4035_vm10, %v4038_v27, %v4041_v46  ;;  %v2367_v61 = vsel %vm2360_vm11, %v2363_v56, %v2366_v59  ;;  %v1997_v19 = vsel %vm1989_vm1, %v1976_v1, %v1979_v47  ;;  %v7961_v56 = vld [vmem:[#allocation59_spill] sm:$0xff] }
 0x2c7   :  { %v2246_v31 = vmul.f32 %v2245_v14, %v2243_v30  ;;  %v2003_v35 = vsel %vm1991_vm5, %v7947_v2, %v6722_v55  ;;  %v4043_v32 = vsel %vm2358_vm13, nan, %v4042_v9  ;;  %v6801_v39 = vsub.s32 %v2120_v17, %v2123_v63 }
 0x2c8   :  { %v1999_v51 = vsel %vm1991_vm5, %v1982_v48, %v6696_v57  ;;  %4637 = vmatprep.subr.mxu0 %v4043_v32  ;;  %v2368_v53 = vsel %vm2358_vm13, nan, %v2367_v61  ;;  %v2001_v2 = vsel %vm1989_vm1, %v1979_v47, %v1982_v48  ;;  %v2005_v55 = vshll.u32 %v1965_v54, 8 }
 0x2c9   :  { %v2247_v42 = vxor.u32 2147483648, %v2246_v31  ;;  %v1885_v41 = vor.u32 %v6730_v34, %v7958_v40  ;;  %4638 = vmatpush1.msra.mxu0 %v2368_v53  ;;  %v3929_v13 = vadd.s32 3, %v2252_v22  ;;  %v2126_v17 = vsub.s32 0, %v6801_v39 }
 0x2ca   :  { %v2004_v3 = vsel %vm1990_vm4, %v2001_v2, %v2003_v35  ;;  %v1994_v11 = vsel %vm1992_vm12, %v1982_v48, 2102212464  ;;  %v1973_v62 = vshrl.u32 %v7913_v10, %v7955_v38  ;;  %v2000_v49 = vsel %vm1990_vm4, %v1997_v19, %v1999_v51  ;;  %v7960_v48 = vld [vmem:[#allocation22_spill] sm:$0xff] }
 0x2cb   :  { %v2248_v57 = vsel %vm2165_vm9, %v2247_v42, %v2246_v31  ;;  %v6821_v44 = vmul.u32.u64.low %v2005_v55, %v2004_v3  ;;  %v6822_v6 = vmul.u32.u64.high %v2005_v55, %v2004_v3, %v6821_v44  ;;  %v4751_v20 = vmin.u32 %v2126_v17, %v6801_v39 }
 0x2cc   :  { %v2251_v34 = vsel %vm6735_vm6, %v7937_v50, %v2248_v57  ;;  %v6833_v25 = vsub.s32 32, %v7959_v43  ;;  %v1895_v54 = vsel %vm1889_vm3, %v6726_v12, 920167782  ;;  %v2146_v60 = vsub.s32 4, %v2122_v16 }
 0x2cd   :  { %5203 = vcosq.f32 %v2251_v34  ;;  %v2128_v26 = vclz %v4751_v20  ;;  %v1993_v5 = vsel %vm1989_vm1, %v1973_v62, %v1976_v1  ;;  %v1995_v38 = vsel %vm1991_vm5, %v1979_v47, %v1994_v11 }
 0x2ce   :  { %5205 = vsinq.f32 %v2251_v34  ;;  %v1899_v29 = vsel %vm1889_vm3, %v1885_v41, 1326507024  ;;  %v6844_v37 = vmul.u32.u64.low %v2005_v55, %v2000_v49  ;;  %v6845_v21 = vmul.u32.u64.high %v2005_v55, %v2000_v49, %v6844_v37 }
 0x2cf   :  { %v1854_v46 = vand.u32 2147483647, %v7960_v48  ;;  %v6849_v59 = vand.u32 3, %v3929_v13  ;;  %v6851_v30 = vand.u32 3, %v2252_v22  ;;  %vm2062_vm12 = vcmp.lt.s32.totalorder %v7943_v58, 0 }
 0x2d0   :  { %v4752_v14 = vadd.s32 4294967294, %v2128_v26  ;;  %v2116_v1 = vadd.s32 %v6713_v45, %v6668_v4  ;;  %v6858_v47 = vsel %vm2062_vm12, %v2146_v60, %v2122_v16  ;;  %v1996_v27 = vsel %vm1990_vm4, %v1993_v5, %v1995_v38 }
 0x2d1   :  { %v1871_v63 = vshll.u32 %v7913_v10, %v7961_v56  ;;  %vm2014_vm9 = vc.u32 %v6822_v6, %v6844_v37  ;;  %v1872_v22 = vshrl.u32 %v7914_v28, %v7934_v24  ;;  %v1875_v4 = vshrl.u32 %v7915_v33, %v7934_v24 }
 0x2d2   :  { %vm4753_vm6 = vcmp.lt.s32.totalorder %v4752_v14, 0  ;;  %v2015_v16 = vadd.s32 1, %v6845_v21  ;;  %v1861_v36 = vand.u32 8388607, %v1854_v46  ;;  %v1874_v9 = vshll.u32 %v7914_v28, %v7961_v56 }
 0x2d3   :  { %v2131_v45 = vsel %vm4753_vm6, 0, %v4752_v14  ;;  %vm3935_vm7 = vcmp.eq.s32.totalorder %v6849_v59, 2  ;;  %vm2261_vm8 = vcmp.eq.s32.totalorder %v6851_v30, 2  ;;  %v2012_v35 = vmul.u32 %v2005_v55, %v1996_v27  ;;  %v7964_v14 = vld [vmem:[#allocation47_spill] sm:$0xff] }
 0x2d4   :  { %v2132_v61 = vsub.s32 32, %v2131_v45  ;;  %v2136_v31 = vsub.s32 4294967266, %v2131_v45  ;;  %v1877_v32 = vshll.u32 %v7915_v33, %v7961_v56  ;;  %vm3932_vm15 = vcmp.eq.s32.totalorder %v6849_v59, 0 }
 0x2d5   :  { %vm2258_vm14 = vcmp.eq.s32.totalorder %v6851_v30, 0  ;;  %v2016_v19 = vsel %vm2014_vm9, %v2015_v16, %v6845_v21  ;;  %v1873_v51 = vor.u32 %v1872_v22, %v1871_v63  ;;  %v1876_v53 = vor.u32 %v1875_v4, %v1874_v9 }
 0x2d6   :  { %v1878_v42 = vshrl.u32 %v7893_v8, %v7934_v24  ;;  %vm3931_vm2 = vcmp.lt.s32.totalorder %v6849_v59, 2  ;;  %vm2257_vm10 = vcmp.lt.s32.totalorder %v6851_v30, 2  ;;  %vm6888_vm11 = vcmp.le.f32.partialorder %v2060_v7, 0.7853982 }
 0x2d7   :  { %v2133_v55 = vshll.u32 %v6801_v39, %v2131_v45  ;;  %v2134_v40 = vshrl.u32 %v2116_v1, %v2132_v61  ;;  %v2137_v41 = vadd.s32 127, %v2136_v31  ;;  %v2017_v13 = vadd.s32 %v2016_v19, %v2012_v35 }
 0x2d8   :  { %vm2255_vm13 = vweird.f32 %v7937_v50  ;;  %v1862_v17 = vor.u32 8388608, %v1861_v36  ;;  %v1879_v3 = vor.u32 %v1878_v42, %v1877_v32  ;;  %vm1886_vm0 = vcmp.lt.s32.totalorder %v7957_v52, 1 }
 0x2d9   :  { %vm1888_vm1 = vcmp.lt.s32.totalorder %v7957_v52, 3  ;;  %v2135_v57 = vor.u32 %v2134_v40, %v2133_v55  ;;  %v2138_v11 = vshll.u32 %v2137_v41, 23  ;;  %v2018_v44 = vadd.s32 536870912, %v2017_v13  ;;  %v7965_v41 = vld [vmem:[#allocation53_spill] sm:$0xff] }
 0x2da   :  { %v1900_v7 = vsel %vm1888_vm1, %v6726_v12, %v1899_v29  ;;  %v1870_v39 = vshrl.u32 %v7913_v10, %v7934_v24  ;;  %v1894_v34 = vsel %vm1886_vm0, %v1873_v51, %v1876_v53  ;;  %v1896_v20 = vsel %vm1888_vm1, %v1879_v3, %v1895_v54  ;;  %v5204_v49 = vpop.eup %5203 }
 0x2db   :  { %v1898_v62 = vsel %vm1886_vm0, %v1876_v53, %v1879_v3  ;;  %v2139_v60 = vor.u32 4788187, %v2138_v11  ;;  %v2019_v26 = vshrl.u32 %v2018_v44, 30  ;;  %vm1887_vm4 = vcmp.lt.s32.totalorder %v7957_v52, 2  ;;  %v5206_v5 = vpop.eup %5205  ;;  %v7968_v52 = vld [vmem:[#allocation50_spill] sm:$0xff] }
 0x2dc   :  { %v1891_v12 = vsel %vm1889_vm3, %v1879_v3, 2102212464  ;;  %v2262_v38 = vxor.u32 2147483648, %v5204_v49  ;;  %v2142_v24 = vcvt.s32.f32 %v2135_v57  ;;  %v1901_v29 = vsel %vm1887_vm4, %v1898_v62, %v1900_v7 }
 0x2dd   :  { %v1902_v21 = vshll.u32 %v1862_v17, 8  ;;  %vm1786_vm5 = vcmp.lt.s32.totalorder %v7964_v14, 4  ;;  %v2259_v54 = vxor.u32 2147483648, %v5206_v5  ;;  %v2140_v1 = vand.u32 2147483647, %v2139_v60  ;;  %v7967_v60 = vld [vmem:[#allocation51_spill] sm:$0xff] }
 0x2de   :  { %v2020_v27 = vshll.u32 %v2019_v26, 30  ;;  %v1897_v56 = vsel %vm1887_vm4, %v1894_v34, %v1896_v20  ;;  %v3937_v63 = vsel %vm3935_vm7, %v2262_v38, %v5206_v5  ;;  %v2263_v22 = vsel %vm2261_vm8, %v2262_v38, %v5206_v5  ;;  %v7966_v20 = vld [vmem:[#allocation52_spill] sm:$0xff] }
 0x2df   :  { %v6919_v4 = vmul.u32.u64.low %v1902_v21, %v1901_v29  ;;  %v6920_v45 = vmul.u32.u64.high %v1902_v21, %v1901_v29, %v6919_v4  ;;  %v3934_v16 = vsel %vm3932_vm15, %v5204_v49, %v2259_v54  ;;  %v2260_v36 = vsel %vm2258_vm14, %v5204_v49, %v2259_v54 }
 0x2e0   :  { %v2143_v9 = vmul.f32 %v2142_v24, %v2140_v1  ;;  %v6926_v61 = vsub.s32 %v2017_v13, %v2020_v27  ;;  %v3938_v31 = vsel %vm3931_vm2, %v3934_v16, %v3937_v63  ;;  %v2264_v35 = vsel %vm2257_vm10, %v2260_v36, %v2263_v22  ;;  %v7972_v16 = vld [vmem:[#allocation19_spill] sm:$0xff] }
 0x2e1   :  { %v2149_v32 = vsel %vm6888_vm11, 0, %v6858_v47  ;;  %v1890_v19 = vsel %vm1886_vm0, %v1870_v39, %v1873_v51  ;;  %v3939_v42 = vsel %vm2255_vm13, nan, %v3938_v31  ;;  %v1892_v59 = vsel %vm1888_vm1, %v1876_v53, %v1891_v12 }
 0x2e2   :  { %v2144_v55 = vxor.u32 2147483648, %v2143_v9  ;;  %v2023_v40 = vsub.s32 0, %v6926_v61  ;;  %v6943_v13 = vshrl.u32 %v7965_v41, 5  ;;  %4639 = vmatprep.subr.mxu0 %v3939_v42  ;;  %v2265_v30 = vsel %vm2255_vm13, nan, %v2264_v35 }
 0x2e3   :  { %v6947_v47 = vmul.u32.u64.low %v1902_v21, %v1897_v56  ;;  %v6948_v17 = vmul.u32.u64.high %v1902_v21, %v1897_v56, %v6947_v47  ;;  %v1674_v51 = vshll.u32 %v7893_v8, %v7959_v43  ;;  %v1675_v3 = vshrl.u32 %v7935_v18, %v6833_v25  ;;  %4640 = vmatpush1.msra.mxu0 %v2265_v30 }
 0x2e4   :  { %v2145_v53 = vsel %vm2062_vm12, %v2144_v55, %v2143_v9  ;;  %v4747_v57 = vmin.u32 %v2023_v40, %v6926_v61  ;;  %v1678_v50 = vshrl.u32 %v7933_v23, %v6833_v25  ;;  %v3825_v44 = vadd.s32 3, %v2149_v32 }
 0x2e5   :  { %v2148_v11 = vsel %vm6888_vm11, %v7943_v58, %v2145_v53  ;;  %v1893_v7 = vsel %vm1887_vm4, %v1890_v19, %v1892_v59  ;;  %v2043_v34 = vsub.s32 4, %v2019_v26  ;;  %vm1911_vm3 = vc.u32 %v6920_v45, %v6947_v47  ;;  %v7973_v59 = vld [vmem:[#allocation38_spill] sm:$0xff] }
 0x2e6   :  { %5207 = vcosq.f32 %v2148_v11  ;;  %v2025_v39 = vclz %v4747_v57  ;;  %v6970_v62 = vsel %vm1786_vm5, %v7966_v20, 920167782  ;;  %v1677_v49 = vshll.u32 %v7935_v18, %v7959_v43 }
 0x2e7   :  { %5209 = vsinq.f32 %v2148_v11  ;;  %v1912_v2 = vadd.s32 1, %v6948_v17  ;;  %v7969_v12 = vor.u32 %v7967_v60, %v7968_v52  ;;  %v6982_v38 = vor.u32 %v1675_v3, %v1674_v51 }
 0x2e8   :  { %v4748_v24 = vadd.s32 4294967294, %v2025_v39  ;;  %v1909_v29 = vmul.u32 %v1902_v21, %v1893_v7  ;;  %v1679_v54 = vor.u32 %v1678_v50, %v1677_v49  ;;  %v6984_v1 = vand.u32 3, %v2149_v32  ;;  %v7974_v50 = vld [vmem:[#allocation30_spill] sm:$0xff] }
 0x2e9   :  { %v6980_v5 = vsel %vm1786_vm5, %v7969_v12, 1326507024  ;;  %vm1959_vm12 = vcmp.lt.s32.totalorder %v7952_v15, 0  ;;  %v1913_v27 = vsel %vm1911_vm3, %v1912_v2, %v6948_v17  ;;  %v6988_v56 = vand.u32 3, %v3825_v44 }
 0x2ea   :  { %vm4749_vm6 = vcmp.lt.s32.totalorder %v4748_v24, 0  ;;  %v2044_v63 = vsel %vm1959_vm12, %v2043_v34, %v2019_v26  ;;  %v1914_v22 = vadd.s32 %v1913_v27, %v1909_v29  ;;  %vm1683_vm9 = vcmp.lt.s32.totalorder %v6943_v13, 4 }
 0x2eb   :  { %vm6995_vm7 = vcmp.le.f32.partialorder %v1957_v0, 0.7853982  ;;  %v2028_v4 = vsel %vm4749_vm6, 0, %v4748_v24  ;;  %v1751_v36 = vand.u32 2147483647, %v7972_v16  ;;  %v2013_v9 = vadd.s32 %v6844_v37, %v6822_v6 }
 0x2ec   :  { %v2029_v31 = vsub.s32 32, %v2028_v4  ;;  %v2033_v35 = vsub.s32 4294967266, %v2028_v4  ;;  %v1915_v32 = vadd.s32 536870912, %v1914_v22  ;;  %v7005_v26 = vsel %vm1683_vm9, %v6982_v38, 920167782 }
 0x2ed   :  { %v7009_v0 = vsel %vm1683_vm9, %v1679_v54, 1326507024  ;;  %vm2158_vm8 = vcmp.eq.s32.totalorder %v6984_v1, 2  ;;  %v2046_v19 = vsel %vm6995_vm7, 0, %v2044_v63  ;;  %vm3828_vm15 = vcmp.eq.s32.totalorder %v6988_v56, 0 }
 0x2ee   :  { %vm2155_vm14 = vcmp.eq.s32.totalorder %v6984_v1, 0  ;;  %v2030_v6 = vshll.u32 %v6926_v61, %v2028_v4  ;;  %v2031_v37 = vshrl.u32 %v2013_v9, %v2029_v31  ;;  %v2034_v42 = vadd.s32 127, %v2033_v35 }
 0x2ef   :  { %v7017_v55 = vshrl.u32 %v1915_v32, 30  ;;  %vm3827_vm2 = vcmp.lt.s32.totalorder %v6988_v56, 2  ;;  %vm3831_vm10 = vcmp.eq.s32.totalorder %v6988_v56, 2  ;;  %vm2154_vm11 = vcmp.lt.s32.totalorder %v6984_v1, 2 }
 0x2f0   :  { %v1758_v40 = vand.u32 8388607, %v1751_v36  ;;  %v1772_v41 = vshrl.u32 %v7915_v33, %v7973_v59  ;;  %v1775_v30 = vshrl.u32 %v7893_v8, %v7973_v59  ;;  %vm2152_vm13 = vweird.f32 %v7943_v58 }
 0x2f1   :  { %v2032_v61 = vor.u32 %v2031_v37, %v2030_v6  ;;  %v2035_v17 = vshll.u32 %v2034_v42, 23  ;;  %v7029_v51 = vadd.s32 3, %v2046_v19  ;;  %v1917_v3 = vshll.u32 %v7017_v55, 30 }
 0x2f2   :  { %v7032_v53 = vand.u32 3, %v2046_v19  ;;  %v1769_v57 = vshrl.u32 %v7914_v28, %v7973_v59  ;;  %v1771_v11 = vshll.u32 %v7914_v28, %v7974_v50  ;;  %v1774_v44 = vshll.u32 %v7915_v33, %v7974_v50 }
 0x2f3   :  { %v2036_v7 = vor.u32 4788187, %v2035_v17  ;;  %v1910_v39 = vadd.s32 %v6947_v47, %v6920_v45  ;;  %v7042_v34 = vsub.s32 %v1914_v22, %v1917_v3  ;;  %v1767_v49 = vshrl.u32 %v7913_v10, %v7973_v59  ;;  %v5208_v2 = vpop.eup %5207 }
 0x2f4   :  { %v1759_v60 = vor.u32 8388608, %v1758_v40  ;;  %v1768_v52 = vshll.u32 %v7913_v10, %v7974_v50  ;;  %v1773_v12 = vor.u32 %v1772_v41, %v1771_v11  ;;  %v1776_v24 = vor.u32 %v1775_v30, %v1774_v44  ;;  %v5210_v29 = vpop.eup %5209  ;;  %v7975_v11 = vld [vmem:[#allocation20_spill] sm:$0xff] }
 0x2f5   :  { %v2159_v54 = vxor.u32 2147483648, %v5208_v2  ;;  %v2037_v27 = vand.u32 2147483647, %v2036_v7  ;;  %v2039_v63 = vcvt.s32.f32 %v2032_v61  ;;  %v1920_v4 = vsub.s32 0, %v7042_v34 }
 0x2f6   :  { %v2156_v9 = vxor.u32 2147483648, %v5210_v29  ;;  %v1770_v45 = vor.u32 %v1769_v57, %v1768_v52  ;;  %vm1783_vm0 = vcmp.lt.s32.totalorder %v7964_v14, 1  ;;  %vm1785_vm1 = vcmp.lt.s32.totalorder %v7964_v14, 3 }
 0x2f7   :  { %v3833_v47 = vsel %vm3831_vm10, %v2159_v54, %v5210_v29  ;;  %v2160_v22 = vsel %vm2158_vm8, %v2159_v54, %v5210_v29  ;;  %v2040_v31 = vmul.f32 %v2039_v63, %v2037_v27  ;;  %vm1856_vm4 = vcmp.lt.s32.totalorder %v7960_v48, 0 }
 0x2f8   :  { %v4743_v35 = vmin.u32 %v1920_v4, %v7042_v34  ;;  %v3830_v32 = vsel %vm3828_vm15, %v5208_v2, %v2156_v9  ;;  %v2157_v19 = vsel %vm2155_vm14, %v5208_v2, %v2156_v9  ;;  %v1795_v6 = vsel %vm1783_vm0, %v1773_v12, %v1776_v24 }
 0x2f9   :  { %v1797_v37 = vsel %vm1785_vm1, %v7966_v20, %v6980_v5  ;;  %v3834_v42 = vsel %vm3827_vm2, %v3830_v32, %v3833_v47  ;;  %v2161_v40 = vsel %vm2154_vm11, %v2157_v19, %v2160_v22  ;;  %v2041_v59 = vxor.u32 2147483648, %v2040_v31 }
 0x2fa   :  { %v1922_v41 = vclz %v4743_v35  ;;  %v3835_v30 = vsel %vm2152_vm13, nan, %v3834_v42  ;;  %vm1784_vm3 = vcmp.lt.s32.totalorder %v7964_v14, 2  ;;  %v1791_v61 = vsel %vm1783_vm0, %v1770_v45, %v1773_v12 }
 0x2fb   :  { %v1793_v20 = vsel %vm1785_vm1, %v1776_v24, %v6970_v62  ;;  %4641 = vmatprep.subr.mxu0 %v3835_v30  ;;  %v2162_v5 = vsel %vm2152_vm13, nan, %v2161_v40  ;;  %v2042_v1 = vsel %vm1959_vm12, %v2041_v59, %v2040_v31  ;;  %v1940_v17 = vsub.s32 4, %v7017_v55 }
 0x2fc   :  { %v4744_v56 = vadd.s32 4294967294, %v1922_v41  ;;  %4642 = vmatpush1.msra.mxu0 %v2162_v5  ;;  %v2045_v3 = vsel %vm6995_vm7, %v7952_v15, %v2042_v1  ;;  %v1788_v57 = vsel %vm1786_vm5, %v1776_v24, 2102212464  ;;  %v1798_v62 = vsel %vm1784_vm3, %v1795_v6, %v1797_v37 }
 0x2fd   :  { %v1799_v50 = vshll.u32 %v1759_v60, 8  ;;  %5211 = vcosq.f32 %v2045_v3  ;;  %v1794_v58 = vsel %vm1784_vm3, %v1791_v61, %v1793_v20  ;;  %v1648_v44 = vand.u32 2147483647, %v7975_v11 }
 0x2fe   :  { %vm4745_vm6 = vcmp.lt.s32.totalorder %v4744_v56, 0  ;;  %5213 = vsinq.f32 %v2045_v3  ;;  %v1787_v24 = vsel %vm1783_vm0, %v1767_v49, %v1770_v45  ;;  %v1789_v60 = vsel %vm1785_vm1, %v1773_v12, %v1788_v57 }
 0x2ff   :  { %v1925_v7 = vsel %vm4745_vm6, 0, %v4744_v56  ;;  %v7094_v2 = vmul.u32.u64.low %v1799_v50, %v1798_v62  ;;  %v7095_v52 = vmul.u32.u64.high %v1799_v50, %v1798_v62, %v7094_v2  ;;  %v7102_v54 = vand.u32 3, %v7029_v51 }
 0x300   :  { %v1926_v21 = vsub.s32 32, %v1925_v7  ;;  %v1930_v29 = vsub.s32 4294967266, %v1925_v7  ;;  %v1941_v27 = vsel %vm1856_vm4, %v1940_v17, %v7017_v55  ;;  %vm7113_vm5 = vcmp.le.f32.partialorder %v1854_v46, 0.7853982 }
 0x301   :  { %v7107_v63 = vmul.u32.u64.low %v1799_v50, %v1794_v58  ;;  %v7108_v4 = vmul.u32.u64.high %v1799_v50, %v1794_v58, %v7107_v63  ;;  %v1927_v49 = vshll.u32 %v7042_v34, %v1925_v7  ;;  %v1790_v51 = vsel %vm1784_vm3, %v1787_v24, %v1789_v60 }
 0x302   :  { %v1928_v12 = vshrl.u32 %v1910_v39, %v1926_v21  ;;  %v1931_v45 = vadd.s32 127, %v1930_v29  ;;  %v1655_v55 = vand.u32 8388607, %v1648_v44  ;;  %v1665_v47 = vshll.u32 %v7913_v10, %v7959_v43 }
 0x303   :  { %v1666_v22 = vshrl.u32 %v7914_v28, %v6833_v25  ;;  %v7128_v35 = vsel %vm7113_vm5, 0, %v1941_v27  ;;  %vm1808_vm12 = vc.u32 %v7095_v52, %v7107_v63  ;;  %vm3727_vm7 = vcmp.eq.s32.totalorder %v7102_v54, 2 }
 0x304   :  { %v1929_v46 = vor.u32 %v1928_v12, %v1927_v49  ;;  %v1932_v31 = vshll.u32 %v1931_v45, 23  ;;  %vm2055_vm8 = vcmp.eq.s32.totalorder %v7032_v53, 2  ;;  %v1809_v14 = vadd.s32 1, %v7108_v4 }
 0x305   :  { %v1667_v39 = vor.u32 %v1666_v22, %v1665_v47  ;;  %v1668_v34 = vshll.u32 %v7914_v28, %v7959_v43  ;;  %v1669_v32 = vshrl.u32 %v7915_v33, %v6833_v25  ;;  %vm3724_vm15 = vcmp.eq.s32.totalorder %v7102_v54, 0 }
 0x306   :  { %vm2052_vm14 = vcmp.eq.s32.totalorder %v7032_v53, 0  ;;  %v1933_v19 = vor.u32 4788187, %v1932_v31  ;;  %v1806_v6 = vmul.u32 %v1799_v50, %v1790_v51  ;;  %v1671_v37 = vshll.u32 %v7915_v33, %v7959_v43 }
 0x307   :  { %v1672_v42 = vshrl.u32 %v7893_v8, %v6833_v25  ;;  %vm3723_vm2 = vcmp.lt.s32.totalorder %v7102_v54, 2  ;;  %vm2051_vm10 = vcmp.lt.s32.totalorder %v7032_v53, 2  ;;  %v1936_v40 = vcvt.s32.f32 %v1929_v46 }
 0x308   :  { %v1810_v59 = vsel %vm1808_vm12, %v1809_v14, %v7108_v4  ;;  %v1656_v41 = vor.u32 8388608, %v1655_v55  ;;  %v1670_v30 = vor.u32 %v1669_v32, %v1668_v34  ;;  %vm2049_vm11 = vweird.f32 %v7952_v15  ;;  %v7982_v15 = vld [vmem:[#allocation32_spill] sm:$0xff] }
 0x309   :  { %v1934_v61 = vand.u32 2147483647, %v1933_v19  ;;  %v1811_v20 = vadd.s32 %v1810_v59, %v1806_v6  ;;  %v1673_v43 = vor.u32 %v1672_v42, %v1671_v37  ;;  %vm1680_vm13 = vcmp.lt.s32.totalorder %v6943_v13, 1  ;;  %v7979_v37 = vld [vmem:[#allocation42_spill] sm:$0xff]  ;;  %v7980_v42 = vld [vmem:[#allocation44_spill] sm:$0xff]  ;;  %v7981_v59 = vld [vmem:[#allocation43_spill] sm:$0xff] }
 0x30a   :  { %v1664_v5 = vshrl.u32 %v7913_v10, %v6833_v25  ;;  %vm1681_vm0 = vcmp.lt.s32.totalorder %v6943_v13, 2  ;;  %vm1682_vm1 = vcmp.lt.s32.totalorder %v6943_v13, 3  ;;  %v1688_v1 = vsel %vm1680_vm13, %v1667_v39, %v1670_v30  ;;  %v5212_v62 = vpop.eup %5211 }
 0x30b   :  { %v1937_v56 = vmul.f32 %v1936_v40, %v1934_v61  ;;  %v1812_v17 = vadd.s32 536870912, %v1811_v20  ;;  %v1685_v3 = vsel %vm1683_vm9, %v1673_v43, 2102212464  ;;  %v1690_v57 = vsel %vm1682_vm1, %v1673_v43, %v7005_v26  ;;  %v5214_v2 = vpop.eup %5213 }
 0x30c   :  { %v1684_v25 = vsel %vm1680_vm13, %v1664_v5, %v1667_v39  ;;  %v1691_v50 = vsel %vm1681_vm0, %v1688_v1, %v1690_v57  ;;  %v1694_v58 = vsel %vm1682_vm1, %v6982_v38, %v7009_v0  ;;  %v1696_v7 = vshll.u32 %v1656_v41, 8  ;;  %v7978_v39 = vld [vmem:[#allocation36_spill] sm:$0xff]  ;;  %v7984_v5 = vld [vmem:[#allocation49_spill] sm:$0xff] }
 0x30d   :  { %v2056_v21 = vxor.u32 2147483648, %v5212_v62  ;;  %v1938_v29 = vxor.u32 2147483648, %v1937_v56  ;;  %v7172_v24 = vshrl.u32 %v1812_v17, 30  ;;  %v1692_v26 = vsel %vm1680_vm13, %v1670_v30, %v1673_v43  ;;  %v7985_v17 = vld [vmem:[#allocation17_spill] sm:$0xff] }
 0x30e   :  { %v2053_v60 = vxor.u32 2147483648, %v5214_v2  ;;  %v1686_v27 = vsel %vm1682_vm1, %v1670_v30, %v1685_v3  ;;  %v7178_v4 = vmul.u32.u64.low %v1696_v7, %v1691_v50  ;;  %v7179_v49 = vmul.u32.u64.high %v1696_v7, %v1691_v50, %v7178_v4  ;;  %v7986_v57 = vld [vmem:[#allocation41_spill] sm:$0xff] }
 0x30f   :  { %v3729_v38 = vsel %vm3727_vm7, %v2056_v21, %v5214_v2  ;;  %v2057_v0 = vsel %vm2055_vm8, %v2056_v21, %v5214_v2  ;;  %v1939_v12 = vsel %vm1856_vm4, %v1938_v29, %v1937_v56  ;;  %v1814_v45 = vshll.u32 %v7172_v24, 30  ;;  %v7987_v50 = vld [vmem:[#allocation45_spill] sm:$0xff]  ;;  %v7988_v21 = vld [vmem:[#allocation46_spill] sm:$0xff] }
 0x310   :  { %v3726_v51 = vsel %vm3724_vm15, %v5212_v62, %v2053_v60  ;;  %v2054_v55 = vsel %vm2052_vm14, %v5212_v62, %v2053_v60  ;;  %v1942_v47 = vsel %vm7113_vm5, %v7960_v48, %v1939_v12  ;;  %v1695_v22 = vsel %vm1681_vm0, %v1692_v26, %v1694_v58 }
 0x311   :  { %v3730_v46 = vsel %vm3723_vm2, %v3726_v51, %v3729_v38  ;;  %v2058_v31 = vsel %vm2051_vm10, %v2054_v55, %v2057_v0  ;;  %5215 = vcosq.f32 %v1942_v47  ;;  %v7202_v14 = vsub.s32 %v1811_v20, %v1814_v45  ;;  %v7983_v20 = vld [vmem:[#allocation34_spill] sm:$0xff]  ;;  %v7989_v55 = vld [vmem:[#allocation31_spill] sm:$0xff] }
 0x312   :  { %v1468_v34 = vshll.u32 %v7893_v8, %v7978_v39  ;;  %v3731_v32 = vsel %vm2049_vm11, nan, %v3730_v46  ;;  %5217 = vsinq.f32 %v1942_v47  ;;  %v3617_v9 = vadd.s32 3, %v7128_v35 }
 0x313   :  { %4643 = vmatprep.subr.mxu0 %v3731_v32  ;;  %v2059_v54 = vsel %vm2049_vm11, nan, %v2058_v31  ;;  %v1817_v19 = vsub.s32 0, %v7202_v14  ;;  %v7212_v53 = vmul.u32.u64.low %v1696_v7, %v1695_v22  ;;  %v7213_v6 = vmul.u32.u64.high %v1696_v7, %v1695_v22, %v7212_v53 }
 0x314   :  { %v1576_v40 = vor.u32 %v7980_v42, %v7979_v37  ;;  %v7219_v41 = vshrl.u32 %v7933_v23, %v7981_v59  ;;  %4644 = vmatpush1.msra.mxu0 %v2059_v54  ;;  %v1687_v30 = vsel %vm1681_vm0, %v1684_v25, %v1686_v27  ;;  %v1706_v61 = vadd.s32 1, %v7179_v49  ;;  %v7990_v54 = vld [vmem:[#allocation26_spill] sm:$0xff] }
 0x315   :  { %v1370_v43 = vor.u32 %v7983_v20, %v7982_v15  ;;  %v7227_v1 = vor.u32 %v7984_v5, %v1468_v34  ;;  %v4739_v56 = vmin.u32 %v1817_v19, %v7202_v14  ;;  %v7849_v3 = vand.u32 2147483647, %v7985_v17 }
 0x316   :  { %vm1580_vm9 = vcmp.lt.s32.totalorder %v7986_v57, 4  ;;  %v7234_v62 = vshll.u32 %v7935_v18, %v7978_v39  ;;  %v3618_v13 = vand.u32 3, %v3617_v9  ;;  %v1947_v25 = vand.u32 3, %v7128_v35 }
 0x317   :  { %vm1477_vm4 = vcmp.lt.s32.totalorder %v7987_v50, 4  ;;  %v1819_v58 = vclz %v4739_v56  ;;  %v1703_v2 = vmul.u32 %v1696_v7, %v1687_v30  ;;  %vm1705_vm3 = vc.u32 %v7213_v6, %v7178_v4 }
 0x318   :  { %v1586_v29 = vsel %vm1580_vm9, %v7988_v21, 920167782  ;;  %v7245_v26 = vsel %vm1580_vm9, %v1576_v40, 1326507024  ;;  %v1473_v60 = vor.u32 %v7219_v41, %v7234_v62  ;;  %v1707_v35 = vsel %vm1705_vm3, %v1706_v61, %v7179_v49  ;;  %v7991_v62 = vld [vmem:[#allocation18_spill] sm:$0xff] }
 0x319   :  { %v7253_v7 = vsel %vm1477_vm4, %v7227_v1, 920167782  ;;  %v4740_v27 = vadd.s32 4294967294, %v1819_v58  ;;  %v1708_v38 = vadd.s32 %v1707_v35, %v1703_v2  ;;  %v7257_v0 = vand.u32 8388607, %v7849_v3 }
 0x31a   :  { %vm3619_vm6 = vcmp.lt.s32.totalorder %v3618_v13, 2  ;;  %vm3620_vm5 = vcmp.eq.s32.totalorder %v3618_v13, 0  ;;  %vm3623_vm12 = vcmp.eq.s32.totalorder %v3618_v13, 2  ;;  %vm1948_vm7 = vcmp.lt.s32.totalorder %v1947_v25, 2 }
 0x31b   :  { %vm1949_vm8 = vcmp.eq.s32.totalorder %v1947_v25, 0  ;;  %vm1952_vm15 = vcmp.eq.s32.totalorder %v1947_v25, 2  ;;  %vm1946_vm14 = vweird.f32 %v7960_v48  ;;  %v1807_v49 = vadd.s32 %v7107_v63, %v7095_v52 }
 0x31c   :  { %vm4741_vm2 = vcmp.lt.s32.totalorder %v4740_v27, 0  ;;  %v1837_v12 = vsub.s32 4, %v7172_v24  ;;  %v1709_v45 = vadd.s32 536870912, %v1708_v38  ;;  %v1563_v47 = vshrl.u32 %v7914_v28, %v7989_v55 }
 0x31d   :  { %v1822_v51 = vsel %vm4741_vm2, 0, %v4740_v27  ;;  %v1566_v22 = vshrl.u32 %v7915_v33, %v7989_v55  ;;  %v1569_v46 = vshrl.u32 %v7893_v8, %v7989_v55  ;;  %v1553_v52 = vor.u32 8388608, %v7257_v0 }
 0x31e   :  { %v1823_v31 = vsub.s32 32, %v1822_v51  ;;  %v1827_v34 = vsub.s32 4294967266, %v1822_v51  ;;  %v7269_v32 = vshrl.u32 %v1709_v45, 30  ;;  %v5216_v63 = vpop.eup %5215  ;;  %v1824_v9 = vshll.u32 %v7202_v14, %v1822_v51 }
 0x31f   :  { %v1562_v19 = vshll.u32 %v7913_v10, %v7990_v54  ;;  %v1565_v53 = vshll.u32 %v7914_v28, %v7990_v54  ;;  %v1568_v37 = vshll.u32 %v7915_v33, %v7990_v54  ;;  %v5218_v42 = vpop.eup %5217  ;;  %v1953_v40 = vxor.u32 2147483648, %v5216_v63 }
 0x320   :  { %v1825_v30 = vshrl.u32 %v1807_v49, %v1823_v31  ;;  %v1828_v61 = vadd.s32 127, %v1827_v34  ;;  %v1711_v5 = vshll.u32 %v7269_v32, 30  ;;  %v1950_v56 = vxor.u32 2147483648, %v5218_v42 }
 0x321   :  { %v1564_v58 = vor.u32 %v1563_v47, %v1562_v19  ;;  %v1567_v2 = vor.u32 %v1566_v22, %v1565_v53  ;;  %v1570_v35 = vor.u32 %v1569_v46, %v1568_v37  ;;  %v3625_v14 = vsel %vm3623_vm12, %v1953_v40, %v5218_v42 }
 0x322   :  { %v1954_v27 = vsel %vm1952_vm15, %v1953_v40, %v5218_v42  ;;  %v1826_v0 = vor.u32 %v1825_v30, %v1824_v9  ;;  %v1829_v45 = vshll.u32 %v1828_v61, 23  ;;  %v3622_v51 = vsel %vm3620_vm5, %v5216_v63, %v1950_v56 }
 0x323   :  { %v1951_v54 = vsel %vm1949_vm8, %v5216_v63, %v1950_v56  ;;  %v7284_v3 = vsub.s32 %v1708_v38, %v1711_v5  ;;  %vm1577_vm10 = vcmp.lt.s32.totalorder %v7986_v57, 1  ;;  %v3626_v49 = vsel %vm3619_vm6, %v3622_v51, %v3625_v14 }
 0x324   :  { %v1955_v47 = vsel %vm1948_vm7, %v1951_v54, %v1954_v27  ;;  %v1830_v22 = vor.u32 4788187, %v1829_v45  ;;  %vm1579_vm11 = vcmp.lt.s32.totalorder %v7986_v57, 3  ;;  %v3627_v46 = vsel %vm1946_vm14, nan, %v3626_v49 }
 0x325   :  { %v1714_v31 = vsub.s32 0, %v7284_v3  ;;  %v1585_v34 = vsel %vm1577_vm10, %v1564_v58, %v1567_v2  ;;  %v1587_v38 = vsel %vm1579_vm11, %v1570_v35, %v1586_v29  ;;  %4645 = vmatprep.subr.mxu0 %v3627_v46  ;;  %v1956_v13 = vsel %vm1946_vm14, nan, %v1955_v47 }
 0x326   :  { %vm1753_vm13 = vcmp.lt.s32.totalorder %v7972_v16, 0  ;;  %v1831_v25 = vand.u32 2147483647, %v1830_v22  ;;  %v1833_v63 = vcvt.s32.f32 %v1826_v0  ;;  %4646 = vmatpush1.msra.mxu0 %v1956_v13  ;;  %vm1578_vm0 = vcmp.lt.s32.totalorder %v7986_v57, 2 }
 0x327   :  { %v1838_v9 = vsel %vm1753_vm13, %v1837_v12, %v7172_v24  ;;  %v4735_v19 = vmin.u32 %v1714_v31, %v7284_v3  ;;  %v1582_v29 = vsel %vm1580_vm9, %v1570_v35, 2102212464  ;;  %v1561_v48 = vshrl.u32 %v7913_v10, %v7989_v55 }
 0x328   :  { %v1834_v53 = vmul.f32 %v1833_v63, %v1831_v25  ;;  %v1588_v37 = vsel %vm1578_vm0, %v1585_v34, %v1587_v38  ;;  %v1589_v42 = vsel %vm1577_vm10, %v1567_v2, %v1570_v35  ;;  %vm1752_vm1 = vcmp.le.f32.partialorder %v1751_v36, 0.7853982 }
 0x329   :  { %v1716_v24 = vclz %v4735_v19  ;;  %v1591_v12 = vsel %vm1579_vm11, %v7988_v21, %v7245_v26  ;;  %v1593_v40 = vshll.u32 %v1553_v52, 8  ;;  %v1840_v61 = vsel %vm1752_vm1, 0, %v1838_v9 }
 0x32a   :  { %v1835_v30 = vxor.u32 2147483648, %v1834_v53  ;;  %v1581_v55 = vsel %vm1577_vm10, %v1561_v48, %v1564_v58  ;;  %v1583_v5 = vsel %vm1579_vm11, %v1567_v2, %v1582_v29  ;;  %v1592_v35 = vsel %vm1578_vm0, %v1589_v42, %v1591_v12 }
 0x32b   :  { %v4736_v56 = vadd.s32 4294967294, %v1716_v24  ;;  %v7325_v36 = vmul.u32.u64.low %v1593_v40, %v1588_v37  ;;  %v7326_v14 = vmul.u32.u64.high %v1593_v40, %v1588_v37, %v7325_v36  ;;  %v1487_v21 = vsel %vm1477_vm4, %v1473_v60, 1326507024 }
 0x32c   :  { %v1836_v26 = vsel %vm1753_vm13, %v1835_v30, %v1834_v53  ;;  %v7336_v52 = vmul.u32.u64.low %v1593_v40, %v1592_v35  ;;  %v7337_v58 = vmul.u32.u64.high %v1593_v40, %v1592_v35, %v7336_v52  ;;  %v3513_v27 = vadd.s32 3, %v1840_v61 }
 0x32d   :  { %v1839_v2 = vsel %vm1752_vm1, %v7972_v16, %v1836_v26  ;;  %vm1650_vm9 = vcmp.lt.s32.totalorder %v7975_v11, 0  ;;  %vm4737_vm3 = vcmp.lt.s32.totalorder %v4736_v56, 0  ;;  %v1584_v41 = vsel %vm1578_vm0, %v1581_v55, %v1583_v5 }
 0x32e   :  { %5219 = vcosq.f32 %v1839_v2  ;;  %v1719_v0 = vsel %vm4737_vm3, 0, %v4736_v56  ;;  %v1442_v45 = vand.u32 2147483647, %v7991_v62  ;;  %vm7346_vm6 = vcmp.le.f32.partialorder %v1648_v44, 0.7853982 }
 0x32f   :  { %5221 = vsinq.f32 %v1839_v2  ;;  %v1704_v51 = vadd.s32 %v7178_v4, %v7213_v6  ;;  %v1720_v54 = vsub.s32 32, %v1719_v0  ;;  %v1724_v49 = vsub.s32 4294967266, %v1719_v0  ;;  %v7994_v2 = vld [vmem:[#allocation28_spill] sm:$0xff] }
 0x330   :  { %v7352_v47 = vand.u32 3, %v1840_v61  ;;  %v1734_v22 = vsub.s32 4, %v7269_v32  ;;  %vm1602_vm5 = vc.u32 %v7337_v58, %v7325_v36  ;;  %v1603_v57 = vadd.s32 1, %v7326_v14 }
 0x331   :  { %v1721_v46 = vshll.u32 %v7284_v3, %v1719_v0  ;;  %v1722_v44 = vshrl.u32 %v1704_v51, %v1720_v54  ;;  %v1725_v31 = vadd.s32 127, %v1724_v49  ;;  %v1600_v34 = vmul.u32 %v1593_v40, %v1584_v41 }
 0x332   :  { %v1604_v38 = vsel %vm1602_vm5, %v1603_v57, %v7326_v14  ;;  %v1449_v4 = vand.u32 8388607, %v1442_v45  ;;  %v1462_v6 = vshll.u32 %v7914_v28, %v7978_v39  ;;  %v1463_v13 = vshrl.u32 %v7915_v33, %v7981_v59 }
 0x333   :  { %v3514_v25 = vand.u32 3, %v3513_v27  ;;  %v1723_v63 = vor.u32 %v1722_v44, %v1721_v46  ;;  %v1726_v9 = vshll.u32 %v1725_v31, 23  ;;  %v1605_v19 = vadd.s32 %v1604_v38, %v1600_v34 }
 0x334   :  { %v1460_v3 = vshrl.u32 %v7914_v28, %v7981_v59  ;;  %v7368_v29 = vor.u32 %v1463_v13, %v1462_v6  ;;  %v1465_v53 = vshll.u32 %v7915_v33, %v7978_v39  ;;  %v1466_v48 = vshrl.u32 %v7893_v8, %v7981_v59 }
 0x335   :  { %v1727_v37 = vor.u32 4788187, %v1726_v9  ;;  %v1735_v42 = vsel %vm1650_vm9, %v1734_v22, %v7269_v32  ;;  %v1606_v24 = vadd.s32 536870912, %v1605_v19  ;;  %v1459_v12 = vshll.u32 %v7913_v10, %v7978_v39 }
 0x336   :  { %vm1846_vm12 = vcmp.eq.s32.totalorder %v7352_v47, 0  ;;  %v1730_v40 = vcvt.s32.f32 %v1723_v63  ;;  %v1450_v30 = vor.u32 8388608, %v1449_v4  ;;  %v1467_v61 = vor.u32 %v1466_v48, %v1465_v53  ;;  %v7995_v53 = vld [vmem:[#allocation35_spill] sm:$0xff] }
 0x337   :  { %vm1476_vm7 = vcmp.lt.s32.totalorder %v7987_v50, 3  ;;  %vm1845_vm8 = vcmp.lt.s32.totalorder %v7352_v47, 2  ;;  %v1728_v55 = vand.u32 2147483647, %v1727_v37  ;;  %v7382_v5 = vshrl.u32 %v1606_v24, 30 }
 0x338   :  { %vm1474_vm15 = vcmp.lt.s32.totalorder %v7987_v50, 1  ;;  %v1488_v32 = vsel %vm1476_vm7, %v7227_v1, %v1487_v21  ;;  %vm1843_vm14 = vweird.f32 %v7972_v16  ;;  %vm1849_vm2 = vcmp.eq.s32.totalorder %v7352_v47, 2  ;;  %v7996_v16 = vld [vmem:[#allocation39_spill] sm:$0xff] }
 0x339   :  { %v1737_v39 = vsel %vm7346_vm6, 0, %v1735_v42  ;;  %v1461_v56 = vor.u32 %v1460_v3, %v1459_v12  ;;  %v1486_v35 = vsel %vm1474_vm15, %v7368_v29, %v1467_v61  ;;  %vm3515_vm10 = vcmp.lt.s32.totalorder %v3514_v25, 2 }
 0x33a   :  { %v1731_v14 = vmul.f32 %v1730_v40, %v1728_v55  ;;  %v1608_v26 = vshll.u32 %v7382_v5, 30  ;;  %vm1475_vm11 = vcmp.lt.s32.totalorder %v7987_v50, 2  ;;  %vm3516_vm13 = vcmp.eq.s32.totalorder %v3514_v25, 0 }
 0x33b   :  { %vm3519_vm0 = vcmp.eq.s32.totalorder %v3514_v25, 2  ;;  %v1489_v1 = vsel %vm1475_vm11, %v1486_v35, %v1488_v32  ;;  %v7399_v21 = vshll.u32 %v1450_v30, 8  ;;  %v5220_v52 = vpop.eup %5219  ;;  %vm1374_vm1 = vcmp.lt.s32.totalorder %v7994_v2, 4 }
 0x33c   :  { %v1732_v27 = vxor.u32 2147483648, %v1731_v14  ;;  %v3409_v0 = vadd.s32 3, %v1737_v39  ;;  %v7402_v41 = vsub.s32 %v1605_v19, %v1608_v26  ;;  %v1458_v51 = vshrl.u32 %v7913_v10, %v7981_v59  ;;  %v5222_v54 = vpop.eup %5221 }
 0x33d   :  { %v1850_v49 = vxor.u32 2147483648, %v5220_v52  ;;  %v1482_v22 = vsel %vm1474_vm15, %v1461_v56, %v7368_v29  ;;  %v7410_v57 = vmul.u32.u64.low %v7399_v21, %v1489_v1  ;;  %v7411_v46 = vmul.u32.u64.high %v7399_v21, %v1489_v1, %v7410_v57 }
 0x33e   :  { %v1847_v44 = vxor.u32 2147483648, %v5222_v54  ;;  %v1733_v31 = vsel %vm1650_vm9, %v1732_v27, %v1731_v14  ;;  %v1611_v34 = vsub.s32 0, %v7402_v41  ;;  %v1484_v59 = vsel %vm1476_vm7, %v1467_v61, %v7253_v7 }
 0x33f   :  { %v3521_v38 = vsel %vm3519_vm0, %v1850_v49, %v5222_v54  ;;  %v1851_v4 = vsel %vm1849_vm2, %v1850_v49, %v5222_v54  ;;  %v1736_v6 = vsel %vm7346_vm6, %v7975_v11, %v1733_v31  ;;  %v1479_v13 = vsel %vm1477_vm4, %v1467_v61, 2102212464 }
 0x340   :  { %v3518_v63 = vsel %vm3516_vm13, %v5220_v52, %v1847_v44  ;;  %v1848_v9 = vsel %vm1846_vm12, %v5220_v52, %v1847_v44  ;;  %5223 = vcosq.f32 %v1736_v6  ;;  %v4731_v7 = vmin.u32 %v1611_v34, %v7402_v41 }
 0x341   :  { %v3522_v19 = vsel %vm3515_vm10, %v3518_v63, %v3521_v38  ;;  %v1852_v3 = vsel %vm1845_vm8, %v1848_v9, %v1851_v4  ;;  %5225 = vsinq.f32 %v1736_v6  ;;  %v1485_v60 = vsel %vm1475_vm11, %v1482_v22, %v1484_v59  ;;  %v8002_v22 = vld [vmem:[#allocation25_spill] sm:$0xff] }
 0x342   :  { %v7438_v48 = vshrl.u32 %v7935_v18, %v7995_v53  ;;  %v3523_v37 = vsel %vm1843_vm14, nan, %v3522_v19  ;;  %v7442_v42 = vand.u32 3, %v1737_v39  ;;  %v1613_v24 = vclz %v4731_v7 }
 0x343   :  { %4647 = vmatprep.subr.mxu0 %v3523_v37  ;;  %v1853_v25 = vsel %vm1843_vm14, nan, %v1852_v3  ;;  %v7446_v47 = vand.u32 3, %v3409_v0  ;;  %v1478_v12 = vsel %vm1474_vm15, %v1458_v51, %v1461_v56  ;;  %v1480_v18 = vsel %vm1476_vm7, %v7368_v29, %v1479_v13  ;;  %v7997_v56 = vld [vmem:[#allocation15_spill] sm:$0xff] }
 0x344   :  { %4648 = vmatpush1.msra.mxu0 %v1853_v25  ;;  %v4732_v40 = vadd.s32 4294967294, %v1613_v24  ;;  %v1631_v30 = vsub.s32 4, %v7382_v5  ;;  %v7455_v61 = vmul.u32.u64.low %v7399_v21, %v1485_v60  ;;  %v7456_v55 = vmul.u32.u64.high %v7399_v21, %v1485_v60, %v7455_v61  ;;  %v8001_v0 = vld [vmem:[#allocation27_spill] sm:$0xff] }
 0x345   :  { %v7462_v32 = vsel %vm1374_vm1, %v7996_v16, 920167782  ;;  %v7469_v29 = vsel %vm1374_vm1, %v1370_v43, 1326507024  ;;  %v7473_v39 = vshrl.u32 %v7933_v23, %v7995_v53  ;;  %v1339_v35 = vand.u32 2147483647, %v7997_v56 }
 0x346   :  { %v7998_v14 = vand.u32 2147483647, %v7985_v17  ;;  %vm1547_vm9 = vcmp.lt.s32.totalorder %v7985_v17, 0  ;;  %vm4733_vm3 = vcmp.lt.s32.totalorder %v4732_v40, 0  ;;  %v1481_v15 = vsel %vm1475_vm11, %v1478_v12, %v1480_v18 }
 0x347   :  { %vm1746_vm6 = vcmp.eq.s32.totalorder %v7442_v42, 2  ;;  %v1601_v23 = vadd.s32 %v7325_v36, %v7337_v58  ;;  %v1616_v20 = vsel %vm4733_vm3, 0, %v4732_v40  ;;  %vm1499_vm5 = vc.u32 %v7411_v46, %v7455_v61 }
 0x348   :  { %vm7478_vm4 = vcmp.le.f32.partialorder %v7998_v14, 0.7853982  ;;  %vm3412_vm12 = vcmp.eq.s32.totalorder %v7446_v47, 0  ;;  %vm1743_vm7 = vcmp.eq.s32.totalorder %v7442_v42, 0  ;;  %v1617_v43 = vsub.s32 32, %v1616_v20 }
 0x349   :  { %v1621_v1 = vsub.s32 4294967266, %v1616_v20  ;;  %v1632_v50 = vsel %vm1547_vm9, %v1631_v30, %v7382_v5  ;;  %v1500_v52 = vadd.s32 1, %v7456_v55  ;;  %vm3411_vm8 = vcmp.lt.s32.totalorder %v7446_v47, 2 }
 0x34a   :  { %vm1742_vm15 = vcmp.lt.s32.totalorder %v7442_v42, 2  ;;  %v1618_v36 = vshll.u32 %v7402_v41, %v1616_v20  ;;  %v1497_v58 = vmul.u32 %v7399_v21, %v1481_v15  ;;  %v1346_v27 = vand.u32 8388607, %v1339_v35 }
 0x34b   :  { %v1357_v51 = vshrl.u32 %v7914_v28, %v8001_v0  ;;  %vm1740_vm14 = vweird.f32 %v7975_v11  ;;  %v1619_v54 = vshrl.u32 %v1601_v23, %v1617_v43  ;;  %v1622_v5 = vadd.s32 127, %v1621_v1 }
 0x34c   :  { %v1501_v49 = vsel %vm1499_vm5, %v1500_v52, %v7456_v55  ;;  %v1360_v41 = vshrl.u32 %v7915_v33, %v8001_v0  ;;  %vm3415_vm2 = vcmp.eq.s32.totalorder %v7446_v47, 2  ;;  %v1356_v57 = vshll.u32 %v7913_v10, %v8002_v22 }
 0x34d   :  { %v1502_v21 = vadd.s32 %v1501_v49, %v1497_v58  ;;  %v1363_v44 = vshrl.u32 %v7893_v8, %v8001_v0  ;;  %v1620_v31 = vor.u32 %v1619_v54, %v1618_v36  ;;  %v1623_v34 = vshll.u32 %v1622_v5, 23  ;;  %v5224_v4 = vpop.eup %5223 }
 0x34e   :  { %v1634_v59 = vsel %vm7478_vm4, 0, %v1632_v50  ;;  %v1359_v38 = vshll.u32 %v7914_v28, %v8002_v22  ;;  %v1347_v13 = vor.u32 8388608, %v1346_v27  ;;  %v1358_v63 = vor.u32 %v1357_v51, %v1356_v57  ;;  %v5226_v7 = vpop.eup %5225  ;;  %v8003_v27 = vld [vmem:[#allocation37_spill] sm:$0xff] }
 0x34f   :  { %v1503_v6 = vadd.s32 536870912, %v1502_v21  ;;  %v1362_v9 = vshll.u32 %v7915_v33, %v8002_v22  ;;  %v1747_v19 = vxor.u32 2147483648, %v5224_v4  ;;  %v1624_v3 = vor.u32 4788187, %v1623_v34 }
 0x350   :  { %v1361_v60 = vor.u32 %v1360_v41, %v1359_v38  ;;  %vm1371_vm10 = vcmp.lt.s32.totalorder %v7994_v2, 1  ;;  %v1744_v37 = vxor.u32 2147483648, %v5226_v7  ;;  %vm1372_vm11 = vcmp.lt.s32.totalorder %v7994_v2, 2 }
 0x351   :  { %v7523_v24 = vshrl.u32 %v1503_v6, 30  ;;  %v1364_v25 = vor.u32 %v1363_v44, %v1362_v9  ;;  %v3417_v12 = vsel %vm3415_vm2, %v1747_v19, %v5226_v7  ;;  %v1748_v18 = vsel %vm1746_vm6, %v1747_v19, %v5226_v7  ;;  %v8005_v6 = vld [vmem:[#allocation33_spill] sm:$0xff] }
 0x352   :  { %v1625_v40 = vand.u32 2147483647, %v1624_v3  ;;  %v1627_v30 = vcvt.s32.f32 %v1620_v31  ;;  %v3414_v55 = vsel %vm3412_vm12, %v5224_v4, %v1744_v37  ;;  %v1745_v14 = vsel %vm1743_vm7, %v5224_v4, %v1744_v37  ;;  %v8004_v31 = vld [vmem:[#allocation40_spill] sm:$0xff] }
 0x353   :  { %v1505_v15 = vshll.u32 %v7523_v24, 30  ;;  %vm1373_vm13 = vcmp.lt.s32.totalorder %v7994_v2, 3  ;;  %v3418_v23 = vsel %vm3411_vm8, %v3414_v55, %v3417_v12  ;;  %v1749_v20 = vsel %vm1742_vm15, %v1745_v14, %v1748_v18  ;;  %v8007_v12 = vld [vmem:[#allocation29_spill] sm:$0xff] }
 0x354   :  { %v1628_v43 = vmul.f32 %v1627_v30, %v1625_v40  ;;  %v1385_v1 = vsel %vm1373_vm13, %v7996_v16, %v7469_v29  ;;  %v3419_v50 = vsel %vm1740_vm14, nan, %v3418_v23  ;;  %v1379_v36 = vsel %vm1371_vm10, %v1358_v63, %v1361_v60 }
 0x355   :  { %v7546_v52 = vsub.s32 %v1502_v21, %v1505_v15  ;;  %v1381_v47 = vsel %vm1373_vm13, %v1364_v25, %v7462_v32  ;;  %4649 = vmatprep.subr.mxu0 %v3419_v50  ;;  %v1750_v42 = vsel %vm1740_vm14, nan, %v1749_v20  ;;  %v1383_v16 = vsel %vm1371_vm10, %v1361_v60, %v1364_v25 }
 0x356   :  { %v1629_v58 = vxor.u32 2147483648, %v1628_v43  ;;  %v1387_v29 = vshll.u32 %v1347_v13, 8  ;;  %v7559_v51 = vor.u32 %v7438_v48, %v8003_v27  ;;  %4650 = vmatpush1.msra.mxu0 %v1750_v42  ;;  %v3305_v54 = vadd.s32 3, %v1634_v59 }
 0x357   :  { %v1508_v5 = vsub.s32 0, %v7546_v52  ;;  %v1386_v32 = vsel %vm1372_vm11, %v1383_v16, %v1385_v1  ;;  %v1376_v49 = vsel %vm1374_vm1, %v1364_v25, 2102212464  ;;  %v1355_v57 = vshrl.u32 %v7913_v10, %v8001_v0  ;;  %v8006_v0 = vld [vmem:[#allocation16_spill] sm:$0xff] }
 0x358   :  { %v1630_v11 = vsel %vm1547_vm9, %v1629_v58, %v1628_v43  ;;  %v7568_v41 = vmul.u32.u64.low %v1387_v29, %v1386_v32  ;;  %v7569_v21 = vmul.u32.u64.high %v1387_v29, %v1386_v32, %v7568_v41  ;;  %v1382_v44 = vsel %vm1372_vm11, %v1379_v36, %v1381_v47 }
 0x359   :  { %v1633_v48 = vsel %vm7478_vm4, %v7985_v17, %v1630_v11  ;;  %v4727_v22 = vmin.u32 %v1508_v5, %v7546_v52  ;;  %v1267_v34 = vor.u32 %v7473_v39, %v8004_v31  ;;  %v1375_v4 = vsel %vm1371_vm10, %v1355_v57, %v1358_v63 }
 0x35a   :  { %5227 = vcosq.f32 %v1633_v48  ;;  %v1377_v26 = vsel %vm1373_vm13, %v1361_v60, %v1376_v49  ;;  %vm1271_vm0 = vcmp.lt.s32.totalorder %v8005_v6, 4  ;;  %v1236_v7 = vand.u32 2147483647, %v8006_v0 }
 0x35b   :  { %5229 = vsinq.f32 %v1633_v48  ;;  %v1510_v38 = vclz %v4727_v22  ;;  %v7586_v13 = vmul.u32.u64.low %v1387_v29, %v1382_v44  ;;  %v7587_v9 = vmul.u32.u64.high %v1387_v29, %v1382_v44, %v7586_v13 }
 0x35c   :  { %v1277_v39 = vsel %vm1271_vm0, %v7559_v51, 920167782  ;;  %v7594_v19 = vand.u32 3, %v3305_v54  ;;  %v7596_v3 = vand.u32 3, %v1634_v59  ;;  %v1281_v60 = vsel %vm1271_vm0, %v1267_v34, 1326507024 }
 0x35d   :  { %v4728_v63 = vadd.s32 4294967294, %v1510_v38  ;;  %v1498_v37 = vadd.s32 %v7455_v61, %v7411_v46  ;;  %v1378_v25 = vsel %vm1372_vm11, %v1375_v4, %v1377_v26  ;;  %v1253_v18 = vshll.u32 %v7913_v10, %v8007_v12 }
 0x35e   :  { %vm1396_vm4 = vc.u32 %v7569_v21, %v7586_v13  ;;  %v1254_v59 = vshrl.u32 %v7914_v28, %v7995_v53  ;;  %v1257_v40 = vshrl.u32 %v7915_v33, %v7995_v53  ;;  %v1397_v55 = vadd.s32 1, %v7587_v9 }
 0x35f   :  { %vm4729_vm1 = vcmp.lt.s32.totalorder %v4728_v63, 0  ;;  %v1243_v2 = vand.u32 8388607, %v1236_v7  ;;  %v1256_v46 = vshll.u32 %v7914_v28, %v8007_v12  ;;  %vm3311_vm9 = vcmp.eq.s32.totalorder %v7594_v19, 2 }
 0x360   :  { %v1513_v30 = vsel %vm4729_vm1, 0, %v4728_v63  ;;  %vm1643_vm3 = vcmp.eq.s32.totalorder %v7596_v3, 2  ;;  %v1394_v15 = vmul.u32 %v1387_v29, %v1378_v25  ;;  %v1259_v23 = vshll.u32 %v7915_v33, %v8007_v12 }
 0x361   :  { %v1514_v61 = vsub.s32 32, %v1513_v30  ;;  %v1518_v14 = vsub.s32 4294967266, %v1513_v30  ;;  %vm3308_vm6 = vcmp.eq.s32.totalorder %v7594_v19, 0  ;;  %vm1640_vm5 = vcmp.eq.s32.totalorder %v7596_v3, 0 }
 0x362   :  { %v1398_v20 = vsel %vm1396_vm4, %v1397_v55, %v7587_v9  ;;  %v1255_v43 = vor.u32 %v1254_v59, %v1253_v18  ;;  %v1258_v1 = vor.u32 %v1257_v40, %v1256_v46  ;;  %v1260_v28 = vshrl.u32 %v7893_v8, %v7995_v53 }
 0x363   :  { %vm3307_vm12 = vcmp.lt.s32.totalorder %v7594_v19, 2  ;;  %vm1639_vm7 = vcmp.lt.s32.totalorder %v7596_v3, 2  ;;  %v1515_v50 = vshll.u32 %v7546_v52, %v1513_v30  ;;  %v1516_v36 = vshrl.u32 %v1498_v37, %v1514_v61 }
 0x364   :  { %v1519_v47 = vadd.s32 127, %v1518_v14  ;;  %v1399_v33 = vadd.s32 %v1398_v20, %v1394_v15  ;;  %vm1637_vm8 = vweird.f32 %v7985_v17  ;;  %v1244_v42 = vor.u32 8388608, %v1243_v2 }
 0x365   :  { %v1261_v58 = vor.u32 %v1260_v28, %v1259_v23  ;;  %vm1268_vm15 = vcmp.lt.s32.totalorder %v8005_v6, 1  ;;  %vm1270_vm14 = vcmp.lt.s32.totalorder %v8005_v6, 3  ;;  %v1517_v16 = vor.u32 %v1516_v36, %v1515_v50 }
 0x366   :  { %v1520_v29 = vshll.u32 %v1519_v47, 23  ;;  %v1400_v8 = vadd.s32 536870912, %v1399_v33  ;;  %v1282_v27 = vsel %vm1270_vm14, %v7559_v51, %v1281_v60  ;;  %v1252_v52 = vshrl.u32 %v7913_v10, %v7995_v53 }
 0x367   :  { %v1276_v54 = vsel %vm1268_vm15, %v1255_v43, %v1258_v1  ;;  %v1278_v5 = vsel %vm1270_vm14, %v1261_v58, %v1277_v39  ;;  %v1280_v32 = vsel %vm1268_vm15, %v1258_v1, %v1261_v58  ;;  %v5228_v11 = vpop.eup %5227  ;;  %vm1269_vm2 = vcmp.lt.s32.totalorder %v8005_v6, 2 }
 0x368   :  { %v1521_v49 = vor.u32 4788187, %v1520_v29  ;;  %v7643_v41 = vshrl.u32 %v1400_v8, 30  ;;  %v1273_v51 = vsel %vm1271_vm0, %v1261_v58, 2102212464  ;;  %v5230_v48 = vpop.eup %5229  ;;  %v1644_v10 = vxor.u32 2147483648, %v5228_v11 }
 0x369   :  { %v1524_v53 = vcvt.s32.f32 %v1517_v16  ;;  %v1283_v22 = vsel %vm1269_vm2, %v1280_v32, %v1282_v27  ;;  %v1284_v57 = vshll.u32 %v1244_v42, 8  ;;  %v1641_v44 = vxor.u32 2147483648, %v5230_v48 }
 0x36a   :  { %v1522_v31 = vand.u32 2147483647, %v1521_v49  ;;  %v1402_v34 = vshll.u32 %v7643_v41, 30  ;;  %v1279_v38 = vsel %vm1269_vm2, %v1276_v54, %v1278_v5  ;;  %v3313_v4 = vsel %vm3311_vm9, %v1644_v10, %v5230_v48 }
 0x36b   :  { %v1645_v26 = vsel %vm1643_vm3, %v1644_v10, %v5230_v48  ;;  %v7657_v9 = vmul.u32.u64.low %v1284_v57, %v1283_v22  ;;  %v7658_v39 = vmul.u32.u64.high %v1284_v57, %v1283_v22, %v7657_v9  ;;  %v3310_v63 = vsel %vm3308_vm6, %v5228_v11, %v1641_v44 }
 0x36c   :  { %v1642_v60 = vsel %vm1640_vm5, %v5228_v11, %v1641_v44  ;;  %v1525_v37 = vmul.f32 %v1524_v53, %v1522_v31  ;;  %v1403_v25 = vsub.s32 %v1399_v33, %v1402_v34  ;;  %v3314_v12 = vsel %vm3307_vm12, %v3310_v63, %v3313_v4 }
 0x36d   :  { %v1646_v18 = vsel %vm1639_vm7, %v1642_v60, %v1645_v26  ;;  %vm1444_vm10 = vcmp.lt.s32.totalorder %v7991_v62, 0  ;;  %v1272_v59 = vsel %vm1268_vm15, %v1252_v52, %v1255_v43  ;;  %v3315_v40 = vsel %vm1637_vm8, nan, %v3314_v12 }
 0x36e   :  { %v1526_v30 = vxor.u32 2147483648, %v1525_v37  ;;  %v1405_v55 = vsub.s32 0, %v1403_v25  ;;  %v1274_v2 = vsel %vm1270_vm14, %v1258_v1, %v1273_v51  ;;  %4651 = vmatprep.subr.mxu0 %v3315_v40  ;;  %v1647_v19 = vsel %vm1637_vm8, nan, %v1646_v18 }
 0x36f   :  { %v1528_v3 = vsub.s32 4, %v7523_v24  ;;  %v7678_v46 = vmul.u32.u64.low %v1284_v57, %v1279_v38  ;;  %v7679_v61 = vmul.u32.u64.high %v1284_v57, %v1279_v38, %v7678_v46  ;;  %4652 = vmatpush1.msra.mxu0 %v1647_v19  ;;  %vm7684_vm11 = vcmp.le.f32.partialorder %v1442_v45, 0.7853982 }
 0x370   :  { %v1527_v15 = vsel %vm1444_vm10, %v1526_v30, %v1525_v37  ;;  %v4723_v23 = vmin.u32 %v1405_v55, %v1403_v25  ;;  %v1275_v20 = vsel %vm1269_vm2, %v1272_v59, %v1274_v2  ;;  %v5332_v45 = vmov 0.0  }
 0x371   :  { %v1530_v17 = vsel %vm7684_vm11, %v7991_v62, %v1527_v15  ;;  %vm1293_vm13 = vc.u32 %v7658_v39, %v7678_v46  ;;  %4691 = vmatprep.mubr.f32.mxu0 %v5332_v45  ;;  %v1529_v1 = vsel %vm1444_vm10, %v1528_v3, %v7523_v24  ;;  %v1294_v28 = vadd.s32 1, %v7679_v61 }
 0x372   :  { %5231 = vcosq.f32 %v1530_v17  ;;  %v1407_v43 = vclz %v4723_v23  ;;  %v1291_v36 = vmul.u32 %v1284_v57, %v1275_v20  ;;  %v1531_v6 = vsel %vm7684_vm11, 0, %v1529_v1 }
 0x373   :  { %5233 = vsinq.f32 %v1530_v17  ;;  %v1295_v47 = vsel %vm1293_vm13, %v1294_v28, %v7679_v61  ;;  %v1395_v58 = vadd.s32 %v7586_v13, %v7569_v21  ;;  %v3201_v24 = vadd.s32 3, %v1531_v6 }
 0x374   :  { %v4724_v50 = vadd.s32 4294967294, %v1407_v43  ;;  %v1296_v33 = vadd.s32 %v1295_v47, %v1291_v36  ;;  %v1535_v32 = vand.u32 3, %v1531_v6  ;;  %vm1534_vm1 = vweird.f32 %v7991_v62 }
 0x375   :  { %v3202_v48 = vand.u32 3, %v3201_v24  ;;  %vm1341_vm7 = vcmp.lt.s32.totalorder %v7997_v56, 0  ;;  %v1425_v40 = vsub.s32 4, %v7643_v41  ;;  %vm1340_vm8 = vcmp.le.f32.partialorder %v1339_v35, 0.7853982 }
 0x376   :  { %vm4725_vm0 = vcmp.lt.s32.totalorder %v4724_v50, 0  ;;  %v1297_v8 = vadd.s32 536870912, %v1296_v33  ;;  %vm1537_vm4 = vcmp.eq.s32.totalorder %v1535_v32, 0  ;;  %vm1540_vm6 = vcmp.eq.s32.totalorder %v1535_v32, 2 }
 0x377   :  { %v1410_v42 = vsel %vm4725_vm0, 0, %v4724_v50  ;;  %vm3204_vm9 = vcmp.eq.s32.totalorder %v3202_v48, 0  ;;  %vm3207_vm3 = vcmp.eq.s32.totalorder %v3202_v48, 2  ;;  %vm3203_vm5 = vcmp.lt.s32.totalorder %v3202_v48, 2 }
 0x378   :  { %v1411_v16 = vsub.s32 32, %v1410_v42  ;;  %v1415_v29 = vsub.s32 4294967266, %v1410_v42  ;;  %v1412_v27 = vshll.u32 %v1403_v25, %v1410_v42  ;;  %v7706_v5 = vshrl.u32 %v1297_v8, 30 }
 0x379   :  { %vm1536_vm12 = vcmp.lt.s32.totalorder %v1535_v32, 2  ;;  %v1426_v3 = vsel %vm1341_vm7, %v1425_v40, %v7643_v41  ;;  %v1292_v14 = vadd.s32 %v7678_v46, %v7658_v39  ;;  %vm7725_vm14 = vcmp.le.f32.partialorder %v1236_v7, 0.7853982  ;;  %v4615_v40 = vld [vmem:[%s7757_s4] sm:$0x3] }
 0x37a   :  { %v1413_v52 = vshrl.u32 %v1395_v58, %v1411_v16  ;;  %v1416_v54 = vadd.s32 127, %v1415_v29  ;;  %v1299_v51 = vshll.u32 %v7706_v5, 30  ;;  %v1428_v23 = vsel %vm1340_vm8, 0, %v1426_v3 }
 0x37b   :  { %v3097_v1 = vadd.s32 3, %v1428_v23  ;;  %v1432_v50 = vand.u32 3, %v1428_v23  ;;  %vm1238_vm2 = vcmp.lt.s32.totalorder %v8006_v0, 0  ;;  %v1322_v29 = vsub.s32 4, %v7706_v5 }
 0x37c   :  { %v1414_v11 = vor.u32 %v1413_v52, %v1412_v27  ;;  %v1417_v49 = vshll.u32 %v1416_v54, 23  ;;  %v1300_v53 = vsub.s32 %v1296_v33, %v1299_v51 }
 0x37d   :  { %v3098_v6 = vand.u32 3, %v3097_v1  ;;  %vm1433_vm10 = vcmp.lt.s32.totalorder %v1432_v50, 2  ;;  %vm1434_vm11 = vcmp.eq.s32.totalorder %v1432_v50, 0  ;;  %vm1437_vm0 = vcmp.eq.s32.totalorder %v1432_v50, 2 }
 0x37e   :  { %v1418_v10 = vor.u32 4788187, %v1417_v49  ;;  %v1421_v44 = vcvt.s32.f32 %v1414_v11  ;;  %v1302_v31 = vsub.s32 0, %v1300_v53  ;;  %v1323_v51 = vsel %vm1238_vm2, %v1322_v29, %v7706_v5  ;;  %v4580_v5 = vld [vmem:[%s7754_s1] sm:$0xff] }
 0x37f   :  { %v5232_v22 = vpop.eup %5231  ;;  %vm3103_vm13 = vcmp.eq.s32.totalorder %v3098_v6, 2 }
 0x380   :  { %v5234_v21 = vpop.eup %5233  ;;  %v1541_v13 = vxor.u32 2147483648, %v5232_v22  ;;  %v1419_v57 = vand.u32 2147483647, %v1418_v10  ;;  %v4719_v9 = vmin.u32 %v1302_v31, %v1300_v53  ;;  %v1325_v10 = vsel %vm7725_vm14, 0, %v1323_v51 }
 0x381   :  { %v1538_v34 = vxor.u32 2147483648, %v5234_v21  ;;  %v4581_v31 = vstv %s58_s3 }
 0x382   :  { %v3209_v38 = vsel %vm3207_vm3, %v1541_v13, %v5234_v21  ;;  %v1542_v4 = vsel %vm1540_vm6, %v1541_v13, %v5234_v21  ;;  %v1422_v26 = vmul.f32 %v1421_v44, %v1419_v57  ;;  %v1304_v18 = vclz %v4719_v9 }
 0x383   :  { %v3206_v63 = vsel %vm3204_vm9, %v5232_v22, %v1538_v34  ;;  %v1539_v60 = vsel %vm1537_vm4, %v5232_v22, %v1538_v34  ;;  %vm3099_vm4 = vcmp.lt.s32.totalorder %v3098_v6, 2  ;;  %vm1431_vm9 = vweird.f32 %v7997_v56 }
 0x384   :  { %v3210_v37 = vsel %vm3203_vm5, %v3206_v63, %v3209_v38  ;;  %v1543_v25 = vsel %vm1536_vm12, %v1539_v60, %v1542_v4  ;;  %v1423_v12 = vxor.u32 2147483648, %v1422_v26  ;;  %v4720_v2 = vadd.s32 4294967294, %v1304_v18 }
 0x385   :  { %v3211_v59 = vsel %vm1534_vm1, nan, %v3210_v37  ;;  %v1544_v30 = vsel %vm1534_vm1, nan, %v1543_v25  ;;  %vm3100_vm1 = vcmp.eq.s32.totalorder %v3098_v6, 0  ;;  %v4582_v60 = vmul.f32 %v4581_v31, %v4580_v5 }
 0x386   :  { %4653 = vmatprep.subr.mxu0 %v3211_v59  ;;  %v1424_v55 = vsel %vm1341_vm7, %v1423_v12, %v1422_v26  ;;  %vm4721_vm15 = vcmp.lt.s32.totalorder %v4720_v2, 0  ;;  %v4617_v12 = vlaneseq }
 0x387   :  { %4654 = vmatpush1.msra.mxu0 %v1544_v30  ;;  %v1427_v19 = vsel %vm1340_vm8, %v7997_v56, %v1424_v55  ;;  %v1307_v61 = vsel %vm4721_vm15, 0, %v4720_v2  ;;  %v1329_v56 = vand.u32 3, %v1325_v10  ;;  %vm1328_vm15 = vweird.f32 %v8006_v0 }
 0x388   :  { %5235 = vcosq.f32 %v1427_v19  ;;  %v1308_v15 = vsub.s32 32, %v1307_v61  ;;  %v1312_v62 = vsub.s32 4294967266, %v1307_v61  ;;  %v1309_v17 = vshll.u32 %v1300_v53, %v1307_v61 }
 0x389   :  { %5237 = vsinq.f32 %v1427_v19  ;;  %v2993_v53 = vadd.s32 3, %v1325_v10  ;;  %vm1334_vm6 = vcmp.eq.s32.totalorder %v1329_v56, 2  ;;  %vm1331_vm12 = vcmp.eq.s32.totalorder %v1329_v56, 0 }
 0x38a   :  { %v1310_v20 = vshrl.u32 %v1292_v14, %v1308_v15  ;;  %v1313_v35 = vadd.s32 127, %v1312_v62  ;;  %vm1330_vm8 = vcmp.lt.s32.totalorder %v1329_v56, 2  ;;  %v4618_v18 = vshrl.u32 %v4617_v12, 7 }
 0x38b   :  { %v2994_v22 = vand.u32 3, %v2993_v53 }
 0x38c   :  { %v1311_v43 = vor.u32 %v1310_v20, %v1309_v17  ;;  %v1314_v45 = vshll.u32 %v1313_v35, 23  ;;  %v4619_v59 = vsub.s32 0, %v4618_v18  ;;  %v4623_v30 = vsub.s32 1, %v4618_v18 }
 0x38d   :  { %vm2999_vm3 = vcmp.eq.s32.totalorder %v2994_v22, 2  ;;  %vm2996_vm5 = vcmp.eq.s32.totalorder %v2994_v22, 0  ;;  %vm2995_vm7 = vcmp.lt.s32.totalorder %v2994_v22, 2 }
 0x38e   :  { %v1315_v28 = vor.u32 4788187, %v1314_v45  ;;  %v1318_v47 = vcvt.s32.f32 %v1311_v43  ;;  %v4620_v55 = vrot.slane %v4615_v40, %v4619_v59  ;;  %v4624_v2 = vrot.slane %v4615_v40, %v4623_v30 }
 0x390   :  { %v1316_v36 = vand.u32 2147483647, %v1315_v28 }
 0x392   :  { %v1319_v41 = vmul.f32 %v1318_v47, %v1316_v36 }
 0x394   :  { %v1320_v58 = vxor.u32 2147483648, %v1319_v41 }
 0x395   :  { %v5236_v33 = vpop.eup %5235 }
 0x396   :  { %v5238_v46 = vpop.eup %5237  ;;  %v1438_v42 = vxor.u32 2147483648, %v5236_v33  ;;  %v1321_v7 = vsel %vm1238_vm2, %v1320_v58, %v1319_v41 }
 0x397   :  { %v1435_v16 = vxor.u32 2147483648, %v5238_v46  ;;  %v1324_v54 = vsel %vm7725_vm14, %v8006_v0, %v1321_v7 }
 0x398   :  { %v3105_v8 = vsel %vm3103_vm13, %v1438_v42, %v5238_v46  ;;  %v1439_v24 = vsel %vm1437_vm0, %v1438_v42, %v5238_v46  ;;  %5239 = vcosq.f32 %v1324_v54 }
 0x399   :  { %v3102_v27 = vsel %vm3100_vm1, %v5236_v33, %v1435_v16  ;;  %v1436_v52 = vsel %vm1434_vm11, %v5236_v33, %v1435_v16  ;;  %5241 = vsinq.f32 %v1324_v54 }
 0x39a   :  { %v3106_v32 = vsel %vm3099_vm4, %v3102_v27, %v3105_v8  ;;  %v1440_v11 = vsel %vm1433_vm10, %v1436_v52, %v1439_v24 }
 0x39b   :  { %v3107_v49 = vsel %vm1431_vm9, nan, %v3106_v32  ;;  %v1441_v48 = vsel %vm1431_vm9, nan, %v1440_v11 }
 0x39c   :  { %4655 = vmatprep.subr.mxu0 %v3107_v49 }
 0x39d   :  { %4656 = vmatpush1.msra.mxu0 %v1441_v48 }
 0x3a5   :  { %v5240_v21 = vpop.eup %5239 }
 0x3a6   :  { %v5242_v13 = vpop.eup %5241  ;;  %v1335_v57 = vxor.u32 2147483648, %v5240_v21 }
 0x3a7   :  { %v1332_v44 = vxor.u32 2147483648, %v5242_v13 }
 0x3a8   :  { %v3001_v34 = vsel %vm2999_vm3, %v1335_v57, %v5242_v13  ;;  %v1336_v38 = vsel %vm1334_vm6, %v1335_v57, %v5242_v13 }
 0x3a9   :  { %v2998_v4 = vsel %vm2996_vm5, %v5240_v21, %v1332_v44  ;;  %v1333_v26 = vsel %vm1331_vm12, %v5240_v21, %v1332_v44 }
 0x3aa   :  { %v3002_v9 = vsel %vm2995_vm7, %v2998_v4, %v3001_v34  ;;  %v1337_v63 = vsel %vm1330_vm8, %v1333_v26, %v1336_v38 }
 0x3ab   :  { %v3003_v37 = vsel %vm1328_vm15, nan, %v3002_v9  ;;  %v1338_v25 = vsel %vm1328_vm15, nan, %v1337_v63 }
 0x3ac   :  { %4657 = vmatprep.subr.mxu0 %v3003_v37 }
 0x3ad   :  { %4658 = vmatpush1.msra.mxu0 %v1338_v25 }
 0x3ae   :  { %4692 = vmatmul.mubr.f32.vlgmr.msra.gmra.mxu0 %v4582_v60 }
 0x46e   :  { %v4693_v19 = vpop.f32.mrf.mxu0 }
 0x46f   :  { %v4694_v0 = vadd.f32 %v4693_v19, %v4620_v55 }
 0x470   :  { %v4695_v3 = vpop.f32.mrf.mxu0 }
 0x471   :  { %4698 = vst [vmem:[#allocation10] sm:$0xff] %v4694_v0  ;;  %v4696_v61 = vadd.f32 %v4695_v3, %v4624_v2 }
 0x473   :  { %4699 = vst [vmem:[#allocation10 + $0x8] sm:$0xff] %v4696_v61 }
 0x474   :  { %5306 = shalt.err (!%p5303_p5)
}
 0x475   :  { %4709 = dma.vmem_to_hbm [thread:$0]  %s4707_s11, 256, %s7758_s5, [#allocation5]  }
 0x476   :  { %5321 = dma.done.wait [#allocation5], 256  }
 0x477   :  { %5322 = vsyncadd [#allocation5], 4294967040 }
 0x478   :  { %4713 = vsyncpa [#allocation4], 1 }
 0x479   :  { %4714 = vsyncpa [#allocation9], 1 }
 0x47a   :  { %4715 = vsyncpa [#allocation5], 1 }
 0x47b   :  { %4716 = vsyncpa [#allocation6], 1 }

</bundles_post_ra>
